<compile_context>
chip_gen: v7x
topology: tpu7x:2x2x1
jax: 0.10.0
libtpu: 0.0.40
codegen_flags: <defaults>
</compile_context>

<pallas_src>
import functools

import jax
import jax.numpy as jnp
from jax.experimental import pallas as pl
from jax.experimental.pallas import tpu as pltpu

# ------------------------- model hyper-parameters -------------------------
GRAYSCALE = True
IN_DIMS = 1 if GRAYSCALE else 3
PATCH_SIZE = 16
OVERLAP = 2                      # -> patch stride = PATCH_SIZE // OVERLAP = 8
K_PREDICTIONS = 2
NEGATIVE_SAMPLES = 4
NUM_CHANNELS = [8, 16, 32]
BLOCK_DIMS = [1, 1, 1]
SKIP_STEP = 1


# ------------------------------ Pallas kernel ------------------------------
def _convmm_kernel(*refs, has_bias, has_res):
    """out(Cout, tm) = W(Cout, K) @ col(K, tm) [+ bias(Cout,1)] [+ res(Cout,tm)].

    Lane-dense output (M on lanes), bf16 MXU inputs, f32 accumulation, fused
    bias/residual epilogue.
    """
    i = 0
    w_ref = refs[i]; i += 1
    col_ref = refs[i]; i += 1
    bias_ref = None
    res_ref = None
    if has_bias:
        bias_ref = refs[i]; i += 1
    if has_res:
        res_ref = refs[i]; i += 1
    o_ref = refs[i]

    acc = jnp.dot(w_ref[...], col_ref[...], preferred_element_type=jnp.float32)
    if has_bias:
        acc = acc + bias_ref[...]          # (Cout,1) lane-broadcast
    if has_res:
        acc = acc + res_ref[...]
    o_ref[...] = acc.astype(o_ref.dtype)


def _pick_tm(m):
    """Largest lane-multiple tile that still gives >=2 grid steps (v7x: 2 TCs)."""
    for tm in (2048, 1024, 512, 256, 128):
        if m % tm == 0 and m // tm >= 2:
            return tm
    return m


def conv_matmul(w2d, colT, bias=None, residual=None):
    """W(Cout,K) @ colT(K,M) -> (Cout, M) f32, bias/residual fused in-kernel."""
    Ct, K = w2d.shape
    _, M = colT.shape
    tm = _pick_tm(M)
    grid = (M // tm,)

    has_bias = bias is not None
    has_res = residual is not None
    operands = [w2d.astype(jnp.bfloat16), colT.astype(jnp.bfloat16)]
    in_specs = [
        pl.BlockSpec((Ct, K), lambda i: (0, 0)),     # weights stay resident
        pl.BlockSpec((K, tm), lambda i: (0, i)),
    ]
    if has_bias:
        operands.append(bias.reshape(Ct, 1).astype(jnp.float32))
        in_specs.append(pl.BlockSpec((Ct, 1), lambda i: (0, 0)))
    if has_res:
        operands.append(residual.astype(jnp.float32))
        in_specs.append(pl.BlockSpec((Ct, tm), lambda i: (0, i)))

    return pl.pallas_call(
        functools.partial(_convmm_kernel, has_bias=has_bias, has_res=has_res),
        out_shape=jax.ShapeDtypeStruct((Ct, M), jnp.float32),
        grid=grid,
        in_specs=in_specs,
        out_specs=pl.BlockSpec((Ct, tm), lambda i: (0, i)),
        compiler_params=pltpu.CompilerParams(dimension_semantics=("parallel",)),
    )(*operands)


# ------------------------------- JAX glue ----------------------------------
def patchify_channel_major(x, patch_size, overlap):
    """x.unfold(2,..).unfold(3,..).permute(0,2,3,1,4,5).reshape(Bp,C,ps,ps),
    returned channel-major as (C, Bp, ps, ps) with Bp ordered (b, px, py)."""
    B, C, H, W = x.shape
    stride = patch_size // overlap
    n_px = (H - patch_size) // stride + 1
    n_py = (W - patch_size) // stride + 1
    patches = []
    for i in range(n_px):
        for j in range(n_py):
            patches.append(x[:, :, i * stride:i * stride + patch_size,
                             j * stride:j * stride + patch_size])
    p = jnp.stack(patches, axis=1)                     # (B, n_px*n_py, C, ps, ps)
    p = p.transpose(2, 0, 1, 3, 4).reshape(C, B * n_px * n_py, patch_size, patch_size)
    return p, n_px, n_py


def _im2col_T(x_cm, kh, kw, stride, padding):
    """Channel-major im2col, transposed: (Cin, Bp, H, W) -> (Cin*kh*kw, Bp*OH*OW).

    Feature row order is (Cin, kh, kw), matching w.reshape(Cout, Cin*kh*kw).
    Built in bf16 to halve HBM bytes of the 9x-replicated col matrix.
    """
    C, Bp, H, W = x_cm.shape
    x = x_cm.astype(jnp.bfloat16)
    xp = jnp.pad(x, ((0, 0), (0, 0), (padding, padding), (padding, padding)))
    OH = (H + 2 * padding - kh) // stride + 1
    OW = (W + 2 * padding - kw) // stride + 1
    taps = []
    for i in range(kh):
        for j in range(kw):
            taps.append(xp[:, :, i:i + stride * OH:stride, j:j + stride * OW:stride])
    col = jnp.stack(taps, axis=1)                      # (C, kh*kw, Bp, OH, OW)
    return col.reshape(C * kh * kw, Bp * OH * OW), OH, OW


def conv_cm(x_cm, w, bias=None, stride=1, padding=0, residual_flat=None):
    """Channel-major conv: (Cin, Bp, H, W) -> ((Cout_total, Bp*OH*OW) f32, OH, OW)."""
    Cin, Bp, H, W = x_cm.shape
    Cout_total = w.shape[0]
    colT, OH, OW = _im2col_T(x_cm, w.shape[2], w.shape[3], stride, padding)
    w2d = w.reshape(Cout_total, Cin * w.shape[2] * w.shape[3])
    out = conv_matmul(w2d, colT, bias=bias, residual=residual_flat)
    return out, OH, OW


def preact_block_cm(x_cm, blk):
    """PreActBlockNoBN: out = conv2(relu(conv1(relu(x)))) + shortcut, channel-major."""
    stride = blk["stride"]
    Cin, Bp, H, W = x_cm.shape
    planes = blk["conv1_w"].shape[0]
    r = jnp.maximum(x_cm, 0.0)                         # relu computed ONCE per block

    if "shortcut_w" in blk:
        # Fuse shortcut 1x1 conv into conv1's matmul: embed the 1x1 weight at the
        # center tap of a 3x3 kernel (pad=1 -> center tap reads x[oh*s, ow*s],
        # exactly the 1x1 stride-s conv) and stack along Cout.
        sc_full = jnp.zeros((planes, Cin, 3, 3), jnp.float32)
        sc_full = sc_full.at[:, :, 1, 1].set(blk["shortcut_w"][:, :, 0, 0])
        w_stack = jnp.concatenate([blk["conv1_w"], sc_full], axis=0)   # (2*planes,...)
        out_all, OH, OW = conv_cm(r, w_stack, stride=stride, padding=1)
        out1_flat = out_all[:planes]                    # conv1(relu(x))
        shortcut_flat = out_all[planes:]                # shortcut(relu(x))
    else:
        out1_flat, OH, OW = conv_cm(r, blk["conv1_w"], stride=stride, padding=1)
        shortcut_flat = x_cm.reshape(Cin, Bp * H * W)   # identity shortcut (no relu)

    r2 = jnp.maximum(out1_flat, 0.0).reshape(planes, Bp, OH, OW)
    out2_flat, OH2, OW2 = conv_cm(r2, blk["conv2_w"], stride=1, padding=1,
                                  residual_flat=shortcut_flat)   # residual fused in-kernel
    return out2_flat.reshape(planes, Bp, OH2, OW2)


def bilinear_info_forward_cm(z_cm, c_cm, w_k_list, key):
    """BilinearInfo.forward(z, c, skip_step=1); z/c channel-major (C, B, X, Y).

    Per perf review: the K_PREDICTIONS 1x1 convs are batched into one einsum and
    the gather / scoring / softmax stay in plain jnp (launch-overhead-bound).
    """
    C, B, X, Y = z_cm.shape
    P = 1 + NEGATIVE_SAMPLES
    cut_min = 1 + SKIP_STEP
    w_all = jnp.concatenate([w.reshape(C, C) for w in w_k_list], axis=0)  # (K*C, C)
    z_big = z_cm[:, :, cut_min:, :]                                       # (C,B,X-cut_min,Y)
    ztwk_all = jnp.einsum("oc,cbxy->obxy", w_all, z_big)                  # (K*C,B,...,Y)

    log_f_list, true_f_list = [], []
    for k in range(1, K_PREDICTIONS + 1):
        key, sub = jax.random.split(key)
        cut = k + SKIP_STEP
        Xp = X - cut
        M = Xp * Y * B
        ztwk = ztwk_all[(k - 1) * C:k * C, :, cut - cut_min:, :]          # (C,B,Xp,Y)
        ztwk_flat = ztwk.transpose(2, 3, 1, 0).reshape(M, C)              # rows (x,y,b)

        # negative sampling (torch.randint + gather)
        rand_index = jax.random.randint(sub, (M * NEGATIVE_SAMPLES,), 0, M)
        ztwk_shuf = jnp.take(ztwk_flat, rand_index, axis=0).reshape(M, NEGATIVE_SAMPLES, C)

        context = c_cm[:, :, :X - cut, :].transpose(2, 3, 1, 0).reshape(M, C)
        cand = jnp.concatenate([ztwk_flat[:, None, :], ztwk_shuf], axis=1)  # (M,P,C)
        logits = jnp.einsum("mc,mpc->mp", context, cand)
        # TODO(synk): reference BilinearInfo applies torch.softmax here; verify the
        # downstream loss does not expect log-softmax (reviewer flag, kept as-is).
        probs = jax.nn.softmax(logits, axis=-1)
        log_fk = probs.reshape(Xp, Y, B, P).transpose(2, 3, 0, 1)          # (B,P,Xp,Y)
        # TODO(synk): torch uses dtype=torch.long (int64); int32 used here (JAX x64 off).
        true_f = jnp.zeros((B, Xp, Y), jnp.int32)
        log_f_list.append(log_fk)
        true_f_list.append(true_f)
    return log_f_list, true_f_list


def resnet_encoder_forward(x_cm, enc, n_px, n_py, key):
    z = x_cm
    for blk in enc["blocks"]:
        z = preact_block_cm(z, blk)
    C, Bp, H, W = z.shape
    # adaptive_avg_pool2d(., 1): tiny, kept in jnp so XLA fuses it (perf review).
    pooled = jnp.mean(z, axis=(2, 3))                   # (C, Bp)
    out_cm = pooled.reshape(C, -1, n_px, n_py)          # (C, B, n_px, n_py)
    log_f_list, true_f_list = bilinear_info_forward_cm(out_cm, out_cm, enc["wk"], key)
    return log_f_list, true_f_list, z


def full_vision_forward(x, params):
    x_cm, n_px, n_py = patchify_channel_major(x, PATCH_SIZE, OVERLAP)   # (C,Bp,ps,ps)
    Bp = x_cm.shape[1]
    h_flat, OH, OW = conv_cm(x_cm, params["conv0_w"], bias=params["conv0_b"],
                             stride=1, padding=2)
    h = h_flat.reshape(-1, Bp, OH, OW)                  # (C0, Bp, 16, 16)

    log_f_module_list, true_f_module_list = [], []
    key = jax.random.PRNGKey(123)   # negative-sample RNG (torch.randint analogue)
    for enc in params["encoders"]:
        key, sub = jax.random.split(key)
        log_f_list, true_f_list, z = resnet_encoder_forward(h, enc, n_px, n_py, sub)
        log_f_module_list.append(log_f_list)
        true_f_module_list.append(true_f_list)
        h = jax.lax.stop_gradient(z)                    # x = z.detach()
    return log_f_module_list, true_f_module_list


# --------------------------- parameter construction ------------------------
def init_params(key):
    keys = iter(jax.random.split(key, 128))

    def nrm(shape, scale=0.05):
        return scale * jax.random.normal(next(keys), shape, jnp.float32)

    params = {
        "conv0_w": nrm((NUM_CHANNELS[0], IN_DIMS, 5, 5)),
        "conv0_b": nrm((NUM_CHANNELS[0],)),
        "encoders": [],
    }
    in_planes = NUM_CHANNELS[0]
    for idx, (planes, n_blocks) in enumerate(zip(NUM_CHANNELS, BLOCK_DIMS)):
        first_stride = 1 if idx == 0 else 2
        strides = [first_stride] + [1] * (n_blocks - 1)
        blocks = []
        for s in strides:
            blk = {
                "stride": s,
                "conv1_w": nrm((planes, in_planes, 3, 3)),
                "conv2_w": nrm((planes, planes, 3, 3)),
            }
            if s != 1 or in_planes != planes:
                blk["shortcut_w"] = nrm((planes, in_planes, 1, 1))
            blocks.append(blk)
            in_planes = planes
        wk = [nrm((planes, planes, 1, 1)) for _ in range(K_PREDICTIONS)]
        params["encoders"].append({"blocks": blocks, "wk": wk})
    return params


# ----------------------------------- main -----------------------------------
if __name__ == "__main__":
    # 40x40 grayscale -> n_patches = (40-16)//8 + 1 = 4 > k_predictions + skip_step
    x = jax.random.normal(jax.random.PRNGKey(0), (2, IN_DIMS, 40, 40), jnp.float32)
    params = init_params(jax.random.PRNGKey(1))

    fwd = jax.jit(lambda img: full_vision_forward(img, params))
    log_f_mods, true_f_mods = fwd(x)
    jax.block_until_ready((log_f_mods, true_f_mods))

    # light sanity checks on shapes / softmax normalization
    assert len(log_f_mods) == len(NUM_CHANNELS) and len(true_f_mods) == len(NUM_CHANNELS)
    n_p = 4
    for mod_logs, mod_trues in zip(log_f_mods, true_f_mods):
        assert len(mod_logs) == K_PREDICTIONS
        for k, (lf, tf) in enumerate(zip(mod_logs, mod_trues), start=1):
            xp_len = n_p - (k + SKIP_STEP)
            assert lf.shape == (2, 1 + NEGATIVE_SAMPLES, xp_len, n_p), lf.shape
            assert tf.shape == (2, xp_len, n_p) and tf.dtype == jnp.int32
            assert bool(jnp.allclose(jnp.sum(lf, axis=1), 1.0, atol=1e-4))
    print("KERNEL_OK")
</pallas_src>

<mosaic_0001>
module attributes {stable_mosaic.version = 11 : i64} {
  func.func @_convmm_kernel(%arg0: i32, %arg1: memref<8x25xbf16, #tpu.memory_space<vmem>>, %arg2: memref<25x2048xbf16, #tpu.memory_space<vmem>>, %arg3: memref<8x1xf32, #tpu.memory_space<vmem>>, %arg4: memref<8x2048xf32, #tpu.memory_space<vmem>>) attributes {dimension_semantics = [#tpu.dimension_semantics<parallel>], iteration_bounds = array<i64: 4>, scalar_prefetch = 0 : i64, scratch_operands = 0 : i64, tpu.core_type = #tpu.core_type<tc>, window_params = [{pipeline_mode = #tpu.pipeline_mode<synchronous>, transform_indices = @transform_0, window_bounds = array<i64: 8, 25>}, {transform_indices = @transform_1, window_bounds = array<i64: 25, 2048>}, {pipeline_mode = #tpu.pipeline_mode<synchronous>, transform_indices = @transform_2, window_bounds = array<i64: 8, 1>}, {transform_indices = @transform_3, window_bounds = array<i64: 8, 2048>}]} {
    %c0 = arith.constant 0 : index
    %c0_0 = arith.constant 0 : index
    %0 = vector.load %arg1[%c0, %c0_0] : memref<8x25xbf16, #tpu.memory_space<vmem>>, vector<8x25xbf16>
    %c0_1 = arith.constant 0 : index
    %c0_2 = arith.constant 0 : index
    %1 = vector.load %arg2[%c0_1, %c0_2] : memref<25x2048xbf16, #tpu.memory_space<vmem>>, vector<25x2048xbf16>
    %cst = arith.constant dense<0.000000e+00> : vector<8x2048xf32>
    %2 = tpu.matmul %0, %1, %cst {dimension_numbers = #tpu.dot_dimension_numbers<[1], [0], [0], [1], [0, 0, 1, 1], [], []>} : vector<8x25xbf16>, vector<25x2048xbf16>, vector<8x2048xf32> -> vector<8x2048xf32>
    %c0_3 = arith.constant 0 : index
    %c0_4 = arith.constant 0 : index
    %3 = vector.load %arg3[%c0_3, %c0_4] : memref<8x1xf32, #tpu.memory_space<vmem>>, vector<8x1xf32>
    %4 = vector.broadcast %3 : vector<8x1xf32> to vector<8x2048xf32>
    %5 = arith.addf %2, %4 : vector<8x2048xf32>
    %c0_5 = arith.constant 0 : index
    %c0_6 = arith.constant 0 : index
    %6 = vector.load %arg4[%c0_5, %c0_6] : memref<8x2048xf32, #tpu.memory_space<vmem>>, vector<8x2048xf32>
    tpu.vector_store %arg4[%c0_5, %c0_6], %5 {strides = array<i32>} : memref<8x2048xf32, #tpu.memory_space<vmem>>, vector<8x2048xf32>,
    return
  }
  func.func @transform_0(%arg0: i32) -> (i32, i32) {
    %c0_i32 = arith.constant 0 : i32
    %c0_i32_0 = arith.constant 0 : i32
    %c0_i32_1 = arith.constant 0 : i32
    return %c0_i32, %c0_i32_0 : i32, i32
  }
  func.func @transform_1(%arg0: i32) -> (i32, i32) {
    %c0_i32 = arith.constant 0 : i32
    %c0_i32_0 = arith.constant 0 : i32
    return %c0_i32, %arg0 : i32, i32
  }
  func.func @transform_2(%arg0: i32) -> (i32, i32) {
    %c0_i32 = arith.constant 0 : i32
    %c0_i32_0 = arith.constant 0 : i32
    %c0_i32_1 = arith.constant 0 : i32
    return %c0_i32, %c0_i32_0 : i32, i32
  }
  func.func @transform_3(%arg0: i32) -> (i32, i32) {
    %c0_i32 = arith.constant 0 : i32
    %c0_i32_0 = arith.constant 0 : i32
    return %c0_i32, %arg0 : i32, i32
  }
}

module attributes {stable_mosaic.version = 11 : i64} {
  func.func @_convmm_kernel(%arg0: i32, %arg1: memref<8x72xbf16, #tpu.memory_space<vmem>>, %arg2: memref<72x2048xbf16, #tpu.memory_space<vmem>>, %arg3: memref<8x2048xf32, #tpu.memory_space<vmem>>) attributes {dimension_semantics = [#tpu.dimension_semantics<parallel>], iteration_bounds = array<i64: 4>, scalar_prefetch = 0 : i64, scratch_operands = 0 : i64, tpu.core_type = #tpu.core_type<tc>, window_params = [{pipeline_mode = #tpu.pipeline_mode<synchronous>, transform_indices = @transform_0, window_bounds = array<i64: 8, 72>}, {transform_indices = @transform_1, window_bounds = array<i64: 72, 2048>}, {transform_indices = @transform_2, window_bounds = array<i64: 8, 2048>}]} {
    %c0 = arith.constant 0 : index
    %c0_0 = arith.constant 0 : index
    %0 = vector.load %arg1[%c0, %c0_0] : memref<8x72xbf16, #tpu.memory_space<vmem>>, vector<8x72xbf16>
    %c0_1 = arith.constant 0 : index
    %c0_2 = arith.constant 0 : index
    %1 = vector.load %arg2[%c0_1, %c0_2] : memref<72x2048xbf16, #tpu.memory_space<vmem>>, vector<72x2048xbf16>
    %cst = arith.constant dense<0.000000e+00> : vector<8x2048xf32>
    %2 = tpu.matmul %0, %1, %cst {dimension_numbers = #tpu.dot_dimension_numbers<[1], [0], [0], [1], [0, 0, 1, 1], [], []>} : vector<8x72xbf16>, vector<72x2048xbf16>, vector<8x2048xf32> -> vector<8x2048xf32>
    %c0_3 = arith.constant 0 : index
    %c0_4 = arith.constant 0 : index
    %3 = vector.load %arg3[%c0_3, %c0_4] : memref<8x2048xf32, #tpu.memory_space<vmem>>, vector<8x2048xf32>
    tpu.vector_store %arg3[%c0_3, %c0_4], %2 {strides = array<i32>} : memref<8x2048xf32, #tpu.memory_space<vmem>>, vector<8x2048xf32>,
    return
  }
  func.func @transform_0(%arg0: i32) -> (i32, i32) {
    %c0_i32 = arith.constant 0 : i32
    %c0_i32_0 = arith.constant 0 : i32
    %c0_i32_1 = arith.constant 0 : i32
    return %c0_i32, %c0_i32_0 : i32, i32
  }
  func.func @transform_1(%arg0: i32) -> (i32, i32) {
    %c0_i32 = arith.constant 0 : i32
    %c0_i32_0 = arith.constant 0 : i32
    return %c0_i32, %arg0 : i32, i32
  }
  func.func @transform_2(%arg0: i32) -> (i32, i32) {
    %c0_i32 = arith.constant 0 : i32
    %c0_i32_0 = arith.constant 0 : i32
    return %c0_i32, %arg0 : i32, i32
  }
}

module attributes {stable_mosaic.version = 11 : i64} {
  func.func @_convmm_kernel(%arg0: i32, %arg1: memref<8x72xbf16, #tpu.memory_space<vmem>>, %arg2: memref<72x2048xbf16, #tpu.memory_space<vmem>>, %arg3: memref<8x2048xf32, #tpu.memory_space<vmem>>, %arg4: memref<8x2048xf32, #tpu.memory_space<vmem>>) attributes {dimension_semantics = [#tpu.dimension_semantics<parallel>], iteration_bounds = array<i64: 4>, scalar_prefetch = 0 : i64, scratch_operands = 0 : i64, tpu.core_type = #tpu.core_type<tc>, window_params = [{pipeline_mode = #tpu.pipeline_mode<synchronous>, transform_indices = @transform_0, window_bounds = array<i64: 8, 72>}, {transform_indices = @transform_1, window_bounds = array<i64: 72, 2048>}, {transform_indices = @transform_2, window_bounds = array<i64: 8, 2048>}, {transform_indices = @transform_3, window_bounds = array<i64: 8, 2048>}]} {
    %c0 = arith.constant 0 : index
    %c0_0 = arith.constant 0 : index
    %0 = vector.load %arg1[%c0, %c0_0] : memref<8x72xbf16, #tpu.memory_space<vmem>>, vector<8x72xbf16>
    %c0_1 = arith.constant 0 : index
    %c0_2 = arith.constant 0 : index
    %1 = vector.load %arg2[%c0_1, %c0_2] : memref<72x2048xbf16, #tpu.memory_space<vmem>>, vector<72x2048xbf16>
    %cst = arith.constant dense<0.000000e+00> : vector<8x2048xf32>
    %2 = tpu.matmul %0, %1, %cst {dimension_numbers = #tpu.dot_dimension_numbers<[1], [0], [0], [1], [0, 0, 1, 1], [], []>} : vector<8x72xbf16>, vector<72x2048xbf16>, vector<8x2048xf32> -> vector<8x2048xf32>
    %c0_3 = arith.constant 0 : index
    %c0_4 = arith.constant 0 : index
    %3 = vector.load %arg3[%c0_3, %c0_4] : memref<8x2048xf32, #tpu.memory_space<vmem>>, vector<8x2048xf32>
    %4 = arith.addf %2, %3 : vector<8x2048xf32>
    %c0_5 = arith.constant 0 : index
    %c0_6 = arith.constant 0 : index
    %5 = vector.load %arg4[%c0_5, %c0_6] : memref<8x2048xf32, #tpu.memory_space<vmem>>, vector<8x2048xf32>
    tpu.vector_store %arg4[%c0_5, %c0_6], %4 {strides = array<i32>} : memref<8x2048xf32, #tpu.memory_space<vmem>>, vector<8x2048xf32>,
    return
  }
  func.func @transform_0(%arg0: i32) -> (i32, i32) {
    %c0_i32 = arith.constant 0 : i32
    %c0_i32_0 = arith.constant 0 : i32
    %c0_i32_1 = arith.constant 0 : i32
    return %c0_i32, %c0_i32_0 : i32, i32
  }
  func.func @transform_1(%arg0: i32) -> (i32, i32) {
    %c0_i32 = arith.constant 0 : i32
    %c0_i32_0 = arith.constant 0 : i32
    return %c0_i32, %arg0 : i32, i32
  }
  func.func @transform_2(%arg0: i32) -> (i32, i32) {
    %c0_i32 = arith.constant 0 : i32
    %c0_i32_0 = arith.constant 0 : i32
    return %c0_i32, %arg0 : i32, i32
  }
  func.func @transform_3(%arg0: i32) -> (i32, i32) {
    %c0_i32 = arith.constant 0 : i32
    %c0_i32_0 = arith.constant 0 : i32
    return %c0_i32, %arg0 : i32, i32
  }
}

module attributes {stable_mosaic.version = 11 : i64} {
  func.func @_convmm_kernel(%arg0: i32, %arg1: memref<32x72xbf16, #tpu.memory_space<vmem>>, %arg2: memref<72x1024xbf16, #tpu.memory_space<vmem>>, %arg3: memref<32x1024xf32, #tpu.memory_space<vmem>>) attributes {dimension_semantics = [#tpu.dimension_semantics<parallel>], iteration_bounds = array<i64: 2>, scalar_prefetch = 0 : i64, scratch_operands = 0 : i64, tpu.core_type = #tpu.core_type<tc>, window_params = [{pipeline_mode = #tpu.pipeline_mode<synchronous>, transform_indices = @transform_0, window_bounds = array<i64: 32, 72>}, {transform_indices = @transform_1, window_bounds = array<i64: 72, 1024>}, {transform_indices = @transform_2, window_bounds = array<i64: 32, 1024>}]} {
    %c0 = arith.constant 0 : index
    %c0_0 = arith.constant 0 : index
    %0 = vector.load %arg1[%c0, %c0_0] : memref<32x72xbf16, #tpu.memory_space<vmem>>, vector<32x72xbf16>
    %c0_1 = arith.constant 0 : index
    %c0_2 = arith.constant 0 : index
    %1 = vector.load %arg2[%c0_1, %c0_2] : memref<72x1024xbf16, #tpu.memory_space<vmem>>, vector<72x1024xbf16>
    %cst = arith.constant dense<0.000000e+00> : vector<32x1024xf32>
    %2 = tpu.matmul %0, %1, %cst {dimension_numbers = #tpu.dot_dimension_numbers<[1], [0], [0], [1], [0, 0, 1, 1], [], []>} : vector<32x72xbf16>, vector<72x1024xbf16>, vector<32x1024xf32> -> vector<32x1024xf32>
    %c0_3 = arith.constant 0 : index
    %c0_4 = arith.constant 0 : index
    %3 = vector.load %arg3[%c0_3, %c0_4] : memref<32x1024xf32, #tpu.memory_space<vmem>>, vector<32x1024xf32>
    tpu.vector_store %arg3[%c0_3, %c0_4], %2 {strides = array<i32>} : memref<32x1024xf32, #tpu.memory_space<vmem>>, vector<32x1024xf32>,
    return
  }
  func.func @transform_0(%arg0: i32) -> (i32, i32) {
    %c0_i32 = arith.constant 0 : i32
    %c0_i32_0 = arith.constant 0 : i32
    %c0_i32_1 = arith.constant 0 : i32
    return %c0_i32, %c0_i32_0 : i32, i32
  }
  func.func @transform_1(%arg0: i32) -> (i32, i32) {
    %c0_i32 = arith.constant 0 : i32
    %c0_i32_0 = arith.constant 0 : i32
    return %c0_i32, %arg0 : i32, i32
  }
  func.func @transform_2(%arg0: i32) -> (i32, i32) {
    %c0_i32 = arith.constant 0 : i32
    %c0_i32_0 = arith.constant 0 : i32
    return %c0_i32, %arg0 : i32, i32
  }
}

module attributes {stable_mosaic.version = 11 : i64} {
  func.func @_convmm_kernel(%arg0: i32, %arg1: memref<16x144xbf16, #tpu.memory_space<vmem>>, %arg2: memref<144x1024xbf16, #tpu.memory_space<vmem>>, %arg3: memref<16x1024xf32, #tpu.memory_space<vmem>>, %arg4: memref<16x1024xf32, #tpu.memory_space<vmem>>) attributes {dimension_semantics = [#tpu.dimension_semantics<parallel>], iteration_bounds = array<i64: 2>, scalar_prefetch = 0 : i64, scratch_operands = 0 : i64, tpu.core_type = #tpu.core_type<tc>, window_params = [{pipeline_mode = #tpu.pipeline_mode<synchronous>, transform_indices = @transform_0, window_bounds = array<i64: 16, 144>}, {transform_indices = @transform_1, window_bounds = array<i64: 144, 1024>}, {transform_indices = @transform_2, window_bounds = array<i64: 16, 1024>}, {transform_indices = @transform_3, window_bounds = array<i64: 16, 1024>}]} {
    %c0 = arith.constant 0 : index
    %c0_0 = arith.constant 0 : index
    %0 = vector.load %arg1[%c0, %c0_0] : memref<16x144xbf16, #tpu.memory_space<vmem>>, vector<16x144xbf16>
    %c0_1 = arith.constant 0 : index
    %c0_2 = arith.constant 0 : index
    %1 = vector.load %arg2[%c0_1, %c0_2] : memref<144x1024xbf16, #tpu.memory_space<vmem>>, vector<144x1024xbf16>
    %cst = arith.constant dense<0.000000e+00> : vector<16x1024xf32>
    %2 = tpu.matmul %0, %1, %cst {dimension_numbers = #tpu.dot_dimension_numbers<[1], [0], [0], [1], [0, 0, 1, 1], [], []>} : vector<16x144xbf16>, vector<144x1024xbf16>, vector<16x1024xf32> -> vector<16x1024xf32>
    %c0_3 = arith.constant 0 : index
    %c0_4 = arith.constant 0 : index
    %3 = vector.load %arg3[%c0_3, %c0_4] : memref<16x1024xf32, #tpu.memory_space<vmem>>, vector<16x1024xf32>
    %4 = arith.addf %2, %3 : vector<16x1024xf32>
    %c0_5 = arith.constant 0 : index
    %c0_6 = arith.constant 0 : index
    %5 = vector.load %arg4[%c0_5, %c0_6] : memref<16x1024xf32, #tpu.memory_space<vmem>>, vector<16x1024xf32>
    tpu.vector_store %arg4[%c0_5, %c0_6], %4 {strides = array<i32>} : memref<16x1024xf32, #tpu.memory_space<vmem>>, vector<16x1024xf32>,
    return
  }
  func.func @transform_0(%arg0: i32) -> (i32, i32) {
    %c0_i32 = arith.constant 0 : i32
    %c0_i32_0 = arith.constant 0 : i32
    %c0_i32_1 = arith.constant 0 : i32
    return %c0_i32, %c0_i32_0 : i32, i32
  }
  func.func @transform_1(%arg0: i32) -> (i32, i32) {
    %c0_i32 = arith.constant 0 : i32
    %c0_i32_0 = arith.constant 0 : i32
    return %c0_i32, %arg0 : i32, i32
  }
  func.func @transform_2(%arg0: i32) -> (i32, i32) {
    %c0_i32 = arith.constant 0 : i32
    %c0_i32_0 = arith.constant 0 : i32
    return %c0_i32, %arg0 : i32, i32
  }
  func.func @transform_3(%arg0: i32) -> (i32, i32) {
    %c0_i32 = arith.constant 0 : i32
    %c0_i32_0 = arith.constant 0 : i32
    return %c0_i32, %arg0 : i32, i32
  }
}

module attributes {stable_mosaic.version = 11 : i64} {
  func.func @_convmm_kernel(%arg0: i32, %arg1: memref<64x144xbf16, #tpu.memory_space<vmem>>, %arg2: memref<144x256xbf16, #tpu.memory_space<vmem>>, %arg3: memref<64x256xf32, #tpu.memory_space<vmem>>) attributes {dimension_semantics = [#tpu.dimension_semantics<parallel>], iteration_bounds = array<i64: 2>, scalar_prefetch = 0 : i64, scratch_operands = 0 : i64, tpu.core_type = #tpu.core_type<tc>, window_params = [{pipeline_mode = #tpu.pipeline_mode<synchronous>, transform_indices = @transform_0, window_bounds = array<i64: 64, 144>}, {transform_indices = @transform_1, window_bounds = array<i64: 144, 256>}, {transform_indices = @transform_2, window_bounds = array<i64: 64, 256>}]} {
    %c0 = arith.constant 0 : index
    %c0_0 = arith.constant 0 : index
    %0 = vector.load %arg1[%c0, %c0_0] : memref<64x144xbf16, #tpu.memory_space<vmem>>, vector<64x144xbf16>
    %c0_1 = arith.constant 0 : index
    %c0_2 = arith.constant 0 : index
    %1 = vector.load %arg2[%c0_1, %c0_2] : memref<144x256xbf16, #tpu.memory_space<vmem>>, vector<144x256xbf16>
    %cst = arith.constant dense<0.000000e+00> : vector<64x256xf32>
    %2 = tpu.matmul %0, %1, %cst {dimension_numbers = #tpu.dot_dimension_numbers<[1], [0], [0], [1], [0, 0, 1, 1], [], []>} : vector<64x144xbf16>, vector<144x256xbf16>, vector<64x256xf32> -> vector<64x256xf32>
    %c0_3 = arith.constant 0 : index
    %c0_4 = arith.constant 0 : index
    %3 = vector.load %arg3[%c0_3, %c0_4] : memref<64x256xf32, #tpu.memory_space<vmem>>, vector<64x256xf32>
    tpu.vector_store %arg3[%c0_3, %c0_4], %2 {strides = array<i32>} : memref<64x256xf32, #tpu.memory_space<vmem>>, vector<64x256xf32>,
    return
  }
  func.func @transform_0(%arg0: i32) -> (i32, i32) {
    %c0_i32 = arith.constant 0 : i32
    %c0_i32_0 = arith.constant 0 : i32
    %c0_i32_1 = arith.constant 0 : i32
    return %c0_i32, %c0_i32_0 : i32, i32
  }
  func.func @transform_1(%arg0: i32) -> (i32, i32) {
    %c0_i32 = arith.constant 0 : i32
    %c0_i32_0 = arith.constant 0 : i32
    return %c0_i32, %arg0 : i32, i32
  }
  func.func @transform_2(%arg0: i32) -> (i32, i32) {
    %c0_i32 = arith.constant 0 : i32
    %c0_i32_0 = arith.constant 0 : i32
    return %c0_i32, %arg0 : i32, i32
  }
}

module attributes {stable_mosaic.version = 11 : i64} {
  func.func @_convmm_kernel(%arg0: i32, %arg1: memref<32x288xbf16, #tpu.memory_space<vmem>>, %arg2: memref<288x256xbf16, #tpu.memory_space<vmem>>, %arg3: memref<32x256xf32, #tpu.memory_space<vmem>>, %arg4: memref<32x256xf32, #tpu.memory_space<vmem>>) attributes {dimension_semantics = [#tpu.dimension_semantics<parallel>], iteration_bounds = array<i64: 2>, scalar_prefetch = 0 : i64, scratch_operands = 0 : i64, tpu.core_type = #tpu.core_type<tc>, window_params = [{pipeline_mode = #tpu.pipeline_mode<synchronous>, transform_indices = @transform_0, window_bounds = array<i64: 32, 288>}, {transform_indices = @transform_1, window_bounds = array<i64: 288, 256>}, {transform_indices = @transform_2, window_bounds = array<i64: 32, 256>}, {transform_indices = @transform_3, window_bounds = array<i64: 32, 256>}]} {
    %c0 = arith.constant 0 : index
    %c0_0 = arith.constant 0 : index
    %0 = vector.load %arg1[%c0, %c0_0] : memref<32x288xbf16, #tpu.memory_space<vmem>>, vector<32x288xbf16>
    %c0_1 = arith.constant 0 : index
    %c0_2 = arith.constant 0 : index
    %1 = vector.load %arg2[%c0_1, %c0_2] : memref<288x256xbf16, #tpu.memory_space<vmem>>, vector<288x256xbf16>
    %cst = arith.constant dense<0.000000e+00> : vector<32x256xf32>
    %2 = tpu.matmul %0, %1, %cst {dimension_numbers = #tpu.dot_dimension_numbers<[1], [0], [0], [1], [0, 0, 1, 1], [], []>} : vector<32x288xbf16>, vector<288x256xbf16>, vector<32x256xf32> -> vector<32x256xf32>
    %c0_3 = arith.constant 0 : index
    %c0_4 = arith.constant 0 : index
    %3 = vector.load %arg3[%c0_3, %c0_4] : memref<32x256xf32, #tpu.memory_space<vmem>>, vector<32x256xf32>
    %4 = arith.addf %2, %3 : vector<32x256xf32>
    %c0_5 = arith.constant 0 : index
    %c0_6 = arith.constant 0 : index
    %5 = vector.load %arg4[%c0_5, %c0_6] : memref<32x256xf32, #tpu.memory_space<vmem>>, vector<32x256xf32>
    tpu.vector_store %arg4[%c0_5, %c0_6], %4 {strides = array<i32>} : memref<32x256xf32, #tpu.memory_space<vmem>>, vector<32x256xf32>,
    return
  }
  func.func @transform_0(%arg0: i32) -> (i32, i32) {
    %c0_i32 = arith.constant 0 : i32
    %c0_i32_0 = arith.constant 0 : i32
    %c0_i32_1 = arith.constant 0 : i32
    return %c0_i32, %c0_i32_0 : i32, i32
  }
  func.func @transform_1(%arg0: i32) -> (i32, i32) {
    %c0_i32 = arith.constant 0 : i32
    %c0_i32_0 = arith.constant 0 : i32
    return %c0_i32, %arg0 : i32, i32
  }
  func.func @transform_2(%arg0: i32) -> (i32, i32) {
    %c0_i32 = arith.constant 0 : i32
    %c0_i32_0 = arith.constant 0 : i32
    return %c0_i32, %arg0 : i32, i32
  }
  func.func @transform_3(%arg0: i32) -> (i32, i32) {
    %c0_i32 = arith.constant 0 : i32
    %c0_i32_0 = arith.constant 0 : i32
    return %c0_i32, %arg0 : i32, i32
  }
}

</mosaic_0001>

<bundles_post_ra>
// kernel: _lambda_.7
= control target key start
LH: loop header
LB: loop body
LE: loop exit
PB: predicated region body
PF: predicated region fallthrough
CT: control target
= control target key end

     0   :  { %s1028_s12 = smov 0   ;;  %s1030_s13 = smov 0   ;;  %s1252_s0 = inlined_call_operand.vmem [shape: bf16[8,25], index: 0, kind: input, shape index: {}]   ;;  %s1253_s1 = inlined_call_operand.vmem [shape: bf16[25,8192], index: 1, kind: input, shape index: {}]   ;;  %s1254_s2 = inlined_call_operand.vmem [shape: f32[8,1], index: 2, kind: input, shape index: {}]   ;;  %s1255_s3 = inlined_call_operand.vmem [shape: f32[8,8192], index: 3, kind: output, shape index: {}]  }
   0x1   :  { %s1032_s14 = smov 0  }
   0x2 LB: > { %s901_s15 = sadd.s32 4294967295, %s1004_s14   ;;  %s1045_s16 = sadd.s32 1, %s1004_s14   ;;  %s1004_s14 = sphi %s1032_s14, %s1258_s14   ;;  %s1000_s13 = sphi %s1030_s13, %s1257_s13   ;;  %s996_s12 = sphi %s1028_s12, %s1256_s12  }
   0x3   : > { %s38_s17 = ssub.s32 %s1004_s14, %s1045_s16  ;;  %s41_s18 = sadd.s32 1, %s1000_s13 }
   0x4   : > { %p39_p0 = scmp.eq.s32.totalorder %s38_s17, 0  ;;  %p48_p1 = scmp.ne.s32.totalorder %s1000_s13, %s996_s12 }
   0x5   : > { %p49_p2 = scmp.eq.s32.totalorder %s1004_s14, 0  ;;  %p904_p4 = scmp.ge.s32.totalorder %s1004_s14, 4 }
   0x6   : > { %s1054_s19 = scalar_select %p39_p0, %s1000_s13, %s41_s18  }
   0x7   : > { %p50_p3 = por %p49_p2, %p48_p1  ;;  %127 = sbr.rel (%p904_p4) target bundleno = 34 (0x22), region = 24 }
   0xe   : > { %130 = sbr.rel (!%p50_p3) target bundleno = 34 (0x22), region = 28  ;;  %s132_s20 = sand.u32 (%p50_p3), 1, %s1000_s13  }
   0xf   : > { %s954_s21 = sshll.u32 (%p50_p3), %s1004_s14, 6  ;;  %s905_s22 = sshll.u32 (%p50_p3), %s132_s20, 8 }
  0x10   : > { %s1062_s25 = scalar_lea.vmem (%p50_p3), %s1253_s1, %s954_s21  ;;  %s1067_s26 = scalar_lea.vmem (%p50_p3), [#allocation2], %s905_s22 }
  0x11   : > { %v150_v0 = vld [vmem:[%s1062_s25] sm:$0xff] (%p50_p3)  ;;  %v152_v1 = vld [vmem:[%s1062_s25 + $0x8] sm:$0xff] (%p50_p3)  ;;  %v154_v2 = vld [vmem:[%s1062_s25 + $0x10] sm:$0xff] (%p50_p3) }
  0x12   : > { %151 = vst [vmem:[%s1067_s26] sm:$0xff] (%p50_p3), %v150_v0  ;;  %153 = vst [vmem:[%s1067_s26 + $0x8] sm:$0xff] (%p50_p3), %v152_v1  ;;  %v156_v3 = vld [vmem:[%s1062_s25 + $0x18] sm:$0xff] (%p50_p3)  ;;  %v158_v4 = vld [vmem:[%s1062_s25 + $0x20] sm:$0xff] (%p50_p3) }
  0x13   : > { %155 = vst [vmem:[%s1067_s26 + $0x10] sm:$0xff] (%p50_p3), %v154_v2  ;;  %v160_v5 = vld [vmem:[%s1062_s25 + $0x28] sm:$0xff] (%p50_p3)  ;;  %157 = vst [vmem:[%s1067_s26 + $0x18] sm:$0xff] (%p50_p3), %v156_v3  ;;  %v162_v6 = vld [vmem:[%s1062_s25 + $0x30] sm:$0xff] (%p50_p3) }
  0x14   : > { %159 = vst [vmem:[%s1067_s26 + $0x20] sm:$0xff] (%p50_p3), %v158_v4  ;;  %161 = vst [vmem:[%s1067_s26 + $0x28] sm:$0xff] (%p50_p3), %v160_v5  ;;  %v164_v7 = vld [vmem:[%s1062_s25 + $0x38] sm:$0xff] (%p50_p3)  ;;  %v166_v8 = vld [vmem:[%s1062_s25 + $0x100] sm:$0xff] (%p50_p3) }
  0x15   : > { %163 = vst [vmem:[%s1067_s26 + $0x30] sm:$0xff] %v162_v6  ;;  %165 = vst [vmem:[%s1067_s26 + $0x38] sm:$0xff] %v164_v7  ;;  %v168_v9 = vld [vmem:[%s1062_s25 + $0x108] sm:$0xff]  ;;  %v170_v10 = vld [vmem:[%s1062_s25 + $0x110] sm:$0xff] }
  0x16   : > { %167 = vst [vmem:[%s1067_s26 + $0x40] sm:$0xff] %v166_v8  ;;  %v172_v11 = vld [vmem:[%s1062_s25 + $0x118] sm:$0xff]  ;;  %169 = vst [vmem:[%s1067_s26 + $0x48] sm:$0xff] %v168_v9  ;;  %v174_v12 = vld [vmem:[%s1062_s25 + $0x120] sm:$0xff] }
  0x17   : > { %171 = vst [vmem:[%s1067_s26 + $0x50] sm:$0xff] %v170_v10  ;;  %173 = vst [vmem:[%s1067_s26 + $0x58] sm:$0xff] %v172_v11  ;;  %v176_v13 = vld [vmem:[%s1062_s25 + $0x128] sm:$0xff]  ;;  %v178_v14 = vld [vmem:[%s1062_s25 + $0x130] sm:$0xff] }
  0x18   : > { %175 = vst [vmem:[%s1067_s26 + $0x60] sm:$0xff] %v174_v12  ;;  %177 = vst [vmem:[%s1067_s26 + $0x68] sm:$0xff] %v176_v13  ;;  %v180_v15 = vld [vmem:[%s1062_s25 + $0x138] sm:$0xff]  ;;  %v182_v16 = vld [vmem:[%s1062_s25 + $0x200] sm:$0xff] }
  0x19   : > { %179 = vst [vmem:[%s1067_s26 + $0x70] sm:$0xff] %v178_v14  ;;  %v184_v17 = vld [vmem:[%s1062_s25 + $0x208] sm:$0xff]  ;;  %181 = vst [vmem:[%s1067_s26 + $0x78] sm:$0xff] %v180_v15  ;;  %v186_v18 = vld [vmem:[%s1062_s25 + $0x210] sm:$0xff] }
  0x1a   : > { %183 = vst [vmem:[%s1067_s26 + $0x80] sm:$0xff] %v182_v16  ;;  %185 = vst [vmem:[%s1067_s26 + $0x88] sm:$0xff] %v184_v17  ;;  %v188_v19 = vld [vmem:[%s1062_s25 + $0x218] sm:$0xff]  ;;  %v190_v20 = vld [vmem:[%s1062_s25 + $0x220] sm:$0xff] }
  0x1b   : > { %187 = vst [vmem:[%s1067_s26 + $0x90] sm:$0xff] %v186_v18  ;;  %189 = vst [vmem:[%s1067_s26 + $0x98] sm:$0xff] %v188_v19  ;;  %v192_v21 = vld [vmem:[%s1062_s25 + $0x228] sm:$0xff]  ;;  %v194_v22 = vld [vmem:[%s1062_s25 + $0x230] sm:$0xff] }
  0x1c   : > { %191 = vst [vmem:[%s1067_s26 + $0xa0] sm:$0xff] %v190_v20  ;;  %v196_v23 = vld [vmem:[%s1062_s25 + $0x238] sm:$0xff]  ;;  %193 = vst [vmem:[%s1067_s26 + $0xa8] sm:$0xff] %v192_v21  ;;  %v198_v24 = vld [vmem:[%s1062_s25 + $0x300] sm:$0xff] }
  0x1d   : > { %195 = vst [vmem:[%s1067_s26 + $0xb0] sm:$0xff] %v194_v22  ;;  %197 = vst [vmem:[%s1067_s26 + $0xb8] sm:$0xff] %v196_v23  ;;  %v200_v25 = vld [vmem:[%s1062_s25 + $0x308] sm:$0xff]  ;;  %v202_v26 = vld [vmem:[%s1062_s25 + $0x310] sm:$0xff] }
  0x1e   : > { %199 = vst [vmem:[%s1067_s26 + $0xc0] sm:$0xff] %v198_v24  ;;  %201 = vst [vmem:[%s1067_s26 + $0xc8] sm:$0xff] %v200_v25  ;;  %v204_v27 = vld [vmem:[%s1062_s25 + $0x318] sm:$0xff]  ;;  %v206_v28 = vld [vmem:[%s1062_s25 + $0x320] sm:$0xff] }
  0x1f   : > { %203 = vst [vmem:[%s1067_s26 + $0xd0] sm:$0xff] %v202_v26  ;;  %v208_v29 = vld [vmem:[%s1062_s25 + $0x328] sm:$0xff]  ;;  %205 = vst [vmem:[%s1067_s26 + $0xd8] sm:$0xff] %v204_v27  ;;  %v210_v30 = vld [vmem:[%s1062_s25 + $0x330] sm:$0xff] }
  0x20   : > { %207 = vst [vmem:[%s1067_s26 + $0xe0] sm:$0xff] %v206_v28  ;;  %209 = vst [vmem:[%s1067_s26 + $0xe8] sm:$0xff] %v208_v29  ;;  %v212_v31 = vld [vmem:[%s1062_s25 + $0x338] sm:$0xff] }
  0x21   : > { %211 = vst [vmem:[%s1067_s26 + $0xf0] sm:$0xff] %v210_v30  ;;  %213 = vst [vmem:[%s1067_s26 + $0xf8] sm:$0xff] %v212_v31 }
  0x22 PF: > { %p908_p5 = scmp.ge.s32.totalorder %s1004_s14, 1  ;;  %p218_p6 = scmp.lt.s32.totalorder %s1004_s14, 5 }
  0x24   : > { %p219_p7 = pnand %p908_p5, %p218_p6 }
  0x25   : > { %s225_s27 = sand.u32 (!%p219_p7), 1, %s996_s12   ;;  %vm443_vm0 = vcmask (!%p219_p7), 1043456   ;;  %v289_v32 = vld [vmem:[%s1254_s2] sm:$0xff] (!%p219_p7)  ;;  %vm444_vm1 = vcmask (!%p219_p7), 1044480   ;;  %v1006_v33 = vmov (!%p219_p7), 65535   ;;  %v1007_v35 = vmov (!%p219_p7), 0  }
  0x26   : > { %222 = sbr.rel (%p219_p7) target bundleno = 293 (0x125), region = 51  ;;  %s909_s30 = sshll.u32 (!%p219_p7), %s225_s27, 8  ;;  %v445_v34 = vsel (!%p219_p7), %vm443_vm0, 4294967295, %v1006_v33  ;;  %527 = vmatprep.mubr.bf16.mxu0 (!%p219_p7), %v1007_v35  ;;  %568 = vmatprep.mubr.bf16.mxu1 (!%p219_p7), %v1007_v35  ;;  %v1167_v5 = vld [vmem:[%s1252_s0] sm:$0xf] (!%p219_p7)  ;;  %vm439_vm2 = vcmask (!%p219_p7), 203776  }
  0x27   : > { %981 = vset.pattern.permute.xlu0 (!%p219_p7), %v1007_v35  ;;  %s1139_s4 = scalar_lea.vmem (!%p219_p7), [#allocation2], %s909_s30  ;;  %v1148_v44 = vsel (!%p219_p7), %vm444_vm1, %v445_v34, 0  ;;  %s910_s7 = sshll.u32 (!%p219_p7), %s901_s15, 4 }
  0x28   : > { %v257_v36 = vld [vmem:[%s1139_s4] sm:$0xff] (!%p219_p7)  ;;  %v258_v38 = vld [vmem:[%s1139_s4 + $0x8] sm:$0xff] (!%p219_p7)  ;;  %292 = vperm.xlu0 (!%p219_p7), %981, %v289_v32   ;;  %v259_v51 = vld [vmem:[%s1139_s4 + $0x10] sm:$0xff] (!%p219_p7)  ;;  %p250_p8 = scmp.lt.s32.totalorder (!%p219_p7), %s910_s7, 63 }
  0x29   : > { %v265_v37 = vld [vmem:[%s1139_s4 + $0x40] sm:$0xff] (!%p219_p7)  ;;  %v266_v40 = vld [vmem:[%s1139_s4 + $0x48] sm:$0xff] (!%p219_p7)  ;;  %v267_v54 = vld [vmem:[%s1139_s4 + $0x50] sm:$0xff] (!%p219_p7) }
  0x2a   : > { %v913_v39 = vcombine.high (!%p219_p7), %v257_v36, %v265_v37  ;;  %v912_v41 = vcombine.low (!%p219_p7), %v257_v36, %v265_v37  ;;  %v273_v42 = vld [vmem:[%s1139_s4 + $0x80] sm:$0xff] (!%p219_p7)  ;;  %v915_v45 = vcombine.high (!%p219_p7), %v258_v38, %v266_v40  ;;  %v914_v46 = vcombine.low (!%p219_p7), %v258_v38, %v266_v40  ;;  %v274_v48 = vld [vmem:[%s1139_s4 + $0x88] sm:$0xff] (!%p219_p7)  ;;  %v260_v55 = vld [vmem:[%s1139_s4 + $0x18] sm:$0xff] (!%p219_p7) }
  0x2b   : > { %v281_v43 = vld [vmem:[%s1139_s4 + $0xc0] sm:$0x11] (!%p219_p7)  ;;  %v282_v49 = vld [vmem:[%s1139_s4 + $0xc8] sm:$0x11] (!%p219_p7)  ;;  %v268_v56 = vld [vmem:[%s1139_s4 + $0x58] sm:$0xff] (!%p219_p7)  ;;  %v917_v0 = vcombine.high (!%p219_p7), %v259_v51, %v267_v54  ;;  %v916_v6 = vcombine.low (!%p219_p7), %v259_v51, %v267_v54 }
  0x2c   : > { %v929_v47 = vcombine.high (!%p219_p7), %v273_v42, %v281_v43  ;;  %v928_v50 = vcombine.low (!%p219_p7), %v273_v42, %v281_v43  ;;  %495 = vmatprep.subr.bf16.mxu0 (!%p219_p7), %v913_v39  ;;  %v931_v52 = vcombine.high (!%p219_p7), %v274_v48, %v282_v49  ;;  %v930_v53 = vcombine.low (!%p219_p7), %v274_v48, %v282_v49  ;;  %v275_v59 = vld [vmem:[%s1139_s4 + $0x90] sm:$0xff] (!%p219_p7)  ;;  %v276_v61 = vld [vmem:[%s1139_s4 + $0x98] sm:$0xff] (!%p219_p7)  ;;  %v261_v11 = vld [vmem:[%s1139_s4 + $0x20] sm:$0xff] (!%p219_p7) }
  0x2d   : > { %536 = vmatprep.subr.bf16.mxu1 %v915_v45  ;;  %496 = vmatpush1.bf16.msra.mxu0 %v912_v41  ;;  %v283_v60 = vld [vmem:[%s1139_s4 + $0xd0] sm:$0x11]  ;;  %v284_v1 = vld [vmem:[%s1139_s4 + $0xd8] sm:$0x11]  ;;  %v919_v2 = vcombine.high %v260_v55, %v268_v56  ;;  %v918_v8 = vcombine.low %v260_v55, %v268_v56  ;;  %v269_v12 = vld [vmem:[%s1139_s4 + $0x60] sm:$0xff]  ;;  %s1260_s7 = smov (!%p250_p8, %s910_s7), 63 }
  0x2e   : > { %v451_v57 = vand.u32 %v929_v47, %v1148_v44  ;;  %v448_v58 = vand.u32 %v928_v50, %v1148_v44  ;;  %537 = vmatpush1.bf16.msra.mxu1 %v914_v46  ;;  %v457_v62 = vand.u32 %v931_v52, %v1148_v44  ;;  %v454_v63 = vand.u32 %v930_v53, %v1148_v44  ;;  %v262_v14 = vld [vmem:[%s1139_s4 + $0x28] sm:$0xff]  ;;  %v277_v15 = vld [vmem:[%s1139_s4 + $0xa0] sm:$0xff]  ;;  %v263_v31 = vld [vmem:[%s1139_s4 + $0x30] sm:$0xff]  ;;  %s911_s8 = sshll.u32 %s1260_s7, 3 }
  0x2f   : > { %v933_v3 = vcombine.high %v275_v59, %v283_v60  ;;  %v935_v4 = vcombine.high %v276_v61, %v284_v1  ;;  %v932_v7 = vcombine.low %v275_v59, %v283_v60  ;;  %v934_v10 = vcombine.low %v276_v61, %v284_v1  ;;  %v285_v16 = vld [vmem:[%s1139_s4 + $0xe0] sm:$0x11]  ;;  %v270_v17 = vld [vmem:[%s1139_s4 + $0x68] sm:$0xff]  ;;  %v271_v32 = vld [vmem:[%s1139_s4 + $0x70] sm:$0xff]  ;;  %s1224_s11 = scalar_lea.vmem %s1255_s3, %s911_s8 }
  0x30   : > { %497 = vmatprep.subr.bf16.mxu0 %v451_v57  ;;  %538 = vmatprep.subr.bf16.mxu1 %v457_v62  ;;  %v278_v18 = vld [vmem:[%s1139_s4 + $0xa8] sm:$0xff]  ;;  %v921_v22 = vcombine.high %v261_v11, %v269_v12  ;;  %v937_v23 = vcombine.high %v277_v15, %v285_v16  ;;  %v923_v24 = vcombine.high %v262_v14, %v270_v17  ;;  %v264_v34 = vld [vmem:[%s1139_s4 + $0x38] sm:$0xff]  ;;  %v279_v36 = vld [vmem:[%s1139_s4 + $0xb0] sm:$0xff] }
  0x31   : > { %498 = vmatpush1.bf16.msra.mxu0 %v448_v58  ;;  %v463_v9 = vand.u32 %v933_v3, %v1148_v44  ;;  %v469_v13 = vand.u32 %v935_v4, %v1148_v44  ;;  %v286_v19 = vld [vmem:[%s1139_s4 + $0xe8] sm:$0x11]  ;;  %v460_v20 = vand.u32 %v932_v7, %v1148_v44  ;;  %v466_v21 = vand.u32 %v934_v10, %v1148_v44  ;;  %v287_v37 = vld [vmem:[%s1139_s4 + $0xf0] sm:$0x11]  ;;  %v272_v38 = vld [vmem:[%s1139_s4 + $0x78] sm:$0xff] }
  0x32   : > { %539 = vmatpush1.bf16.msra.mxu1 %v454_v63  ;;  %577 = vmatprep.subr.bf16.mxu0 %v917_v0  ;;  %v939_v25 = vcombine.high %v278_v18, %v286_v19  ;;  %v920_v26 = vcombine.low %v261_v11, %v269_v12  ;;  %v936_v27 = vcombine.low %v277_v15, %v285_v16  ;;  %v280_v39 = vld [vmem:[%s1139_s4 + $0xb8] sm:$0xff] }
  0x33   : > { %618 = vmatprep.subr.bf16.mxu1 %v919_v2  ;;  %v922_v28 = vcombine.low %v262_v14, %v270_v17  ;;  %v475_v29 = vand.u32 %v937_v23, %v1148_v44  ;;  %v938_v30 = vcombine.low %v278_v18, %v286_v19  ;;  %v288_v40 = vld [vmem:[%s1139_s4 + $0xf8] sm:$0x11]  ;;  %v925_v43 = vcombine.high %v263_v31, %v271_v32 }
  0x34   : > { %944 = vmatmul.mubr.msk.bf16.vlgmr.msra.gmra.mrb[0].mxu0 %vm439_vm2, %v1167_v5  ;;  %v481_v33 = vand.u32 %v939_v25, %v1148_v44  ;;  %v472_v41 = vand.u32 %v936_v27, %v1148_v44  ;;  %v941_v45 = vcombine.high %v279_v36, %v287_v37  ;;  %v927_v46 = vcombine.high %v264_v34, %v272_v38 }
  0x35   : > { %945 = vmatmul.mubr.msk.bf16.vlgmr.msra.gmra.mrb[0].mxu1 %vm439_vm2, %v1167_v5  ;;  %578 = vmatpush1.bf16.msra.mxu0 %v916_v6  ;;  %v478_v42 = vand.u32 %v938_v30, %v1148_v44  ;;  %v943_v47 = vcombine.high %v280_v39, %v288_v40  ;;  %v924_v48 = vcombine.low %v263_v31, %v271_v32 }
  0x36   : > { %619 = vmatpush1.bf16.msra.mxu1 %v918_v8  ;;  %579 = vmatprep.subr.bf16.mxu0 %v463_v9  ;;  %v940_v49 = vcombine.low %v279_v36, %v287_v37  ;;  %v926_v50 = vcombine.low %v264_v34, %v272_v38  ;;  %v487_v51 = vand.u32 %v941_v45, %v1148_v44 }
  0x37   : > { %620 = vmatprep.subr.bf16.mxu1 %v469_v13  ;;  %609 = vmatprep.mubr.bf16.mxu0 %v1007_v35  ;;  %v942_v52 = vcombine.low %v280_v39, %v288_v40  ;;  %v493_v53 = vand.u32 %v943_v47, %v1148_v44 }
  0x38   : > { %650 = vmatprep.mubr.bf16.mxu1 %v1007_v35  ;;  %v484_v54 = vand.u32 %v940_v49, %v1148_v44 }
  0x39   : > { %580 = vmatpush1.bf16.msra.mxu0 %v460_v20  ;;  %v490_v55 = vand.u32 %v942_v52, %v1148_v44 }
  0x3a   : > { %621 = vmatpush1.bf16.msra.mxu1 %v466_v21  ;;  %659 = vmatprep.subr.bf16.mxu0 %v921_v22 }
  0x3b   : > { %700 = vmatprep.subr.bf16.mxu1 %v923_v24 }
  0x3c   : > { %946 = vmatmul.mubr.msk.bf16.vlgmr.msra.gmra.mrb[4].mxu0 %vm439_vm2, %v1167_v5 }
  0x3d   : > { %947 = vmatmul.mubr.msk.bf16.vlgmr.msra.gmra.mrb[4].mxu1 %vm439_vm2, %v1167_v5  ;;  %660 = vmatpush1.bf16.msra.mxu0 %v920_v26 }
  0x3e   : > { %701 = vmatpush1.bf16.msra.mxu1 %v922_v28  ;;  %661 = vmatprep.subr.bf16.mxu0 %v475_v29 }
  0x3f   : > { %702 = vmatprep.subr.bf16.mxu1 %v481_v33  ;;  %691 = vmatprep.mubr.bf16.mxu0 %v1007_v35 }
  0x40   : > { %732 = vmatprep.mubr.bf16.mxu1 %v1007_v35 }
  0x41   : > { %662 = vmatpush1.bf16.msra.mxu0 %v472_v41 }
  0x42   : > { %703 = vmatpush1.bf16.msra.mxu1 %v478_v42  ;;  %741 = vmatprep.subr.bf16.mxu0 %v925_v43 }
  0x43   : > { %782 = vmatprep.subr.bf16.mxu1 %v927_v46 }
  0x44   : > { %948 = vmatmul.mubr.msk.bf16.vlgmr.msra.gmra.mrb[8].mxu0 %vm439_vm2, %v1167_v5 }
  0x45   : > { %949 = vmatmul.mubr.msk.bf16.vlgmr.msra.gmra.mrb[8].mxu1 %vm439_vm2, %v1167_v5  ;;  %742 = vmatpush1.bf16.msra.mxu0 %v924_v48 }
  0x46   : > { %783 = vmatpush1.bf16.msra.mxu1 %v926_v50  ;;  %743 = vmatprep.subr.bf16.mxu0 %v487_v51 }
  0x47   : > { %784 = vmatprep.subr.bf16.mxu1 %v493_v53  ;;  %773 = vmatprep.mubr.bf16.mxu0 %v1007_v35 }
  0x48   : > { %814 = vmatprep.mubr.bf16.mxu1 %v1007_v35 }
  0x49   : > { %744 = vmatpush1.bf16.msra.mxu0 %v484_v54 }
  0x4a   : > { %785 = vmatpush1.bf16.msra.mxu1 %v490_v55 }
  0x4c   : > { %950 = vmatmul.mubr.msk.bf16.vlgmr.msra.gmra.mrb[12].mxu0 %vm439_vm2, %v1167_v5 }
  0x4d   : > { %951 = vmatmul.mubr.msk.bf16.vlgmr.msra.gmra.mrb[12].mxu1 %vm439_vm2, %v1167_v5 }
  0xa7   : > { %v293_v56 = vpop.permute.xlu0 %292 }
 0x107   : > { %v529_v44 = vpop.f32.mrb[0].mxu0 }
 0x108   : > { %v570_v35 = vpop.f32.mrb[0].mxu1  ;;  %v530_v57 = vadd.f32 %v529_v44, %v293_v56  ;;  %v531_v58 = vpop.f32.mrb[1].mxu0 }
 0x109   : > { %v571_v59 = vadd.f32 %v570_v35, %v293_v56  ;;  %v532_v60 = vadd.f32 %v531_v58, %v293_v56  ;;  %v572_v61 = vpop.f32.mrb[1].mxu1  ;;  %v533_v62 = vpop.f32.mrb[2].mxu0 }
 0x10a   : > { %823 = vst [vmem:[%s1224_s11] sm:$0xff] %v530_v57  ;;  %v573_v63 = vadd.f32 %v572_v61, %v293_v56  ;;  %v574_v0 = vpop.f32.mrb[2].mxu1  ;;  %v534_v1 = vpop.f32.mrb[3].mxu0 }
 0x10b   : > { %825 = vst [vmem:[%s1224_s11 + $0x10] sm:$0xff] %v571_v59  ;;  %824 = vst [vmem:[%s1224_s11 + $0x8] sm:$0xff] %v532_v60  ;;  %v575_v2 = vpop.f32.mrb[3].mxu1 }
 0x10c   : > { %826 = vst [vmem:[%s1224_s11 + $0x18] sm:$0xff] %v573_v63 }
 0x10f   : > { %v611_v3 = vpop.f32.mrb[4].mxu0 }
 0x110   : > { %v612_v4 = vadd.f32 %v611_v3, %v293_v56  ;;  %v652_v5 = vpop.f32.mrb[4].mxu1  ;;  %v613_v6 = vpop.f32.mrb[5].mxu0 }
 0x111   : > { %v653_v7 = vadd.f32 %v652_v5, %v293_v56  ;;  %v614_v8 = vadd.f32 %v613_v6, %v293_v56  ;;  %v654_v9 = vpop.f32.mrb[5].mxu1  ;;  %v615_v10 = vpop.f32.mrb[6].mxu0 }
 0x112   : > { %827 = vst [vmem:[%s1224_s11 + $0x20] sm:$0xff] %v612_v4  ;;  %v655_v11 = vadd.f32 %v654_v9, %v293_v56  ;;  %v656_v12 = vpop.f32.mrb[6].mxu1  ;;  %v616_v13 = vpop.f32.mrb[7].mxu0 }
 0x113   : > { %829 = vst [vmem:[%s1224_s11 + $0x30] sm:$0xff] %v653_v7  ;;  %828 = vst [vmem:[%s1224_s11 + $0x28] sm:$0xff] %v614_v8  ;;  %v657_v14 = vpop.f32.mrb[7].mxu1 }
 0x114   : > { %830 = vst [vmem:[%s1224_s11 + $0x38] sm:$0xff] %v655_v11 }
 0x117   : > { %v693_v15 = vpop.f32.mrb[8].mxu0 }
 0x118   : > { %v694_v16 = vadd.f32 %v693_v15, %v293_v56  ;;  %v734_v17 = vpop.f32.mrb[8].mxu1  ;;  %v695_v18 = vpop.f32.mrb[9].mxu0 }
 0x119   : > { %v735_v19 = vadd.f32 %v734_v17, %v293_v56  ;;  %v696_v20 = vadd.f32 %v695_v18, %v293_v56  ;;  %v736_v21 = vpop.f32.mrb[9].mxu1  ;;  %v697_v22 = vpop.f32.mrb[10].mxu0 }
 0x11a   : > { %831 = vst [vmem:[%s1224_s11 + $0x40] sm:$0xff] %v694_v16  ;;  %v737_v23 = vadd.f32 %v736_v21, %v293_v56  ;;  %v738_v24 = vpop.f32.mrb[10].mxu1  ;;  %v698_v25 = vpop.f32.mrb[11].mxu0 }
 0x11b   : > { %833 = vst [vmem:[%s1224_s11 + $0x50] sm:$0xff] %v735_v19  ;;  %832 = vst [vmem:[%s1224_s11 + $0x48] sm:$0xff] %v696_v20  ;;  %v739_v26 = vpop.f32.mrb[11].mxu1 }
 0x11c   : > { %834 = vst [vmem:[%s1224_s11 + $0x58] sm:$0xff] %v737_v23 }
 0x11f   : > { %v775_v27 = vpop.f32.mrb[12].mxu0 }
 0x120   : > { %v776_v28 = vadd.f32 %v775_v27, %v293_v56  ;;  %v816_v29 = vpop.f32.mrb[12].mxu1  ;;  %v777_v30 = vpop.f32.mrb[13].mxu0 }
 0x121   : > { %v817_v31 = vadd.f32 %v816_v29, %v293_v56  ;;  %v778_v32 = vadd.f32 %v777_v30, %v293_v56  ;;  %v818_v33 = vpop.f32.mrb[13].mxu1  ;;  %v779_v34 = vpop.f32.mrb[14].mxu0 }
 0x122   : > { %835 = vst [vmem:[%s1224_s11 + $0x60] sm:$0xff] %v776_v28  ;;  %v819_v36 = vadd.f32 %v818_v33, %v293_v56  ;;  %v820_v37 = vpop.f32.mrb[14].mxu1  ;;  %v780_v38 = vpop.f32.mrb[15].mxu0 }
 0x123   : > { %837 = vst [vmem:[%s1224_s11 + $0x70] sm:$0xff] %v817_v31  ;;  %836 = vst [vmem:[%s1224_s11 + $0x68] sm:$0xff] %v778_v32  ;;  %v821_v39 = vpop.f32.mrb[15].mxu1 }
 0x124   : > { %838 = vst [vmem:[%s1224_s11 + $0x78] sm:$0xff] %v819_v36 }
 0x125 PF: > { %p10_p9 = scmp.ge.s32.totalorder %s1045_s16, 6   ;;  %s1256_s12 = smov %s1000_s13 }
 0x126   : > { %s1257_s13 = smov %s1054_s19  ;;  %s1258_s14 = smov %s1045_s16 }
 0x127   :  { %12 = sbr.rel (!%p10_p9) target bundleno = 2 (0x2), region = 90 }

// kernel: _lambda_.8
= control target key start
LH: loop header
LB: loop body
LE: loop exit
PB: predicated region body
PF: predicated region fallthrough
CT: control target
= control target key end

     0   :  { %s1392_s9 = smov 0   ;;  %s1394_s10 = smov 0   ;;  %s1729_s0 = inlined_call_operand.vmem [shape: bf16[8,72], index: 0, kind: input, shape index: {}]   ;;  %s1730_s1 = inlined_call_operand.vmem [shape: bf16[72,8192], index: 1, kind: input, shape index: {}]   ;;  %s1731_s2 = inlined_call_operand.vmem [shape: f32[8,8192], index: 2, kind: output, shape index: {}]  }
   0x1   :  { %s1396_s11 = smov 0  }
   0x2 LB: > { %s1201_s12 = sadd.s32 4294967295, %s1374_s11   ;;  %s1409_s13 = sadd.s32 1, %s1374_s11   ;;  %s1374_s11 = sphi %s1396_s11, %s1734_s11   ;;  %s1370_s10 = sphi %s1394_s10, %s1733_s10   ;;  %s1366_s9 = sphi %s1392_s9, %s1732_s9  }
   0x3   : > { %s37_s14 = ssub.s32 %s1374_s11, %s1409_s13  ;;  %s40_s15 = sadd.s32 1, %s1370_s10 }
   0x4   : > { %p38_p0 = scmp.eq.s32.totalorder %s37_s14, 0  ;;  %p47_p1 = scmp.ne.s32.totalorder %s1370_s10, %s1366_s9 }
   0x5   : > { %p48_p2 = scmp.eq.s32.totalorder %s1374_s11, 0  ;;  %p1204_p4 = scmp.ge.s32.totalorder %s1374_s11, 4 }
   0x6   : > { %s1418_s16 = scalar_select %p38_p0, %s1370_s10, %s40_s15  }
   0x7   : > { %p49_p3 = por %p48_p2, %p47_p1  ;;  %102 = sbr.rel (%p1204_p4) target bundleno = 55 (0x37), region = 20 }
   0xe   : > { %105 = sbr.rel (!%p49_p3) target bundleno = 55 (0x37), region = 24  ;;  %s107_s17 = sand.u32 (%p49_p3), 1, %s1370_s10  }
   0xf   : > { %s1308_s18 = sshll.u32 (%p49_p3), %s1374_s11, 6  ;;  %s1309_s19 = smul.u32 (%p49_p3), 576, %s107_s17 }
  0x10   : > { %s1426_s22 = scalar_lea.vmem (%p49_p3), %s1730_s1, %s1308_s18 }
  0x11   : > { %v125_v0 = vld [vmem:[%s1426_s22] sm:$0xff] (%p49_p3)  ;;  %v127_v1 = vld [vmem:[%s1426_s22 + $0x8] sm:$0xff] (%p49_p3)  ;;  %v129_v2 = vld [vmem:[%s1426_s22 + $0x10] sm:$0xff] (%p49_p3)  ;;  %s1434_s23 = scalar_lea.vmem (%p49_p3), [#allocation2], %s1309_s19 }
  0x12   : > { %v131_v3 = vld [vmem:[%s1426_s22 + $0x18] sm:$0xff] (%p49_p3)  ;;  %v133_v4 = vld [vmem:[%s1426_s22 + $0x20] sm:$0xff] (%p49_p3)  ;;  %v135_v5 = vld [vmem:[%s1426_s22 + $0x28] sm:$0xff] (%p49_p3)  ;;  %126 = vst [vmem:[%s1434_s23] sm:$0xff] (%p49_p3), %v125_v0 }
  0x13   : > { %128 = vst [vmem:[%s1434_s23 + $0x8] sm:$0xff] (%p49_p3), %v127_v1  ;;  %130 = vst [vmem:[%s1434_s23 + $0x10] sm:$0xff] (%p49_p3), %v129_v2  ;;  %v137_v6 = vld [vmem:[%s1426_s22 + $0x30] sm:$0xff] (%p49_p3)  ;;  %v139_v7 = vld [vmem:[%s1426_s22 + $0x38] sm:$0xff] (%p49_p3) }
  0x14   : > { %132 = vst [vmem:[%s1434_s23 + $0x18] sm:$0xff] (%p49_p3), %v131_v3  ;;  %134 = vst [vmem:[%s1434_s23 + $0x20] sm:$0xff] (%p49_p3), %v133_v4  ;;  %v141_v8 = vld [vmem:[%s1426_s22 + $0x100] sm:$0xff] (%p49_p3)  ;;  %v143_v9 = vld [vmem:[%s1426_s22 + $0x108] sm:$0xff] (%p49_p3) }
  0x15   : > { %136 = vst [vmem:[%s1434_s23 + $0x28] sm:$0xff] %v135_v5  ;;  %138 = vst [vmem:[%s1434_s23 + $0x30] sm:$0xff] %v137_v6  ;;  %v145_v10 = vld [vmem:[%s1426_s22 + $0x110] sm:$0xff]  ;;  %v147_v11 = vld [vmem:[%s1426_s22 + $0x118] sm:$0xff] }
  0x16   : > { %140 = vst [vmem:[%s1434_s23 + $0x38] sm:$0xff] %v139_v7  ;;  %142 = vst [vmem:[%s1434_s23 + $0x40] sm:$0xff] %v141_v8  ;;  %v149_v12 = vld [vmem:[%s1426_s22 + $0x120] sm:$0xff]  ;;  %v151_v13 = vld [vmem:[%s1426_s22 + $0x128] sm:$0xff] }
  0x17   : > { %144 = vst [vmem:[%s1434_s23 + $0x48] sm:$0xff] %v143_v9  ;;  %146 = vst [vmem:[%s1434_s23 + $0x50] sm:$0xff] %v145_v10  ;;  %v153_v14 = vld [vmem:[%s1426_s22 + $0x130] sm:$0xff]  ;;  %v155_v15 = vld [vmem:[%s1426_s22 + $0x138] sm:$0xff] }
  0x18   : > { %148 = vst [vmem:[%s1434_s23 + $0x58] sm:$0xff] %v147_v11  ;;  %150 = vst [vmem:[%s1434_s23 + $0x60] sm:$0xff] %v149_v12  ;;  %v157_v16 = vld [vmem:[%s1426_s22 + $0x200] sm:$0xff]  ;;  %v159_v17 = vld [vmem:[%s1426_s22 + $0x208] sm:$0xff] }
  0x19   : > { %152 = vst [vmem:[%s1434_s23 + $0x68] sm:$0xff] %v151_v13  ;;  %154 = vst [vmem:[%s1434_s23 + $0x70] sm:$0xff] %v153_v14  ;;  %v161_v18 = vld [vmem:[%s1426_s22 + $0x210] sm:$0xff]  ;;  %v163_v19 = vld [vmem:[%s1426_s22 + $0x218] sm:$0xff] }
  0x1a   : > { %156 = vst [vmem:[%s1434_s23 + $0x78] sm:$0xff] %v155_v15  ;;  %158 = vst [vmem:[%s1434_s23 + $0x80] sm:$0xff] %v157_v16  ;;  %v165_v20 = vld [vmem:[%s1426_s22 + $0x220] sm:$0xff]  ;;  %v167_v21 = vld [vmem:[%s1426_s22 + $0x228] sm:$0xff] }
  0x1b   : > { %160 = vst [vmem:[%s1434_s23 + $0x88] sm:$0xff] %v159_v17  ;;  %162 = vst [vmem:[%s1434_s23 + $0x90] sm:$0xff] %v161_v18  ;;  %v169_v22 = vld [vmem:[%s1426_s22 + $0x230] sm:$0xff]  ;;  %v171_v23 = vld [vmem:[%s1426_s22 + $0x238] sm:$0xff] }
  0x1c   : > { %164 = vst [vmem:[%s1434_s23 + $0x98] sm:$0xff] %v163_v19  ;;  %166 = vst [vmem:[%s1434_s23 + $0xa0] sm:$0xff] %v165_v20  ;;  %v173_v24 = vld [vmem:[%s1426_s22 + $0x300] sm:$0xff]  ;;  %v175_v25 = vld [vmem:[%s1426_s22 + $0x308] sm:$0xff] }
  0x1d   : > { %168 = vst [vmem:[%s1434_s23 + $0xa8] sm:$0xff] %v167_v21  ;;  %170 = vst [vmem:[%s1434_s23 + $0xb0] sm:$0xff] %v169_v22  ;;  %v177_v26 = vld [vmem:[%s1426_s22 + $0x310] sm:$0xff]  ;;  %v179_v27 = vld [vmem:[%s1426_s22 + $0x318] sm:$0xff] }
  0x1e   : > { %172 = vst [vmem:[%s1434_s23 + $0xb8] sm:$0xff] %v171_v23  ;;  %174 = vst [vmem:[%s1434_s23 + $0xc0] sm:$0xff] %v173_v24  ;;  %v181_v28 = vld [vmem:[%s1426_s22 + $0x320] sm:$0xff]  ;;  %v183_v29 = vld [vmem:[%s1426_s22 + $0x328] sm:$0xff] }
  0x1f   : > { %176 = vst [vmem:[%s1434_s23 + $0xc8] sm:$0xff] %v175_v25  ;;  %178 = vst [vmem:[%s1434_s23 + $0xd0] sm:$0xff] %v177_v26  ;;  %v185_v30 = vld [vmem:[%s1426_s22 + $0x330] sm:$0xff]  ;;  %v187_v31 = vld [vmem:[%s1426_s22 + $0x338] sm:$0xff] }
  0x20   : > { %180 = vst [vmem:[%s1434_s23 + $0xd8] sm:$0xff] %v179_v27  ;;  %182 = vst [vmem:[%s1434_s23 + $0xe0] sm:$0xff] %v181_v28  ;;  %v189_v32 = vld [vmem:[%s1426_s22 + $0x400] sm:$0xff]  ;;  %v191_v33 = vld [vmem:[%s1426_s22 + $0x408] sm:$0xff] }
  0x21   : > { %184 = vst [vmem:[%s1434_s23 + $0xe8] sm:$0xff] %v183_v29  ;;  %186 = vst [vmem:[%s1434_s23 + $0xf0] sm:$0xff] %v185_v30  ;;  %v193_v34 = vld [vmem:[%s1426_s22 + $0x410] sm:$0xff]  ;;  %v195_v35 = vld [vmem:[%s1426_s22 + $0x418] sm:$0xff] }
  0x22   : > { %188 = vst [vmem:[%s1434_s23 + $0xf8] sm:$0xff] %v187_v31  ;;  %190 = vst [vmem:[%s1434_s23 + $0x100] sm:$0xff] %v189_v32  ;;  %v197_v36 = vld [vmem:[%s1426_s22 + $0x420] sm:$0xff]  ;;  %v199_v37 = vld [vmem:[%s1426_s22 + $0x428] sm:$0xff] }
  0x23   : > { %192 = vst [vmem:[%s1434_s23 + $0x108] sm:$0xff] %v191_v33  ;;  %194 = vst [vmem:[%s1434_s23 + $0x110] sm:$0xff] %v193_v34  ;;  %v201_v38 = vld [vmem:[%s1426_s22 + $0x430] sm:$0xff]  ;;  %v203_v39 = vld [vmem:[%s1426_s22 + $0x438] sm:$0xff] }
  0x24   : > { %196 = vst [vmem:[%s1434_s23 + $0x118] sm:$0xff] %v195_v35  ;;  %198 = vst [vmem:[%s1434_s23 + $0x120] sm:$0xff] %v197_v36  ;;  %v205_v40 = vld [vmem:[%s1426_s22 + $0x500] sm:$0xff]  ;;  %v207_v41 = vld [vmem:[%s1426_s22 + $0x508] sm:$0xff] }
  0x25   : > { %200 = vst [vmem:[%s1434_s23 + $0x128] sm:$0xff] %v199_v37  ;;  %202 = vst [vmem:[%s1434_s23 + $0x130] sm:$0xff] %v201_v38  ;;  %v209_v42 = vld [vmem:[%s1426_s22 + $0x510] sm:$0xff]  ;;  %v211_v43 = vld [vmem:[%s1426_s22 + $0x518] sm:$0xff] }
  0x26   : > { %204 = vst [vmem:[%s1434_s23 + $0x138] sm:$0xff] %v203_v39  ;;  %206 = vst [vmem:[%s1434_s23 + $0x140] sm:$0xff] %v205_v40  ;;  %v213_v44 = vld [vmem:[%s1426_s22 + $0x520] sm:$0xff]  ;;  %v215_v45 = vld [vmem:[%s1426_s22 + $0x528] sm:$0xff] }
  0x27   : > { %208 = vst [vmem:[%s1434_s23 + $0x148] sm:$0xff] %v207_v41  ;;  %210 = vst [vmem:[%s1434_s23 + $0x150] sm:$0xff] %v209_v42  ;;  %v217_v46 = vld [vmem:[%s1426_s22 + $0x530] sm:$0xff]  ;;  %v219_v47 = vld [vmem:[%s1426_s22 + $0x538] sm:$0xff] }
  0x28   : > { %212 = vst [vmem:[%s1434_s23 + $0x158] sm:$0xff] %v211_v43  ;;  %214 = vst [vmem:[%s1434_s23 + $0x160] sm:$0xff] %v213_v44  ;;  %v221_v48 = vld [vmem:[%s1426_s22 + $0x600] sm:$0xff]  ;;  %v223_v49 = vld [vmem:[%s1426_s22 + $0x608] sm:$0xff] }
  0x29   : > { %216 = vst [vmem:[%s1434_s23 + $0x168] sm:$0xff] %v215_v45  ;;  %218 = vst [vmem:[%s1434_s23 + $0x170] sm:$0xff] %v217_v46  ;;  %v225_v50 = vld [vmem:[%s1426_s22 + $0x610] sm:$0xff]  ;;  %v227_v51 = vld [vmem:[%s1426_s22 + $0x618] sm:$0xff] }
  0x2a   : > { %220 = vst [vmem:[%s1434_s23 + $0x178] sm:$0xff] %v219_v47  ;;  %222 = vst [vmem:[%s1434_s23 + $0x180] sm:$0xff] %v221_v48  ;;  %v229_v52 = vld [vmem:[%s1426_s22 + $0x620] sm:$0xff]  ;;  %v231_v53 = vld [vmem:[%s1426_s22 + $0x628] sm:$0xff] }
  0x2b   : > { %224 = vst [vmem:[%s1434_s23 + $0x188] sm:$0xff] %v223_v49  ;;  %226 = vst [vmem:[%s1434_s23 + $0x190] sm:$0xff] %v225_v50  ;;  %v233_v54 = vld [vmem:[%s1426_s22 + $0x630] sm:$0xff]  ;;  %v235_v55 = vld [vmem:[%s1426_s22 + $0x638] sm:$0xff] }
  0x2c   : > { %228 = vst [vmem:[%s1434_s23 + $0x198] sm:$0xff] %v227_v51  ;;  %230 = vst [vmem:[%s1434_s23 + $0x1a0] sm:$0xff] %v229_v52  ;;  %v237_v56 = vld [vmem:[%s1426_s22 + $0x700] sm:$0xff]  ;;  %v239_v57 = vld [vmem:[%s1426_s22 + $0x708] sm:$0xff] }
  0x2d   : > { %232 = vst [vmem:[%s1434_s23 + $0x1a8] sm:$0xff] %v231_v53  ;;  %234 = vst [vmem:[%s1434_s23 + $0x1b0] sm:$0xff] %v233_v54  ;;  %v241_v58 = vld [vmem:[%s1426_s22 + $0x710] sm:$0xff]  ;;  %v243_v59 = vld [vmem:[%s1426_s22 + $0x718] sm:$0xff] }
  0x2e   : > { %236 = vst [vmem:[%s1434_s23 + $0x1b8] sm:$0xff] %v235_v55  ;;  %238 = vst [vmem:[%s1434_s23 + $0x1c0] sm:$0xff] %v237_v56  ;;  %v245_v60 = vld [vmem:[%s1426_s22 + $0x720] sm:$0xff]  ;;  %v247_v61 = vld [vmem:[%s1426_s22 + $0x728] sm:$0xff] }
  0x2f   : > { %240 = vst [vmem:[%s1434_s23 + $0x1c8] sm:$0xff] %v239_v57  ;;  %242 = vst [vmem:[%s1434_s23 + $0x1d0] sm:$0xff] %v241_v58  ;;  %v249_v62 = vld [vmem:[%s1426_s22 + $0x730] sm:$0xff]  ;;  %v251_v63 = vld [vmem:[%s1426_s22 + $0x738] sm:$0xff] }
  0x30   : > { %244 = vst [vmem:[%s1434_s23 + $0x1d8] sm:$0xff] %v243_v59  ;;  %246 = vst [vmem:[%s1434_s23 + $0x1e0] sm:$0xff] %v245_v60  ;;  %v253_v0 = vld [vmem:[%s1426_s22 + $0x800] sm:$0xff]  ;;  %v255_v1 = vld [vmem:[%s1426_s22 + $0x808] sm:$0xff] }
  0x31   : > { %248 = vst [vmem:[%s1434_s23 + $0x1e8] sm:$0xff] %v247_v61  ;;  %250 = vst [vmem:[%s1434_s23 + $0x1f0] sm:$0xff] %v249_v62  ;;  %v257_v2 = vld [vmem:[%s1426_s22 + $0x810] sm:$0xff]  ;;  %v259_v3 = vld [vmem:[%s1426_s22 + $0x818] sm:$0xff] }
  0x32   : > { %252 = vst [vmem:[%s1434_s23 + $0x1f8] sm:$0xff] %v251_v63  ;;  %254 = vst [vmem:[%s1434_s23 + $0x200] sm:$0xff] %v253_v0  ;;  %v261_v4 = vld [vmem:[%s1426_s22 + $0x820] sm:$0xff]  ;;  %v263_v5 = vld [vmem:[%s1426_s22 + $0x828] sm:$0xff] }
  0x33   : > { %256 = vst [vmem:[%s1434_s23 + $0x208] sm:$0xff] %v255_v1  ;;  %258 = vst [vmem:[%s1434_s23 + $0x210] sm:$0xff] %v257_v2  ;;  %v265_v6 = vld [vmem:[%s1426_s22 + $0x830] sm:$0xff]  ;;  %v267_v7 = vld [vmem:[%s1426_s22 + $0x838] sm:$0xff] }
  0x34   : > { %260 = vst [vmem:[%s1434_s23 + $0x218] sm:$0xff] %v259_v3  ;;  %262 = vst [vmem:[%s1434_s23 + $0x220] sm:$0xff] %v261_v4 }
  0x35   : > { %264 = vst [vmem:[%s1434_s23 + $0x228] sm:$0xff] %v263_v5  ;;  %266 = vst [vmem:[%s1434_s23 + $0x230] sm:$0xff] %v265_v6 }
  0x36   : > { %268 = vst [vmem:[%s1434_s23 + $0x238] sm:$0xff] %v267_v7 }
  0x37 PF: > { %p1207_p5 = scmp.ge.s32.totalorder %s1374_s11, 1  ;;  %p273_p6 = scmp.lt.s32.totalorder %s1374_s11, 5 }
  0x39   : > { %p274_p7 = pnand %p1207_p5, %p273_p6 }
  0x3a   : > { %s280_s24 = sand.u32 (!%p274_p7), 1, %s1366_s9   ;;  %v1376_v8 = vmov (!%p274_p7), 0   ;;  %vm746_vm0 = vcmask (!%p274_p7), 1043456   ;;  %v1614_v59 = vld [vmem:[%s1729_s0] sm:$0xf] (!%p274_p7)  ;;  %vm742_vm1 = vcmask (!%p274_p7), 588800  }
  0x3b   : > { %277 = sbr.rel (%p274_p7) target bundleno = 362 (0x16a), region = 47  ;;  %827 = vmatprep.mubr.bf16.mxu0 (!%p274_p7), %v1376_v8  ;;  %868 = vmatprep.mubr.bf16.mxu1 (!%p274_p7), %v1376_v8  ;;  %s1208_s29 = sshll.u32 (!%p274_p7), %s1201_s12, 4 }
  0x3c   : > { %s1310_s25 = smul.u32 (!%p274_p7), 576, %s280_s24  ;;  %p303_p8 = scmp.lt.s32.totalorder (!%p274_p7), %s1208_s29, 63 }
  0x3e   : > { %s1579_s26 = scalar_lea.vmem (!%p274_p7), [#allocation2], %s1310_s25 }
  0x3f   : > { %v310_v9 = vld [vmem:[%s1579_s26] sm:$0xff] (!%p274_p7)  ;;  %v311_v11 = vld [vmem:[%s1579_s26 + $0x8] sm:$0xff] (!%p274_p7)  ;;  %v312_v47 = vld [vmem:[%s1579_s26 + $0x10] sm:$0xff] (!%p274_p7) }
  0x40   : > { %v318_v10 = vld [vmem:[%s1579_s26 + $0x40] sm:$0xff] (!%p274_p7)  ;;  %v319_v13 = vld [vmem:[%s1579_s26 + $0x48] sm:$0xff] (!%p274_p7)  ;;  %v320_v48 = vld [vmem:[%s1579_s26 + $0x50] sm:$0xff] (!%p274_p7) }
  0x41   : > { %v1211_v12 = vcombine.high (!%p274_p7), %v310_v9, %v318_v10  ;;  %v1210_v14 = vcombine.low (!%p274_p7), %v310_v9, %v318_v10  ;;  %v326_v15 = vld [vmem:[%s1579_s26 + $0x80] sm:$0xff] (!%p274_p7)  ;;  %v1213_v17 = vcombine.high (!%p274_p7), %v311_v11, %v319_v13  ;;  %v1212_v18 = vcombine.low (!%p274_p7), %v311_v11, %v319_v13  ;;  %v327_v20 = vld [vmem:[%s1579_s26 + $0x88] sm:$0xff] (!%p274_p7)  ;;  %v313_v49 = vld [vmem:[%s1579_s26 + $0x18] sm:$0xff] (!%p274_p7) }
  0x42   : > { %v334_v16 = vld [vmem:[%s1579_s26 + $0xc0] sm:$0xff]  ;;  %v335_v21 = vld [vmem:[%s1579_s26 + $0xc8] sm:$0xff]  ;;  %v321_v50 = vld [vmem:[%s1579_s26 + $0x58] sm:$0xff]  ;;  %v1215_v52 = vcombine.high %v312_v47, %v320_v48  ;;  %v1214_v60 = vcombine.low %v312_v47, %v320_v48  ;;  %s1736_s29 = smov (!%p303_p8, %s1208_s29), 63 }
  0x43   : > { %v1227_v19 = vcombine.high %v326_v15, %v334_v16  ;;  %v342_v22 = vld [vmem:[%s1579_s26 + $0x100] sm:$0xff]  ;;  %795 = vmatprep.subr.bf16.mxu0 %v1211_v12  ;;  %v1229_v23 = vcombine.high %v327_v20, %v335_v21  ;;  %v343_v25 = vld [vmem:[%s1579_s26 + $0x108] sm:$0xff]  ;;  %836 = vmatprep.subr.bf16.mxu1 %v1213_v17  ;;  %v1226_v27 = vcombine.low %v326_v15, %v334_v16  ;;  %v328_v55 = vld [vmem:[%s1579_s26 + $0x90] sm:$0xff]  ;;  %s1209_s30 = sshll.u32 %s1736_s29, 3 }
  0x44   : > { %v350_v24 = vld [vmem:[%s1579_s26 + $0x140] sm:$0xff]  ;;  %v351_v26 = vld [vmem:[%s1579_s26 + $0x148] sm:$0xff]  ;;  %796 = vmatpush1.bf16.msra.mxu0 %v1210_v14  ;;  %837 = vmatpush1.bf16.msra.mxu1 %v1212_v18  ;;  %v1228_v28 = vcombine.low %v327_v20, %v335_v21  ;;  %v1217_v54 = vcombine.high %v313_v49, %v321_v50  ;;  %v336_v56 = vld [vmem:[%s1579_s26 + $0xd0] sm:$0xff]  ;;  %v1216_v61 = vcombine.low %v313_v49, %v321_v50  ;;  %s1701_s5 = scalar_lea.vmem %s1731_s2, %s1209_s30 }
  0x45   : > { %797 = vmatprep.subr.bf16.mxu0 %v1227_v19  ;;  %v1243_v29 = vcombine.high %v342_v22, %v350_v24  ;;  %838 = vmatprep.subr.bf16.mxu1 %v1229_v23  ;;  %v1245_v30 = vcombine.high %v343_v25, %v351_v26  ;;  %v358_v31 = vld [vmem:[%s1579_s26 + $0x180] sm:$0xff]  ;;  %v359_v33 = vld [vmem:[%s1579_s26 + $0x188] sm:$0xff]  ;;  %v1242_v35 = vcombine.low %v342_v22, %v350_v24  ;;  %v329_v57 = vld [vmem:[%s1579_s26 + $0x98] sm:$0xff] }
  0x46   : > { %v366_v32 = vld [vmem:[%s1579_s26 + $0x1c0] sm:$0xff]  ;;  %v367_v34 = vld [vmem:[%s1579_s26 + $0x1c8] sm:$0xff]  ;;  %v1244_v36 = vcombine.low %v343_v25, %v351_v26  ;;  %v337_v58 = vld [vmem:[%s1579_s26 + $0xd8] sm:$0xff]  ;;  %v1231_v62 = vcombine.high %v328_v55, %v336_v56  ;;  %v1230_v4 = vcombine.low %v328_v55, %v336_v56 }
  0x47   : > { %v1259_v37 = vcombine.high %v358_v31, %v366_v32  ;;  %v1261_v38 = vcombine.high %v359_v33, %v367_v34  ;;  %v374_v39 = vld [vmem:[%s1579_s26 + $0x200] sm:$0xff]  ;;  %v375_v40 = vld [vmem:[%s1579_s26 + $0x208] sm:$0xff]  ;;  %v1258_v41 = vcombine.low %v358_v31, %v366_v32  ;;  %v1260_v42 = vcombine.low %v359_v33, %v367_v34  ;;  %v344_v0 = vld [vmem:[%s1579_s26 + $0x110] sm:$0xff] }
  0x48   : > { %798 = vmatpush1.bf16.msra.mxu0 %v1226_v27  ;;  %839 = vmatpush1.bf16.msra.mxu1 %v1228_v28  ;;  %v1275_v43 = vcombine.high %v374_v39, %v374_v39  ;;  %v1274_v44 = vcombine.low %v374_v39, %v374_v39  ;;  %v1277_v45 = vcombine.high %v375_v40, %v375_v40  ;;  %v352_v1 = vld [vmem:[%s1579_s26 + $0x150] sm:$0xff]  ;;  %v345_v2 = vld [vmem:[%s1579_s26 + $0x118] sm:$0xff]  ;;  %v314_v25 = vld [vmem:[%s1579_s26 + $0x20] sm:$0xff] }
  0x49   : > { %799 = vmatprep.subr.bf16.mxu0 %v1243_v29  ;;  %840 = vmatprep.subr.bf16.mxu1 %v1245_v30  ;;  %v1276_v46 = vcombine.low %v375_v40, %v375_v40  ;;  %v1233_v63 = vcombine.high %v329_v57, %v337_v58  ;;  %v353_v3 = vld [vmem:[%s1579_s26 + $0x158] sm:$0xff]  ;;  %v1232_v5 = vcombine.low %v329_v57, %v337_v58  ;;  %v360_v9 = vld [vmem:[%s1579_s26 + $0x190] sm:$0xff]  ;;  %v322_v26 = vld [vmem:[%s1579_s26 + $0x60] sm:$0xff] }
  0x4a   : > { %v748_v51 = vsel %vm746_vm0, %v1274_v44, 0  ;;  %v1247_v6 = vcombine.high %v344_v0, %v352_v1  ;;  %v1249_v7 = vcombine.high %v345_v2, %v353_v3  ;;  %v368_v10 = vld [vmem:[%s1579_s26 + $0x1d0] sm:$0xff]  ;;  %v361_v11 = vld [vmem:[%s1579_s26 + $0x198] sm:$0xff]  ;;  %v1246_v13 = vcombine.low %v344_v0, %v352_v1  ;;  %v315_v27 = vld [vmem:[%s1579_s26 + $0x28] sm:$0xff] }
  0x4b   : > { %v754_v53 = vsel %vm746_vm0, %v1276_v46, 0  ;;  %v369_v12 = vld [vmem:[%s1579_s26 + $0x1d8] sm:$0xff]  ;;  %v1248_v14 = vcombine.low %v345_v2, %v353_v3  ;;  %v1263_v15 = vcombine.high %v360_v9, %v368_v10  ;;  %v376_v17 = vld [vmem:[%s1579_s26 + $0x210] sm:$0xff]  ;;  %v1262_v19 = vcombine.low %v360_v9, %v368_v10  ;;  %v323_v28 = vld [vmem:[%s1579_s26 + $0x68] sm:$0xff] }
  0x4c   : > { %800 = vmatpush1.bf16.msra.mxu0 %v1242_v35  ;;  %841 = vmatpush1.bf16.msra.mxu1 %v1244_v36  ;;  %v1265_v16 = vcombine.high %v361_v11, %v369_v12  ;;  %v377_v18 = vld [vmem:[%s1579_s26 + $0x218] sm:$0xff]  ;;  %v1264_v20 = vcombine.low %v361_v11, %v369_v12  ;;  %v1279_v21 = vcombine.high %v376_v17, %v376_v17  ;;  %v330_v33 = vld [vmem:[%s1579_s26 + $0xa0] sm:$0xff]  ;;  %v331_v35 = vld [vmem:[%s1579_s26 + $0xa8] sm:$0xff] }
  0x4d   : > { %801 = vmatprep.subr.bf16.mxu0 %v1259_v37  ;;  %842 = vmatprep.subr.bf16.mxu1 %v1261_v38  ;;  %v1278_v22 = vcombine.low %v376_v17, %v376_v17  ;;  %v1281_v23 = vcombine.high %v377_v18, %v377_v18  ;;  %v1280_v24 = vcombine.low %v377_v18, %v377_v18  ;;  %v338_v34 = vld [vmem:[%s1579_s26 + $0xe0] sm:$0xff]  ;;  %v339_v36 = vld [vmem:[%s1579_s26 + $0xe8] sm:$0xff]  ;;  %v316_v2 = vld [vmem:[%s1579_s26 + $0x30] sm:$0xff] }
  0x4e   : > { %v1219_v30 = vcombine.high %v314_v25, %v322_v26  ;;  %v1221_v32 = vcombine.high %v315_v27, %v323_v28  ;;  %v1218_v37 = vcombine.low %v314_v25, %v322_v26  ;;  %v1220_v38 = vcombine.low %v315_v27, %v323_v28  ;;  %v355_v44 = vld [vmem:[%s1579_s26 + $0x168] sm:$0xff]  ;;  %v362_v49 = vld [vmem:[%s1579_s26 + $0x1a0] sm:$0xff]  ;;  %v324_v3 = vld [vmem:[%s1579_s26 + $0x70] sm:$0xff] }
  0x4f   : > { %v760_v29 = vsel %vm746_vm0, %v1278_v22, 0  ;;  %v766_v31 = vsel %vm746_vm0, %v1280_v24, 0  ;;  %v1235_v39 = vcombine.high %v330_v33, %v338_v34  ;;  %v1237_v40 = vcombine.high %v331_v35, %v339_v36  ;;  %v370_v50 = vld [vmem:[%s1579_s26 + $0x1e0] sm:$0xff]  ;;  %v379_v58 = vld [vmem:[%s1579_s26 + $0x228] sm:$0xff]  ;;  %v332_v11 = vld [vmem:[%s1579_s26 + $0xb0] sm:$0xff] }
  0x50   : > { %802 = vmatpush1.bf16.msra.mxu0 %v1258_v41  ;;  %843 = vmatpush1.bf16.msra.mxu1 %v1260_v42  ;;  %v346_v41 = vld [vmem:[%s1579_s26 + $0x120] sm:$0xff]  ;;  %v1236_v46 = vcombine.low %v331_v35, %v339_v36  ;;  %v1267_v55 = vcombine.high %v362_v49, %v370_v50  ;;  %v1285_v0 = vcombine.high %v379_v58, %v379_v58  ;;  %v340_v12 = vld [vmem:[%s1579_s26 + $0xf0] sm:$0xff]  ;;  %v357_v22 = vld [vmem:[%s1579_s26 + $0x178] sm:$0xff] }
  0x51   : > { %1290 = vmatprep.subr.msk.bf16.mxu0 %vm746_vm0, %v1275_v43  ;;  %1292 = vmatprep.subr.msk.bf16.mxu1 %vm746_vm0, %v1277_v45  ;;  %v354_v42 = vld [vmem:[%s1579_s26 + $0x160] sm:$0xff]  ;;  %v347_v43 = vld [vmem:[%s1579_s26 + $0x128] sm:$0xff]  ;;  %v1234_v45 = vcombine.low %v330_v33, %v338_v34  ;;  %v1284_v1 = vcombine.low %v379_v58, %v379_v58  ;;  %v1239_v17 = vcombine.high %v332_v11, %v340_v12  ;;  %v364_v27 = vld [vmem:[%s1579_s26 + $0x1b0] sm:$0xff] }
  0x52   : > { %v1251_v47 = vcombine.high %v346_v41, %v354_v42  ;;  %v1253_v48 = vcombine.high %v347_v43, %v355_v44  ;;  %v378_v57 = vld [vmem:[%s1579_s26 + $0x220] sm:$0xff]  ;;  %v372_v28 = vld [vmem:[%s1579_s26 + $0x1f0] sm:$0xff]  ;;  %v381_v36 = vld [vmem:[%s1579_s26 + $0x238] sm:$0xff] }
  0x53   : > { %v778_v9 = vsel %vm746_vm0, %v1284_v1, 0  ;;  %v1271_v33 = vcombine.high %v364_v27, %v372_v28  ;;  %v380_v35 = vld [vmem:[%s1579_s26 + $0x230] sm:$0xff] }
  0x54   : > { %804 = vmatpush1.bf16.msra.mxu0 %v748_v51  ;;  %845 = vmatpush1.bf16.msra.mxu1 %v754_v53  ;;  %v363_v51 = vld [vmem:[%s1579_s26 + $0x1a8] sm:$0xff]  ;;  %v1250_v53 = vcombine.low %v346_v41, %v354_v42  ;;  %v1288_v41 = vcombine.low %v381_v36, %v381_v36 }
  0x55   : > { %877 = vmatprep.subr.bf16.mxu0 %v1215_v52  ;;  %918 = vmatprep.subr.bf16.mxu1 %v1217_v54  ;;  %v371_v52 = vld [vmem:[%s1579_s26 + $0x1e8] sm:$0xff]  ;;  %v1252_v54 = vcombine.low %v347_v43, %v355_v44 }
  0x56   : > { %v1269_v56 = vcombine.high %v363_v51, %v371_v52  ;;  %v790_v43 = vsel %vm746_vm0, %v1288_v41, 0 }
  0x57   : > { %1291 = vmatmul.mubr.msk.bf16.vlgmr.msra.gmra.mrb[0].mxu0 %vm742_vm1, %v1614_v59  ;;  %1293 = vmatmul.mubr.msk.bf16.vlgmr.msra.gmra.mrb[0].mxu1 %vm742_vm1, %v1614_v59 }
  0x58   : > { %878 = vmatpush1.bf16.msra.mxu0 %v1214_v60  ;;  %919 = vmatpush1.bf16.msra.mxu1 %v1216_v61  ;;  %v1266_v60 = vcombine.low %v362_v49, %v370_v50  ;;  %v1268_v61 = vcombine.low %v363_v51, %v371_v52 }
  0x59   : > { %879 = vmatprep.subr.bf16.mxu0 %v1231_v62  ;;  %920 = vmatprep.subr.bf16.mxu1 %v1233_v63  ;;  %v1283_v62 = vcombine.high %v378_v57, %v378_v57  ;;  %v1282_v63 = vcombine.low %v378_v57, %v378_v57 }
  0x5a   : > { %909 = vmatprep.mubr.bf16.mxu0 %v1376_v8  ;;  %950 = vmatprep.mubr.bf16.mxu1 %v1376_v8 }
  0x5c   : > { %880 = vmatpush1.bf16.msra.mxu0 %v1230_v4  ;;  %921 = vmatpush1.bf16.msra.mxu1 %v1232_v5  ;;  %v317_v4 = vld [vmem:[%s1579_s26 + $0x38] sm:$0xff] }
  0x5d   : > { %881 = vmatprep.subr.bf16.mxu0 %v1247_v6  ;;  %922 = vmatprep.subr.bf16.mxu1 %v1249_v7  ;;  %v325_v5 = vld [vmem:[%s1579_s26 + $0x78] sm:$0xff]  ;;  %v772_v6 = vsel %vm746_vm0, %v1282_v63, 0  ;;  %v1223_v7 = vcombine.high %v316_v2, %v324_v3 }
  0x5e   : > { %v1225_v10 = vcombine.high %v317_v4, %v325_v5 }
  0x60   : > { %882 = vmatpush1.bf16.msra.mxu0 %v1246_v13  ;;  %923 = vmatpush1.bf16.msra.mxu1 %v1248_v14  ;;  %v333_v13 = vld [vmem:[%s1579_s26 + $0xb8] sm:$0xff] }
  0x61   : > { %883 = vmatprep.subr.bf16.mxu0 %v1263_v15  ;;  %924 = vmatprep.subr.bf16.mxu1 %v1265_v16  ;;  %v341_v14 = vld [vmem:[%s1579_s26 + $0xf8] sm:$0xff]  ;;  %v1222_v15 = vcombine.low %v316_v2, %v324_v3  ;;  %v1224_v16 = vcombine.low %v317_v4, %v325_v5 }
  0x62   : > { %v1241_v18 = vcombine.high %v333_v13, %v341_v14  ;;  %v1240_v24 = vcombine.low %v333_v13, %v341_v14 }
  0x64   : > { %884 = vmatpush1.bf16.msra.mxu0 %v1262_v19  ;;  %925 = vmatpush1.bf16.msra.mxu1 %v1264_v20  ;;  %v348_v19 = vld [vmem:[%s1579_s26 + $0x130] sm:$0xff] }
  0x65   : > { %1294 = vmatprep.subr.msk.bf16.mxu0 %vm746_vm0, %v1279_v21  ;;  %1296 = vmatprep.subr.msk.bf16.mxu1 %vm746_vm0, %v1281_v23  ;;  %v356_v20 = vld [vmem:[%s1579_s26 + $0x170] sm:$0xff]  ;;  %v349_v21 = vld [vmem:[%s1579_s26 + $0x138] sm:$0xff]  ;;  %v1238_v23 = vcombine.low %v332_v11, %v340_v12 }
  0x66   : > { %v1255_v25 = vcombine.high %v348_v19, %v356_v20  ;;  %v1257_v26 = vcombine.high %v349_v21, %v357_v22 }
  0x68   : > { %886 = vmatpush1.bf16.msra.mxu0 %v760_v29  ;;  %927 = vmatpush1.bf16.msra.mxu1 %v766_v31  ;;  %v365_v29 = vld [vmem:[%s1579_s26 + $0x1b8] sm:$0xff]  ;;  %v1254_v31 = vcombine.low %v348_v19, %v356_v20 }
  0x69   : > { %959 = vmatprep.subr.bf16.mxu0 %v1219_v30  ;;  %1000 = vmatprep.subr.bf16.mxu1 %v1221_v32  ;;  %v373_v30 = vld [vmem:[%s1579_s26 + $0x1f8] sm:$0xff]  ;;  %v1256_v32 = vcombine.low %v349_v21, %v357_v22 }
  0x6a   : > { %v1273_v34 = vcombine.high %v365_v29, %v373_v30 }
  0x6b   : > { %1295 = vmatmul.mubr.msk.bf16.vlgmr.msra.gmra.mrb[4].mxu0 %vm742_vm1, %v1614_v59  ;;  %1297 = vmatmul.mubr.msk.bf16.vlgmr.msra.gmra.mrb[4].mxu1 %vm742_vm1, %v1614_v59 }
  0x6c   : > { %960 = vmatpush1.bf16.msra.mxu0 %v1218_v37  ;;  %1001 = vmatpush1.bf16.msra.mxu1 %v1220_v38  ;;  %v1270_v37 = vcombine.low %v364_v27, %v372_v28  ;;  %v1272_v38 = vcombine.low %v365_v29, %v373_v30 }
  0x6d   : > { %961 = vmatprep.subr.bf16.mxu0 %v1235_v39  ;;  %1002 = vmatprep.subr.bf16.mxu1 %v1237_v40  ;;  %v1287_v39 = vcombine.high %v380_v35, %v380_v35  ;;  %v1286_v40 = vcombine.low %v380_v35, %v380_v35 }
  0x6e   : > { %991 = vmatprep.mubr.bf16.mxu0 %v1376_v8  ;;  %1032 = vmatprep.mubr.bf16.mxu1 %v1376_v8 }
  0x6f   : > { %v784_v42 = vsel %vm746_vm0, %v1286_v40, 0 }
  0x70   : > { %962 = vmatpush1.bf16.msra.mxu0 %v1234_v45  ;;  %1003 = vmatpush1.bf16.msra.mxu1 %v1236_v46 }
  0x71   : > { %963 = vmatprep.subr.bf16.mxu0 %v1251_v47  ;;  %1004 = vmatprep.subr.bf16.mxu1 %v1253_v48 }
  0x74   : > { %964 = vmatpush1.bf16.msra.mxu0 %v1250_v53  ;;  %1005 = vmatpush1.bf16.msra.mxu1 %v1252_v54 }
  0x75   : > { %965 = vmatprep.subr.bf16.mxu0 %v1267_v55  ;;  %1006 = vmatprep.subr.bf16.mxu1 %v1269_v56 }
  0x78   : > { %966 = vmatpush1.bf16.msra.mxu0 %v1266_v60  ;;  %1007 = vmatpush1.bf16.msra.mxu1 %v1268_v61 }
  0x79   : > { %1298 = vmatprep.subr.msk.bf16.mxu0 %vm746_vm0, %v1283_v62  ;;  %1300 = vmatprep.subr.msk.bf16.mxu1 %vm746_vm0, %v1285_v0 }
  0x7c   : > { %968 = vmatpush1.bf16.msra.mxu0 %v772_v6  ;;  %1009 = vmatpush1.bf16.msra.mxu1 %v778_v9 }
  0x7d   : > { %1041 = vmatprep.subr.bf16.mxu0 %v1223_v7  ;;  %1082 = vmatprep.subr.bf16.mxu1 %v1225_v10 }
  0x7f   : > { %1299 = vmatmul.mubr.msk.bf16.vlgmr.msra.gmra.mrb[8].mxu0 %vm742_vm1, %v1614_v59  ;;  %1301 = vmatmul.mubr.msk.bf16.vlgmr.msra.gmra.mrb[8].mxu1 %vm742_vm1, %v1614_v59 }
  0x80   : > { %1042 = vmatpush1.bf16.msra.mxu0 %v1222_v15  ;;  %1083 = vmatpush1.bf16.msra.mxu1 %v1224_v16 }
  0x81   : > { %1043 = vmatprep.subr.bf16.mxu0 %v1239_v17  ;;  %1084 = vmatprep.subr.bf16.mxu1 %v1241_v18 }
  0x82   : > { %1073 = vmatprep.mubr.bf16.mxu0 %v1376_v8  ;;  %1114 = vmatprep.mubr.bf16.mxu1 %v1376_v8  ;;  %v1289_v8 = vcombine.high %v381_v36, %v381_v36 }
  0x84   : > { %1044 = vmatpush1.bf16.msra.mxu0 %v1238_v23  ;;  %1085 = vmatpush1.bf16.msra.mxu1 %v1240_v24 }
  0x85   : > { %1045 = vmatprep.subr.bf16.mxu0 %v1255_v25  ;;  %1086 = vmatprep.subr.bf16.mxu1 %v1257_v26 }
  0x88   : > { %1046 = vmatpush1.bf16.msra.mxu0 %v1254_v31  ;;  %1087 = vmatpush1.bf16.msra.mxu1 %v1256_v32 }
  0x89   : > { %1047 = vmatprep.subr.bf16.mxu0 %v1271_v33  ;;  %1088 = vmatprep.subr.bf16.mxu1 %v1273_v34 }
  0x8c   : > { %1048 = vmatpush1.bf16.msra.mxu0 %v1270_v37  ;;  %1089 = vmatpush1.bf16.msra.mxu1 %v1272_v38 }
  0x8d   : > { %1302 = vmatprep.subr.msk.bf16.mxu0 %vm746_vm0, %v1287_v39  ;;  %1304 = vmatprep.subr.msk.bf16.mxu1 %vm746_vm0, %v1289_v8 }
  0x90   : > { %1050 = vmatpush1.bf16.msra.mxu0 %v784_v42  ;;  %1091 = vmatpush1.bf16.msra.mxu1 %v790_v43 }
  0x93   : > { %1303 = vmatmul.mubr.msk.bf16.vlgmr.msra.gmra.mrb[12].mxu0 %vm742_vm1, %v1614_v59  ;;  %1305 = vmatmul.mubr.msk.bf16.vlgmr.msra.gmra.mrb[12].mxu1 %vm742_vm1, %v1614_v59 }
 0x12a   : > { %v829_v44 = vpop.f32.mrb[0].mxu0  ;;  %v870_v59 = vpop.f32.mrb[0].mxu1 }
 0x12b   : > { %1123 = vst [vmem:[%s1701_s5] sm:$0xff] %v829_v44  ;;  %v831_v45 = vpop.f32.mrb[1].mxu0  ;;  %1125 = vst [vmem:[%s1701_s5 + $0x10] sm:$0xff] %v870_v59  ;;  %v872_v46 = vpop.f32.mrb[1].mxu1 }
 0x12c   : > { %1124 = vst [vmem:[%s1701_s5 + $0x8] sm:$0xff] %v831_v45  ;;  %v833_v47 = vpop.f32.mrb[2].mxu0  ;;  %1126 = vst [vmem:[%s1701_s5 + $0x18] sm:$0xff] %v872_v46  ;;  %v874_v48 = vpop.f32.mrb[2].mxu1 }
 0x12d   : > { %v834_v49 = vpop.f32.mrb[3].mxu0  ;;  %v875_v50 = vpop.f32.mrb[3].mxu1 }
 0x13e   : > { %v911_v51 = vpop.f32.mrb[4].mxu0  ;;  %v952_v52 = vpop.f32.mrb[4].mxu1 }
 0x13f   : > { %1127 = vst [vmem:[%s1701_s5 + $0x20] sm:$0xff] %v911_v51  ;;  %v913_v53 = vpop.f32.mrb[5].mxu0  ;;  %1129 = vst [vmem:[%s1701_s5 + $0x30] sm:$0xff] %v952_v52  ;;  %v954_v54 = vpop.f32.mrb[5].mxu1 }
 0x140   : > { %1128 = vst [vmem:[%s1701_s5 + $0x28] sm:$0xff] %v913_v53  ;;  %v915_v55 = vpop.f32.mrb[6].mxu0  ;;  %1130 = vst [vmem:[%s1701_s5 + $0x38] sm:$0xff] %v954_v54  ;;  %v956_v56 = vpop.f32.mrb[6].mxu1 }
 0x141   : > { %v916_v57 = vpop.f32.mrb[7].mxu0  ;;  %v957_v58 = vpop.f32.mrb[7].mxu1 }
 0x152   : > { %v993_v60 = vpop.f32.mrb[8].mxu0  ;;  %v1034_v61 = vpop.f32.mrb[8].mxu1 }
 0x153   : > { %1131 = vst [vmem:[%s1701_s5 + $0x40] sm:$0xff] %v993_v60  ;;  %v995_v62 = vpop.f32.mrb[9].mxu0  ;;  %1133 = vst [vmem:[%s1701_s5 + $0x50] sm:$0xff] %v1034_v61  ;;  %v1036_v63 = vpop.f32.mrb[9].mxu1 }
 0x154   : > { %1132 = vst [vmem:[%s1701_s5 + $0x48] sm:$0xff] %v995_v62  ;;  %v997_v0 = vpop.f32.mrb[10].mxu0  ;;  %1134 = vst [vmem:[%s1701_s5 + $0x58] sm:$0xff] %v1036_v63  ;;  %v1038_v1 = vpop.f32.mrb[10].mxu1 }
 0x155   : > { %v998_v2 = vpop.f32.mrb[11].mxu0  ;;  %v1039_v3 = vpop.f32.mrb[11].mxu1 }
 0x166   : > { %v1075_v4 = vpop.f32.mrb[12].mxu0  ;;  %v1116_v5 = vpop.f32.mrb[12].mxu1 }
 0x167   : > { %1135 = vst [vmem:[%s1701_s5 + $0x60] sm:$0xff] %v1075_v4  ;;  %v1077_v6 = vpop.f32.mrb[13].mxu0  ;;  %1137 = vst [vmem:[%s1701_s5 + $0x70] sm:$0xff] %v1116_v5  ;;  %v1118_v7 = vpop.f32.mrb[13].mxu1 }
 0x168   : > { %1136 = vst [vmem:[%s1701_s5 + $0x68] sm:$0xff] %v1077_v6  ;;  %v1079_v9 = vpop.f32.mrb[14].mxu0  ;;  %1138 = vst [vmem:[%s1701_s5 + $0x78] sm:$0xff] %v1118_v7  ;;  %v1120_v10 = vpop.f32.mrb[14].mxu1 }
 0x169   : > { %v1080_v11 = vpop.f32.mrb[15].mxu0  ;;  %v1121_v12 = vpop.f32.mrb[15].mxu1 }
 0x16a PF: > { %p9_p9 = scmp.ge.s32.totalorder %s1409_s13, 6   ;;  %s1732_s9 = smov %s1370_s10 }
 0x16b   : > { %s1733_s10 = smov %s1418_s16  ;;  %s1734_s11 = smov %s1409_s13 }
 0x16c   :  { %11 = sbr.rel (!%p9_p9) target bundleno = 2 (0x2), region = 86 }

// kernel: _lambda_.9
= control target key start
LH: loop header
LB: loop body
LE: loop exit
PB: predicated region body
PF: predicated region fallthrough
CT: control target
= control target key end

     0   :  { %s1476_s12 = smov 0   ;;  %s1478_s13 = smov 0   ;;  %s1834_s0 = inlined_call_operand.vmem [shape: bf16[8,72], index: 0, kind: input, shape index: {}]   ;;  %s1835_s1 = inlined_call_operand.vmem [shape: bf16[72,8192], index: 1, kind: input, shape index: {}]   ;;  %s1836_s2 = inlined_call_operand.vmem [shape: f32[8,8192], index: 2, kind: input, shape index: {}]   ;;  %s1837_s3 = inlined_call_operand.vmem [shape: f32[8,8192], index: 3, kind: output, shape index: {}]  }
   0x1   :  { %s1480_s14 = smov 0  }
   0x2 LB: > { %s1278_s15 = sadd.s32 4294967295, %s1453_s14   ;;  %s1493_s16 = sadd.s32 1, %s1453_s14   ;;  %s1453_s14 = sphi %s1480_s14, %s1840_s14   ;;  %s1449_s13 = sphi %s1478_s13, %s1839_s13   ;;  %s1445_s12 = sphi %s1476_s12, %s1838_s12  }
   0x3   : > { %s38_s17 = ssub.s32 %s1453_s14, %s1493_s16  ;;  %s41_s18 = sadd.s32 1, %s1449_s13 }
   0x4   : > { %p39_p0 = scmp.eq.s32.totalorder %s38_s17, 0  ;;  %p48_p1 = scmp.ne.s32.totalorder %s1449_s13, %s1445_s12 }
   0x5   : > { %p49_p2 = scmp.eq.s32.totalorder %s1453_s14, 0  ;;  %p1281_p4 = scmp.ge.s32.totalorder %s1453_s14, 4 }
   0x6   : > { %s1502_s19 = scalar_select %p39_p0, %s1449_s13, %s41_s18  }
   0x7   : > { %p50_p3 = por %p49_p2, %p48_p1  ;;  %129 = sbr.rel (%p1281_p4) target bundleno = 55 (0x37), region = 20 }
   0xe   : > { %132 = sbr.rel (!%p50_p3) target bundleno = 55 (0x37), region = 24  ;;  %s134_s20 = sand.u32 (%p50_p3), 1, %s1449_s13  }
   0xf   : > { %s1387_s21 = sshll.u32 (%p50_p3), %s1453_s14, 6  ;;  %s1388_s22 = smul.u32 (%p50_p3), 576, %s134_s20 }
  0x10   : > { %s1510_s25 = scalar_lea.vmem (%p50_p3), %s1835_s1, %s1387_s21 }
  0x11   : > { %v152_v0 = vld [vmem:[%s1510_s25] sm:$0xff] (%p50_p3)  ;;  %v154_v1 = vld [vmem:[%s1510_s25 + $0x8] sm:$0xff] (%p50_p3)  ;;  %v156_v2 = vld [vmem:[%s1510_s25 + $0x10] sm:$0xff] (%p50_p3)  ;;  %s1518_s26 = scalar_lea.vmem (%p50_p3), [#allocation2], %s1388_s22 }
  0x12   : > { %v158_v3 = vld [vmem:[%s1510_s25 + $0x18] sm:$0xff] (%p50_p3)  ;;  %v160_v4 = vld [vmem:[%s1510_s25 + $0x20] sm:$0xff] (%p50_p3)  ;;  %v162_v5 = vld [vmem:[%s1510_s25 + $0x28] sm:$0xff] (%p50_p3)  ;;  %153 = vst [vmem:[%s1518_s26] sm:$0xff] (%p50_p3), %v152_v0 }
  0x13   : > { %155 = vst [vmem:[%s1518_s26 + $0x8] sm:$0xff] (%p50_p3), %v154_v1  ;;  %157 = vst [vmem:[%s1518_s26 + $0x10] sm:$0xff] (%p50_p3), %v156_v2  ;;  %v164_v6 = vld [vmem:[%s1510_s25 + $0x30] sm:$0xff] (%p50_p3)  ;;  %v166_v7 = vld [vmem:[%s1510_s25 + $0x38] sm:$0xff] (%p50_p3) }
  0x14   : > { %159 = vst [vmem:[%s1518_s26 + $0x18] sm:$0xff] (%p50_p3), %v158_v3  ;;  %161 = vst [vmem:[%s1518_s26 + $0x20] sm:$0xff] (%p50_p3), %v160_v4  ;;  %v168_v8 = vld [vmem:[%s1510_s25 + $0x100] sm:$0xff] (%p50_p3)  ;;  %v170_v9 = vld [vmem:[%s1510_s25 + $0x108] sm:$0xff] (%p50_p3) }
  0x15   : > { %163 = vst [vmem:[%s1518_s26 + $0x28] sm:$0xff] %v162_v5  ;;  %165 = vst [vmem:[%s1518_s26 + $0x30] sm:$0xff] %v164_v6  ;;  %v172_v10 = vld [vmem:[%s1510_s25 + $0x110] sm:$0xff]  ;;  %v174_v11 = vld [vmem:[%s1510_s25 + $0x118] sm:$0xff] }
  0x16   : > { %167 = vst [vmem:[%s1518_s26 + $0x38] sm:$0xff] %v166_v7  ;;  %169 = vst [vmem:[%s1518_s26 + $0x40] sm:$0xff] %v168_v8  ;;  %v176_v12 = vld [vmem:[%s1510_s25 + $0x120] sm:$0xff]  ;;  %v178_v13 = vld [vmem:[%s1510_s25 + $0x128] sm:$0xff] }
  0x17   : > { %171 = vst [vmem:[%s1518_s26 + $0x48] sm:$0xff] %v170_v9  ;;  %173 = vst [vmem:[%s1518_s26 + $0x50] sm:$0xff] %v172_v10  ;;  %v180_v14 = vld [vmem:[%s1510_s25 + $0x130] sm:$0xff]  ;;  %v182_v15 = vld [vmem:[%s1510_s25 + $0x138] sm:$0xff] }
  0x18   : > { %175 = vst [vmem:[%s1518_s26 + $0x58] sm:$0xff] %v174_v11  ;;  %177 = vst [vmem:[%s1518_s26 + $0x60] sm:$0xff] %v176_v12  ;;  %v184_v16 = vld [vmem:[%s1510_s25 + $0x200] sm:$0xff]  ;;  %v186_v17 = vld [vmem:[%s1510_s25 + $0x208] sm:$0xff] }
  0x19   : > { %179 = vst [vmem:[%s1518_s26 + $0x68] sm:$0xff] %v178_v13  ;;  %181 = vst [vmem:[%s1518_s26 + $0x70] sm:$0xff] %v180_v14  ;;  %v188_v18 = vld [vmem:[%s1510_s25 + $0x210] sm:$0xff]  ;;  %v190_v19 = vld [vmem:[%s1510_s25 + $0x218] sm:$0xff] }
  0x1a   : > { %183 = vst [vmem:[%s1518_s26 + $0x78] sm:$0xff] %v182_v15  ;;  %185 = vst [vmem:[%s1518_s26 + $0x80] sm:$0xff] %v184_v16  ;;  %v192_v20 = vld [vmem:[%s1510_s25 + $0x220] sm:$0xff]  ;;  %v194_v21 = vld [vmem:[%s1510_s25 + $0x228] sm:$0xff] }
  0x1b   : > { %187 = vst [vmem:[%s1518_s26 + $0x88] sm:$0xff] %v186_v17  ;;  %189 = vst [vmem:[%s1518_s26 + $0x90] sm:$0xff] %v188_v18  ;;  %v196_v22 = vld [vmem:[%s1510_s25 + $0x230] sm:$0xff]  ;;  %v198_v23 = vld [vmem:[%s1510_s25 + $0x238] sm:$0xff] }
  0x1c   : > { %191 = vst [vmem:[%s1518_s26 + $0x98] sm:$0xff] %v190_v19  ;;  %193 = vst [vmem:[%s1518_s26 + $0xa0] sm:$0xff] %v192_v20  ;;  %v200_v24 = vld [vmem:[%s1510_s25 + $0x300] sm:$0xff]  ;;  %v202_v25 = vld [vmem:[%s1510_s25 + $0x308] sm:$0xff] }
  0x1d   : > { %195 = vst [vmem:[%s1518_s26 + $0xa8] sm:$0xff] %v194_v21  ;;  %197 = vst [vmem:[%s1518_s26 + $0xb0] sm:$0xff] %v196_v22  ;;  %v204_v26 = vld [vmem:[%s1510_s25 + $0x310] sm:$0xff]  ;;  %v206_v27 = vld [vmem:[%s1510_s25 + $0x318] sm:$0xff] }
  0x1e   : > { %199 = vst [vmem:[%s1518_s26 + $0xb8] sm:$0xff] %v198_v23  ;;  %201 = vst [vmem:[%s1518_s26 + $0xc0] sm:$0xff] %v200_v24  ;;  %v208_v28 = vld [vmem:[%s1510_s25 + $0x320] sm:$0xff]  ;;  %v210_v29 = vld [vmem:[%s1510_s25 + $0x328] sm:$0xff] }
  0x1f   : > { %203 = vst [vmem:[%s1518_s26 + $0xc8] sm:$0xff] %v202_v25  ;;  %205 = vst [vmem:[%s1518_s26 + $0xd0] sm:$0xff] %v204_v26  ;;  %v212_v30 = vld [vmem:[%s1510_s25 + $0x330] sm:$0xff]  ;;  %v214_v31 = vld [vmem:[%s1510_s25 + $0x338] sm:$0xff] }
  0x20   : > { %207 = vst [vmem:[%s1518_s26 + $0xd8] sm:$0xff] %v206_v27  ;;  %209 = vst [vmem:[%s1518_s26 + $0xe0] sm:$0xff] %v208_v28  ;;  %v216_v32 = vld [vmem:[%s1510_s25 + $0x400] sm:$0xff]  ;;  %v218_v33 = vld [vmem:[%s1510_s25 + $0x408] sm:$0xff] }
  0x21   : > { %211 = vst [vmem:[%s1518_s26 + $0xe8] sm:$0xff] %v210_v29  ;;  %213 = vst [vmem:[%s1518_s26 + $0xf0] sm:$0xff] %v212_v30  ;;  %v220_v34 = vld [vmem:[%s1510_s25 + $0x410] sm:$0xff]  ;;  %v222_v35 = vld [vmem:[%s1510_s25 + $0x418] sm:$0xff] }
  0x22   : > { %215 = vst [vmem:[%s1518_s26 + $0xf8] sm:$0xff] %v214_v31  ;;  %217 = vst [vmem:[%s1518_s26 + $0x100] sm:$0xff] %v216_v32  ;;  %v224_v36 = vld [vmem:[%s1510_s25 + $0x420] sm:$0xff]  ;;  %v226_v37 = vld [vmem:[%s1510_s25 + $0x428] sm:$0xff] }
  0x23   : > { %219 = vst [vmem:[%s1518_s26 + $0x108] sm:$0xff] %v218_v33  ;;  %221 = vst [vmem:[%s1518_s26 + $0x110] sm:$0xff] %v220_v34  ;;  %v228_v38 = vld [vmem:[%s1510_s25 + $0x430] sm:$0xff]  ;;  %v230_v39 = vld [vmem:[%s1510_s25 + $0x438] sm:$0xff] }
  0x24   : > { %223 = vst [vmem:[%s1518_s26 + $0x118] sm:$0xff] %v222_v35  ;;  %225 = vst [vmem:[%s1518_s26 + $0x120] sm:$0xff] %v224_v36  ;;  %v232_v40 = vld [vmem:[%s1510_s25 + $0x500] sm:$0xff]  ;;  %v234_v41 = vld [vmem:[%s1510_s25 + $0x508] sm:$0xff] }
  0x25   : > { %227 = vst [vmem:[%s1518_s26 + $0x128] sm:$0xff] %v226_v37  ;;  %229 = vst [vmem:[%s1518_s26 + $0x130] sm:$0xff] %v228_v38  ;;  %v236_v42 = vld [vmem:[%s1510_s25 + $0x510] sm:$0xff]  ;;  %v238_v43 = vld [vmem:[%s1510_s25 + $0x518] sm:$0xff] }
  0x26   : > { %231 = vst [vmem:[%s1518_s26 + $0x138] sm:$0xff] %v230_v39  ;;  %233 = vst [vmem:[%s1518_s26 + $0x140] sm:$0xff] %v232_v40  ;;  %v240_v44 = vld [vmem:[%s1510_s25 + $0x520] sm:$0xff]  ;;  %v242_v45 = vld [vmem:[%s1510_s25 + $0x528] sm:$0xff] }
  0x27   : > { %235 = vst [vmem:[%s1518_s26 + $0x148] sm:$0xff] %v234_v41  ;;  %237 = vst [vmem:[%s1518_s26 + $0x150] sm:$0xff] %v236_v42  ;;  %v244_v46 = vld [vmem:[%s1510_s25 + $0x530] sm:$0xff]  ;;  %v246_v47 = vld [vmem:[%s1510_s25 + $0x538] sm:$0xff] }
  0x28   : > { %239 = vst [vmem:[%s1518_s26 + $0x158] sm:$0xff] %v238_v43  ;;  %241 = vst [vmem:[%s1518_s26 + $0x160] sm:$0xff] %v240_v44  ;;  %v248_v48 = vld [vmem:[%s1510_s25 + $0x600] sm:$0xff]  ;;  %v250_v49 = vld [vmem:[%s1510_s25 + $0x608] sm:$0xff] }
  0x29   : > { %243 = vst [vmem:[%s1518_s26 + $0x168] sm:$0xff] %v242_v45  ;;  %245 = vst [vmem:[%s1518_s26 + $0x170] sm:$0xff] %v244_v46  ;;  %v252_v50 = vld [vmem:[%s1510_s25 + $0x610] sm:$0xff]  ;;  %v254_v51 = vld [vmem:[%s1510_s25 + $0x618] sm:$0xff] }
  0x2a   : > { %247 = vst [vmem:[%s1518_s26 + $0x178] sm:$0xff] %v246_v47  ;;  %249 = vst [vmem:[%s1518_s26 + $0x180] sm:$0xff] %v248_v48  ;;  %v256_v52 = vld [vmem:[%s1510_s25 + $0x620] sm:$0xff]  ;;  %v258_v53 = vld [vmem:[%s1510_s25 + $0x628] sm:$0xff] }
  0x2b   : > { %251 = vst [vmem:[%s1518_s26 + $0x188] sm:$0xff] %v250_v49  ;;  %253 = vst [vmem:[%s1518_s26 + $0x190] sm:$0xff] %v252_v50  ;;  %v260_v54 = vld [vmem:[%s1510_s25 + $0x630] sm:$0xff]  ;;  %v262_v55 = vld [vmem:[%s1510_s25 + $0x638] sm:$0xff] }
  0x2c   : > { %255 = vst [vmem:[%s1518_s26 + $0x198] sm:$0xff] %v254_v51  ;;  %257 = vst [vmem:[%s1518_s26 + $0x1a0] sm:$0xff] %v256_v52  ;;  %v264_v56 = vld [vmem:[%s1510_s25 + $0x700] sm:$0xff]  ;;  %v266_v57 = vld [vmem:[%s1510_s25 + $0x708] sm:$0xff] }
  0x2d   : > { %259 = vst [vmem:[%s1518_s26 + $0x1a8] sm:$0xff] %v258_v53  ;;  %261 = vst [vmem:[%s1518_s26 + $0x1b0] sm:$0xff] %v260_v54  ;;  %v268_v58 = vld [vmem:[%s1510_s25 + $0x710] sm:$0xff]  ;;  %v270_v59 = vld [vmem:[%s1510_s25 + $0x718] sm:$0xff] }
  0x2e   : > { %263 = vst [vmem:[%s1518_s26 + $0x1b8] sm:$0xff] %v262_v55  ;;  %265 = vst [vmem:[%s1518_s26 + $0x1c0] sm:$0xff] %v264_v56  ;;  %v272_v60 = vld [vmem:[%s1510_s25 + $0x720] sm:$0xff]  ;;  %v274_v61 = vld [vmem:[%s1510_s25 + $0x728] sm:$0xff] }
  0x2f   : > { %267 = vst [vmem:[%s1518_s26 + $0x1c8] sm:$0xff] %v266_v57  ;;  %269 = vst [vmem:[%s1518_s26 + $0x1d0] sm:$0xff] %v268_v58  ;;  %v276_v62 = vld [vmem:[%s1510_s25 + $0x730] sm:$0xff]  ;;  %v278_v63 = vld [vmem:[%s1510_s25 + $0x738] sm:$0xff] }
  0x30   : > { %271 = vst [vmem:[%s1518_s26 + $0x1d8] sm:$0xff] %v270_v59  ;;  %273 = vst [vmem:[%s1518_s26 + $0x1e0] sm:$0xff] %v272_v60  ;;  %v280_v0 = vld [vmem:[%s1510_s25 + $0x800] sm:$0xff]  ;;  %v282_v1 = vld [vmem:[%s1510_s25 + $0x808] sm:$0xff] }
  0x31   : > { %275 = vst [vmem:[%s1518_s26 + $0x1e8] sm:$0xff] %v274_v61  ;;  %277 = vst [vmem:[%s1518_s26 + $0x1f0] sm:$0xff] %v276_v62  ;;  %v284_v2 = vld [vmem:[%s1510_s25 + $0x810] sm:$0xff]  ;;  %v286_v3 = vld [vmem:[%s1510_s25 + $0x818] sm:$0xff] }
  0x32   : > { %279 = vst [vmem:[%s1518_s26 + $0x1f8] sm:$0xff] %v278_v63  ;;  %281 = vst [vmem:[%s1518_s26 + $0x200] sm:$0xff] %v280_v0  ;;  %v288_v4 = vld [vmem:[%s1510_s25 + $0x820] sm:$0xff]  ;;  %v290_v5 = vld [vmem:[%s1510_s25 + $0x828] sm:$0xff] }
  0x33   : > { %283 = vst [vmem:[%s1518_s26 + $0x208] sm:$0xff] %v282_v1  ;;  %285 = vst [vmem:[%s1518_s26 + $0x210] sm:$0xff] %v284_v2  ;;  %v292_v6 = vld [vmem:[%s1510_s25 + $0x830] sm:$0xff]  ;;  %v294_v7 = vld [vmem:[%s1510_s25 + $0x838] sm:$0xff] }
  0x34   : > { %287 = vst [vmem:[%s1518_s26 + $0x218] sm:$0xff] %v286_v3  ;;  %289 = vst [vmem:[%s1518_s26 + $0x220] sm:$0xff] %v288_v4 }
  0x35   : > { %291 = vst [vmem:[%s1518_s26 + $0x228] sm:$0xff] %v290_v5  ;;  %293 = vst [vmem:[%s1518_s26 + $0x230] sm:$0xff] %v292_v6 }
  0x36   : > { %295 = vst [vmem:[%s1518_s26 + $0x238] sm:$0xff] %v294_v7 }
  0x37 PF: > { %p1284_p5 = scmp.ge.s32.totalorder %s1453_s14, 1  ;;  %p309_p6 = scmp.lt.s32.totalorder %s1453_s14, 5 }
  0x39   : > { %p310_p7 = pnand %p1284_p5, %p309_p6 }
  0x3a   : > { %s316_s27 = sand.u32 (!%p310_p7), 1, %s1445_s12   ;;  %v1455_v8 = vmov (!%p310_p7), 0   ;;  %vm811_vm0 = vcmask (!%p310_p7), 1043456   ;;  %v1698_v59 = vld [vmem:[%s1834_s0] sm:$0xf] (!%p310_p7)  ;;  %vm807_vm1 = vcmask (!%p310_p7), 588800  }
  0x3b   : > { %313 = sbr.rel (%p310_p7) target bundleno = 363 (0x16b), region = 51  ;;  %892 = vmatprep.mubr.bf16.mxu0 (!%p310_p7), %v1455_v8  ;;  %933 = vmatprep.mubr.bf16.mxu1 (!%p310_p7), %v1455_v8  ;;  %s1285_s5 = sshll.u32 (!%p310_p7), %s1278_s15, 4 }
  0x3c   : > { %s1389_s28 = smul.u32 (!%p310_p7), 576, %s316_s27  ;;  %p346_p8 = scmp.lt.s32.totalorder (!%p310_p7), %s1285_s5, 63 }
  0x3e   : > { %s1663_s29 = scalar_lea.vmem (!%p310_p7), [#allocation2], %s1389_s28 }
  0x3f   : > { %v359_v9 = vld [vmem:[%s1663_s29] sm:$0xff] (!%p310_p7)  ;;  %v360_v11 = vld [vmem:[%s1663_s29 + $0x8] sm:$0xff] (!%p310_p7)  ;;  %v361_v47 = vld [vmem:[%s1663_s29 + $0x10] sm:$0xff] (!%p310_p7) }
  0x40   : > { %v367_v10 = vld [vmem:[%s1663_s29 + $0x40] sm:$0xff] (!%p310_p7)  ;;  %v368_v13 = vld [vmem:[%s1663_s29 + $0x48] sm:$0xff] (!%p310_p7)  ;;  %v369_v48 = vld [vmem:[%s1663_s29 + $0x50] sm:$0xff] (!%p310_p7) }
  0x41   : > { %v1290_v12 = vcombine.high (!%p310_p7), %v359_v9, %v367_v10  ;;  %v1289_v14 = vcombine.low (!%p310_p7), %v359_v9, %v367_v10  ;;  %v375_v15 = vld [vmem:[%s1663_s29 + $0x80] sm:$0xff] (!%p310_p7)  ;;  %v1292_v17 = vcombine.high (!%p310_p7), %v360_v11, %v368_v13  ;;  %v1291_v18 = vcombine.low (!%p310_p7), %v360_v11, %v368_v13  ;;  %v376_v20 = vld [vmem:[%s1663_s29 + $0x88] sm:$0xff] (!%p310_p7)  ;;  %v362_v49 = vld [vmem:[%s1663_s29 + $0x18] sm:$0xff] (!%p310_p7) }
  0x42   : > { %v383_v16 = vld [vmem:[%s1663_s29 + $0xc0] sm:$0xff]  ;;  %v384_v21 = vld [vmem:[%s1663_s29 + $0xc8] sm:$0xff]  ;;  %v370_v50 = vld [vmem:[%s1663_s29 + $0x58] sm:$0xff]  ;;  %v1294_v52 = vcombine.high %v361_v47, %v369_v48  ;;  %v1293_v60 = vcombine.low %v361_v47, %v369_v48  ;;  %s1842_s5 = smov (!%p346_p8, %s1285_s5), 63 }
  0x43   : > { %v1306_v19 = vcombine.high %v375_v15, %v383_v16  ;;  %v391_v22 = vld [vmem:[%s1663_s29 + $0x100] sm:$0xff]  ;;  %860 = vmatprep.subr.bf16.mxu0 %v1290_v12  ;;  %v1308_v23 = vcombine.high %v376_v20, %v384_v21  ;;  %v392_v25 = vld [vmem:[%s1663_s29 + $0x108] sm:$0xff]  ;;  %901 = vmatprep.subr.bf16.mxu1 %v1292_v17  ;;  %v1305_v27 = vcombine.low %v375_v15, %v383_v16  ;;  %v377_v55 = vld [vmem:[%s1663_s29 + $0x90] sm:$0xff]  ;;  %s1286_s6 = sshll.u32 %s1842_s5, 3 }
  0x44   : > { %v399_v24 = vld [vmem:[%s1663_s29 + $0x140] sm:$0xff]  ;;  %v400_v26 = vld [vmem:[%s1663_s29 + $0x148] sm:$0xff]  ;;  %861 = vmatpush1.bf16.msra.mxu0 %v1289_v14  ;;  %902 = vmatpush1.bf16.msra.mxu1 %v1291_v18  ;;  %v1307_v28 = vcombine.low %v376_v20, %v384_v21  ;;  %v1296_v54 = vcombine.high %v362_v49, %v370_v50  ;;  %v385_v56 = vld [vmem:[%s1663_s29 + $0xd0] sm:$0xff]  ;;  %v1295_v61 = vcombine.low %v362_v49, %v370_v50  ;;  %s1785_s9 = scalar_lea.vmem %s1836_s2, %s1286_s6  ;;  %s1793_s12 = scalar_lea.vmem %s1837_s3, %s1286_s6 }
  0x45   : > { %862 = vmatprep.subr.bf16.mxu0 %v1306_v19  ;;  %v1322_v29 = vcombine.high %v391_v22, %v399_v24  ;;  %903 = vmatprep.subr.bf16.mxu1 %v1308_v23  ;;  %v1324_v30 = vcombine.high %v392_v25, %v400_v26  ;;  %v407_v31 = vld [vmem:[%s1663_s29 + $0x180] sm:$0xff]  ;;  %v408_v33 = vld [vmem:[%s1663_s29 + $0x188] sm:$0xff]  ;;  %v1321_v35 = vcombine.low %v391_v22, %v399_v24  ;;  %v378_v57 = vld [vmem:[%s1663_s29 + $0x98] sm:$0xff] }
  0x46   : > { %v415_v32 = vld [vmem:[%s1663_s29 + $0x1c0] sm:$0xff]  ;;  %v416_v34 = vld [vmem:[%s1663_s29 + $0x1c8] sm:$0xff]  ;;  %v1323_v36 = vcombine.low %v392_v25, %v400_v26  ;;  %v386_v58 = vld [vmem:[%s1663_s29 + $0xd8] sm:$0xff]  ;;  %v1310_v62 = vcombine.high %v377_v55, %v385_v56  ;;  %v1309_v4 = vcombine.low %v377_v55, %v385_v56 }
  0x47   : > { %v1338_v37 = vcombine.high %v407_v31, %v415_v32  ;;  %v1340_v38 = vcombine.high %v408_v33, %v416_v34  ;;  %v423_v39 = vld [vmem:[%s1663_s29 + $0x200] sm:$0xff]  ;;  %v424_v40 = vld [vmem:[%s1663_s29 + $0x208] sm:$0xff]  ;;  %v1337_v41 = vcombine.low %v407_v31, %v415_v32  ;;  %v1339_v42 = vcombine.low %v408_v33, %v416_v34  ;;  %v393_v0 = vld [vmem:[%s1663_s29 + $0x110] sm:$0xff] }
  0x48   : > { %863 = vmatpush1.bf16.msra.mxu0 %v1305_v27  ;;  %904 = vmatpush1.bf16.msra.mxu1 %v1307_v28  ;;  %v1354_v43 = vcombine.high %v423_v39, %v423_v39  ;;  %v1353_v44 = vcombine.low %v423_v39, %v423_v39  ;;  %v1356_v45 = vcombine.high %v424_v40, %v424_v40  ;;  %v401_v1 = vld [vmem:[%s1663_s29 + $0x150] sm:$0xff]  ;;  %v394_v2 = vld [vmem:[%s1663_s29 + $0x118] sm:$0xff]  ;;  %v363_v25 = vld [vmem:[%s1663_s29 + $0x20] sm:$0xff] }
  0x49   : > { %864 = vmatprep.subr.bf16.mxu0 %v1322_v29  ;;  %905 = vmatprep.subr.bf16.mxu1 %v1324_v30  ;;  %v1355_v46 = vcombine.low %v424_v40, %v424_v40  ;;  %v1312_v63 = vcombine.high %v378_v57, %v386_v58  ;;  %v402_v3 = vld [vmem:[%s1663_s29 + $0x158] sm:$0xff]  ;;  %v1311_v5 = vcombine.low %v378_v57, %v386_v58  ;;  %v409_v9 = vld [vmem:[%s1663_s29 + $0x190] sm:$0xff]  ;;  %v371_v26 = vld [vmem:[%s1663_s29 + $0x60] sm:$0xff] }
  0x4a   : > { %v813_v51 = vsel %vm811_vm0, %v1353_v44, 0  ;;  %v1326_v6 = vcombine.high %v393_v0, %v401_v1  ;;  %v1328_v7 = vcombine.high %v394_v2, %v402_v3  ;;  %v417_v10 = vld [vmem:[%s1663_s29 + $0x1d0] sm:$0xff]  ;;  %v410_v11 = vld [vmem:[%s1663_s29 + $0x198] sm:$0xff]  ;;  %v1325_v13 = vcombine.low %v393_v0, %v401_v1  ;;  %v364_v27 = vld [vmem:[%s1663_s29 + $0x28] sm:$0xff] }
  0x4b   : > { %v819_v53 = vsel %vm811_vm0, %v1355_v46, 0  ;;  %v418_v12 = vld [vmem:[%s1663_s29 + $0x1d8] sm:$0xff]  ;;  %v1327_v14 = vcombine.low %v394_v2, %v402_v3  ;;  %v1342_v15 = vcombine.high %v409_v9, %v417_v10  ;;  %v425_v17 = vld [vmem:[%s1663_s29 + $0x210] sm:$0xff]  ;;  %v1341_v19 = vcombine.low %v409_v9, %v417_v10  ;;  %v372_v28 = vld [vmem:[%s1663_s29 + $0x68] sm:$0xff] }
  0x4c   : > { %865 = vmatpush1.bf16.msra.mxu0 %v1321_v35  ;;  %906 = vmatpush1.bf16.msra.mxu1 %v1323_v36  ;;  %v1344_v16 = vcombine.high %v410_v11, %v418_v12  ;;  %v426_v18 = vld [vmem:[%s1663_s29 + $0x218] sm:$0xff]  ;;  %v1343_v20 = vcombine.low %v410_v11, %v418_v12  ;;  %v1358_v21 = vcombine.high %v425_v17, %v425_v17  ;;  %v379_v33 = vld [vmem:[%s1663_s29 + $0xa0] sm:$0xff]  ;;  %v380_v35 = vld [vmem:[%s1663_s29 + $0xa8] sm:$0xff] }
  0x4d   : > { %866 = vmatprep.subr.bf16.mxu0 %v1338_v37  ;;  %907 = vmatprep.subr.bf16.mxu1 %v1340_v38  ;;  %v1357_v22 = vcombine.low %v425_v17, %v425_v17  ;;  %v1360_v23 = vcombine.high %v426_v18, %v426_v18  ;;  %v1359_v24 = vcombine.low %v426_v18, %v426_v18  ;;  %v387_v34 = vld [vmem:[%s1663_s29 + $0xe0] sm:$0xff]  ;;  %v388_v36 = vld [vmem:[%s1663_s29 + $0xe8] sm:$0xff]  ;;  %v365_v2 = vld [vmem:[%s1663_s29 + $0x30] sm:$0xff] }
  0x4e   : > { %v1298_v30 = vcombine.high %v363_v25, %v371_v26  ;;  %v1300_v32 = vcombine.high %v364_v27, %v372_v28  ;;  %v1297_v37 = vcombine.low %v363_v25, %v371_v26  ;;  %v1299_v38 = vcombine.low %v364_v27, %v372_v28  ;;  %v404_v44 = vld [vmem:[%s1663_s29 + $0x168] sm:$0xff]  ;;  %v411_v49 = vld [vmem:[%s1663_s29 + $0x1a0] sm:$0xff]  ;;  %v373_v3 = vld [vmem:[%s1663_s29 + $0x70] sm:$0xff] }
  0x4f   : > { %v825_v29 = vsel %vm811_vm0, %v1357_v22, 0  ;;  %v831_v31 = vsel %vm811_vm0, %v1359_v24, 0  ;;  %v1314_v39 = vcombine.high %v379_v33, %v387_v34  ;;  %v1316_v40 = vcombine.high %v380_v35, %v388_v36  ;;  %v419_v50 = vld [vmem:[%s1663_s29 + $0x1e0] sm:$0xff]  ;;  %v428_v58 = vld [vmem:[%s1663_s29 + $0x228] sm:$0xff]  ;;  %v381_v11 = vld [vmem:[%s1663_s29 + $0xb0] sm:$0xff] }
  0x50   : > { %867 = vmatpush1.bf16.msra.mxu0 %v1337_v41  ;;  %908 = vmatpush1.bf16.msra.mxu1 %v1339_v42  ;;  %v395_v41 = vld [vmem:[%s1663_s29 + $0x120] sm:$0xff]  ;;  %v1315_v46 = vcombine.low %v380_v35, %v388_v36  ;;  %v1346_v55 = vcombine.high %v411_v49, %v419_v50  ;;  %v1364_v0 = vcombine.high %v428_v58, %v428_v58  ;;  %v389_v12 = vld [vmem:[%s1663_s29 + $0xf0] sm:$0xff]  ;;  %v406_v22 = vld [vmem:[%s1663_s29 + $0x178] sm:$0xff] }
  0x51   : > { %1369 = vmatprep.subr.msk.bf16.mxu0 %vm811_vm0, %v1354_v43  ;;  %1371 = vmatprep.subr.msk.bf16.mxu1 %vm811_vm0, %v1356_v45  ;;  %v403_v42 = vld [vmem:[%s1663_s29 + $0x160] sm:$0xff]  ;;  %v396_v43 = vld [vmem:[%s1663_s29 + $0x128] sm:$0xff]  ;;  %v1313_v45 = vcombine.low %v379_v33, %v387_v34  ;;  %v1363_v1 = vcombine.low %v428_v58, %v428_v58  ;;  %v1318_v17 = vcombine.high %v381_v11, %v389_v12  ;;  %v413_v27 = vld [vmem:[%s1663_s29 + $0x1b0] sm:$0xff] }
  0x52   : > { %v1330_v47 = vcombine.high %v395_v41, %v403_v42  ;;  %v1332_v48 = vcombine.high %v396_v43, %v404_v44  ;;  %v427_v57 = vld [vmem:[%s1663_s29 + $0x220] sm:$0xff]  ;;  %v421_v28 = vld [vmem:[%s1663_s29 + $0x1f0] sm:$0xff]  ;;  %v430_v36 = vld [vmem:[%s1663_s29 + $0x238] sm:$0xff] }
  0x53   : > { %v843_v9 = vsel %vm811_vm0, %v1363_v1, 0  ;;  %v1350_v33 = vcombine.high %v413_v27, %v421_v28  ;;  %v429_v35 = vld [vmem:[%s1663_s29 + $0x230] sm:$0xff] }
  0x54   : > { %869 = vmatpush1.bf16.msra.mxu0 %v813_v51  ;;  %910 = vmatpush1.bf16.msra.mxu1 %v819_v53  ;;  %v412_v51 = vld [vmem:[%s1663_s29 + $0x1a8] sm:$0xff]  ;;  %v1329_v53 = vcombine.low %v395_v41, %v403_v42  ;;  %v1367_v41 = vcombine.low %v430_v36, %v430_v36 }
  0x55   : > { %942 = vmatprep.subr.bf16.mxu0 %v1294_v52  ;;  %983 = vmatprep.subr.bf16.mxu1 %v1296_v54  ;;  %v420_v52 = vld [vmem:[%s1663_s29 + $0x1e8] sm:$0xff]  ;;  %v1331_v54 = vcombine.low %v396_v43, %v404_v44  ;;  %v431_v44 = vld [vmem:[%s1785_s9] sm:$0xff] }
  0x56   : > { %v1348_v56 = vcombine.high %v412_v51, %v420_v52  ;;  %v855_v43 = vsel %vm811_vm0, %v1367_v41, 0 }
  0x57   : > { %1370 = vmatmul.mubr.msk.bf16.vlgmr.msra.gmra.mrb[0].mxu0 %vm807_vm1, %v1698_v59  ;;  %1372 = vmatmul.mubr.msk.bf16.vlgmr.msra.gmra.mrb[0].mxu1 %vm807_vm1, %v1698_v59 }
  0x58   : > { %943 = vmatpush1.bf16.msra.mxu0 %v1293_v60  ;;  %984 = vmatpush1.bf16.msra.mxu1 %v1295_v61  ;;  %v1345_v60 = vcombine.low %v411_v49, %v419_v50  ;;  %v1347_v61 = vcombine.low %v412_v51, %v420_v52 }
  0x59   : > { %944 = vmatprep.subr.bf16.mxu0 %v1310_v62  ;;  %985 = vmatprep.subr.bf16.mxu1 %v1312_v63  ;;  %v1362_v62 = vcombine.high %v427_v57, %v427_v57  ;;  %v1361_v63 = vcombine.low %v427_v57, %v427_v57 }
  0x5a   : > { %974 = vmatprep.mubr.bf16.mxu0 %v1455_v8  ;;  %1015 = vmatprep.mubr.bf16.mxu1 %v1455_v8 }
  0x5c   : > { %945 = vmatpush1.bf16.msra.mxu0 %v1309_v4  ;;  %986 = vmatpush1.bf16.msra.mxu1 %v1311_v5  ;;  %v366_v4 = vld [vmem:[%s1663_s29 + $0x38] sm:$0xff] }
  0x5d   : > { %946 = vmatprep.subr.bf16.mxu0 %v1326_v6  ;;  %987 = vmatprep.subr.bf16.mxu1 %v1328_v7  ;;  %v374_v5 = vld [vmem:[%s1663_s29 + $0x78] sm:$0xff]  ;;  %v837_v6 = vsel %vm811_vm0, %v1361_v63, 0  ;;  %v1302_v7 = vcombine.high %v365_v2, %v373_v3 }
  0x5e   : > { %v1304_v10 = vcombine.high %v366_v4, %v374_v5 }
  0x60   : > { %947 = vmatpush1.bf16.msra.mxu0 %v1325_v13  ;;  %988 = vmatpush1.bf16.msra.mxu1 %v1327_v14  ;;  %v382_v13 = vld [vmem:[%s1663_s29 + $0xb8] sm:$0xff] }
  0x61   : > { %948 = vmatprep.subr.bf16.mxu0 %v1342_v15  ;;  %989 = vmatprep.subr.bf16.mxu1 %v1344_v16  ;;  %v390_v14 = vld [vmem:[%s1663_s29 + $0xf8] sm:$0xff]  ;;  %v1301_v15 = vcombine.low %v365_v2, %v373_v3  ;;  %v1303_v16 = vcombine.low %v366_v4, %v374_v5 }
  0x62   : > { %v1320_v18 = vcombine.high %v382_v13, %v390_v14  ;;  %v1319_v24 = vcombine.low %v382_v13, %v390_v14  ;;  %v439_v13 = vld [vmem:[%s1785_s9 + $0x40] sm:$0xff]  ;;  %v441_v14 = vld [vmem:[%s1785_s9 + $0x50] sm:$0xff] }
  0x64   : > { %949 = vmatpush1.bf16.msra.mxu0 %v1341_v19  ;;  %990 = vmatpush1.bf16.msra.mxu1 %v1343_v20  ;;  %v397_v19 = vld [vmem:[%s1663_s29 + $0x130] sm:$0xff] }
  0x65   : > { %1373 = vmatprep.subr.msk.bf16.mxu0 %vm811_vm0, %v1358_v21  ;;  %1375 = vmatprep.subr.msk.bf16.mxu1 %vm811_vm0, %v1360_v23  ;;  %v405_v20 = vld [vmem:[%s1663_s29 + $0x170] sm:$0xff]  ;;  %v398_v21 = vld [vmem:[%s1663_s29 + $0x138] sm:$0xff]  ;;  %v1317_v23 = vcombine.low %v381_v11, %v389_v12 }
  0x66   : > { %v1334_v25 = vcombine.high %v397_v19, %v405_v20  ;;  %v1336_v26 = vcombine.high %v398_v21, %v406_v22 }
  0x68   : > { %951 = vmatpush1.bf16.msra.mxu0 %v825_v29  ;;  %992 = vmatpush1.bf16.msra.mxu1 %v831_v31  ;;  %v414_v29 = vld [vmem:[%s1663_s29 + $0x1b8] sm:$0xff]  ;;  %v1333_v31 = vcombine.low %v397_v19, %v405_v20 }
  0x69   : > { %1024 = vmatprep.subr.bf16.mxu0 %v1298_v30  ;;  %1065 = vmatprep.subr.bf16.mxu1 %v1300_v32  ;;  %v422_v30 = vld [vmem:[%s1663_s29 + $0x1f8] sm:$0xff]  ;;  %v1335_v32 = vcombine.low %v398_v21, %v406_v22 }
  0x6a   : > { %v1352_v34 = vcombine.high %v414_v29, %v422_v30 }
  0x6b   : > { %1374 = vmatmul.mubr.msk.bf16.vlgmr.msra.gmra.mrb[4].mxu0 %vm807_vm1, %v1698_v59  ;;  %1376 = vmatmul.mubr.msk.bf16.vlgmr.msra.gmra.mrb[4].mxu1 %vm807_vm1, %v1698_v59 }
  0x6c   : > { %1025 = vmatpush1.bf16.msra.mxu0 %v1297_v37  ;;  %1066 = vmatpush1.bf16.msra.mxu1 %v1299_v38  ;;  %v1349_v37 = vcombine.low %v413_v27, %v421_v28  ;;  %v1351_v38 = vcombine.low %v414_v29, %v422_v30  ;;  %v443_v29 = vld [vmem:[%s1785_s9 + $0x60] sm:$0xff]  ;;  %v445_v30 = vld [vmem:[%s1785_s9 + $0x70] sm:$0xff] }
  0x6d   : > { %1026 = vmatprep.subr.bf16.mxu0 %v1314_v39  ;;  %1067 = vmatprep.subr.bf16.mxu1 %v1316_v40  ;;  %v1366_v39 = vcombine.high %v429_v35, %v429_v35  ;;  %v1365_v40 = vcombine.low %v429_v35, %v429_v35 }
  0x6e   : > { %1056 = vmatprep.mubr.bf16.mxu0 %v1455_v8  ;;  %1097 = vmatprep.mubr.bf16.mxu1 %v1455_v8 }
  0x6f   : > { %v849_v42 = vsel %vm811_vm0, %v1365_v40, 0 }
  0x70   : > { %1027 = vmatpush1.bf16.msra.mxu0 %v1313_v45  ;;  %1068 = vmatpush1.bf16.msra.mxu1 %v1315_v46  ;;  %v433_v45 = vld [vmem:[%s1785_s9 + $0x10] sm:$0xff]  ;;  %v432_v46 = vld [vmem:[%s1785_s9 + $0x8] sm:$0xff] }
  0x71   : > { %1028 = vmatprep.subr.bf16.mxu0 %v1330_v47  ;;  %1069 = vmatprep.subr.bf16.mxu1 %v1332_v48  ;;  %v434_v47 = vld [vmem:[%s1785_s9 + $0x18] sm:$0xff] }
  0x74   : > { %1029 = vmatpush1.bf16.msra.mxu0 %v1329_v53  ;;  %1070 = vmatpush1.bf16.msra.mxu1 %v1331_v54 }
  0x75   : > { %1030 = vmatprep.subr.bf16.mxu0 %v1346_v55  ;;  %1071 = vmatprep.subr.bf16.mxu1 %v1348_v56 }
  0x78   : > { %1031 = vmatpush1.bf16.msra.mxu0 %v1345_v60  ;;  %1072 = vmatpush1.bf16.msra.mxu1 %v1347_v61  ;;  %v435_v60 = vld [vmem:[%s1785_s9 + $0x20] sm:$0xff]  ;;  %v437_v61 = vld [vmem:[%s1785_s9 + $0x30] sm:$0xff] }
  0x79   : > { %1377 = vmatprep.subr.msk.bf16.mxu0 %vm811_vm0, %v1362_v62  ;;  %1379 = vmatprep.subr.msk.bf16.mxu1 %vm811_vm0, %v1364_v0  ;;  %v436_v62 = vld [vmem:[%s1785_s9 + $0x28] sm:$0xff]  ;;  %v438_v0 = vld [vmem:[%s1785_s9 + $0x38] sm:$0xff] }
  0x7c   : > { %1033 = vmatpush1.bf16.msra.mxu0 %v837_v6  ;;  %1074 = vmatpush1.bf16.msra.mxu1 %v843_v9 }
  0x7d   : > { %1106 = vmatprep.subr.bf16.mxu0 %v1302_v7  ;;  %1147 = vmatprep.subr.bf16.mxu1 %v1304_v10 }
  0x7f   : > { %1378 = vmatmul.mubr.msk.bf16.vlgmr.msra.gmra.mrb[8].mxu0 %vm807_vm1, %v1698_v59  ;;  %1380 = vmatmul.mubr.msk.bf16.vlgmr.msra.gmra.mrb[8].mxu1 %vm807_vm1, %v1698_v59 }
  0x80   : > { %1107 = vmatpush1.bf16.msra.mxu0 %v1301_v15  ;;  %1148 = vmatpush1.bf16.msra.mxu1 %v1303_v16  ;;  %v440_v15 = vld [vmem:[%s1785_s9 + $0x48] sm:$0xff] }
  0x81   : > { %1108 = vmatprep.subr.bf16.mxu0 %v1318_v17  ;;  %1149 = vmatprep.subr.bf16.mxu1 %v1320_v18  ;;  %v442_v17 = vld [vmem:[%s1785_s9 + $0x58] sm:$0xff] }
  0x82   : > { %1138 = vmatprep.mubr.bf16.mxu0 %v1455_v8  ;;  %1179 = vmatprep.mubr.bf16.mxu1 %v1455_v8  ;;  %v1368_v8 = vcombine.high %v430_v36, %v430_v36 }
  0x84   : > { %1109 = vmatpush1.bf16.msra.mxu0 %v1317_v23  ;;  %1150 = vmatpush1.bf16.msra.mxu1 %v1319_v24 }
  0x85   : > { %1110 = vmatprep.subr.bf16.mxu0 %v1334_v25  ;;  %1151 = vmatprep.subr.bf16.mxu1 %v1336_v26 }
  0x88   : > { %1111 = vmatpush1.bf16.msra.mxu0 %v1333_v31  ;;  %1152 = vmatpush1.bf16.msra.mxu1 %v1335_v32  ;;  %v444_v31 = vld [vmem:[%s1785_s9 + $0x68] sm:$0xff] }
  0x89   : > { %1112 = vmatprep.subr.bf16.mxu0 %v1350_v33  ;;  %1153 = vmatprep.subr.bf16.mxu1 %v1352_v34  ;;  %v446_v33 = vld [vmem:[%s1785_s9 + $0x78] sm:$0xff] }
  0x8c   : > { %1113 = vmatpush1.bf16.msra.mxu0 %v1349_v37  ;;  %1154 = vmatpush1.bf16.msra.mxu1 %v1351_v38 }
  0x8d   : > { %1381 = vmatprep.subr.msk.bf16.mxu0 %vm811_vm0, %v1366_v39  ;;  %1383 = vmatprep.subr.msk.bf16.mxu1 %vm811_vm0, %v1368_v8 }
  0x90   : > { %1115 = vmatpush1.bf16.msra.mxu0 %v849_v42  ;;  %1156 = vmatpush1.bf16.msra.mxu1 %v855_v43 }
  0x93   : > { %1382 = vmatmul.mubr.msk.bf16.vlgmr.msra.gmra.mrb[12].mxu0 %vm807_vm1, %v1698_v59  ;;  %1384 = vmatmul.mubr.msk.bf16.vlgmr.msra.gmra.mrb[12].mxu1 %vm807_vm1, %v1698_v59 }
 0x12a   : > { %v894_v59 = vpop.f32.mrb[0].mxu0  ;;  %v935_v49 = vpop.f32.mrb[0].mxu1 }
 0x12b   : > { %v895_v48 = vadd.f32 %v894_v59, %v431_v44  ;;  %v896_v50 = vpop.f32.mrb[1].mxu0  ;;  %v936_v51 = vadd.f32 %v935_v49, %v433_v45  ;;  %v937_v53 = vpop.f32.mrb[1].mxu1 }
 0x12c   : > { %v897_v52 = vadd.f32 %v896_v50, %v432_v46  ;;  %v898_v54 = vpop.f32.mrb[2].mxu0  ;;  %v938_v55 = vadd.f32 %v937_v53, %v434_v47  ;;  %v939_v56 = vpop.f32.mrb[2].mxu1 }
 0x12d   : > { %1188 = vst [vmem:[%s1793_s12] sm:$0xff] %v895_v48  ;;  %v899_v57 = vpop.f32.mrb[3].mxu0  ;;  %1190 = vst [vmem:[%s1793_s12 + $0x10] sm:$0xff] %v936_v51  ;;  %v940_v58 = vpop.f32.mrb[3].mxu1 }
 0x12e   : > { %1189 = vst [vmem:[%s1793_s12 + $0x8] sm:$0xff] %v897_v52  ;;  %1191 = vst [vmem:[%s1793_s12 + $0x18] sm:$0xff] %v938_v55 }
 0x13e   : > { %v976_v63 = vpop.f32.mrb[4].mxu0  ;;  %v1017_v2 = vpop.f32.mrb[4].mxu1 }
 0x13f   : > { %v977_v1 = vadd.f32 %v976_v63, %v435_v60  ;;  %v978_v3 = vpop.f32.mrb[5].mxu0  ;;  %v1018_v4 = vadd.f32 %v1017_v2, %v437_v61  ;;  %v1019_v6 = vpop.f32.mrb[5].mxu1 }
 0x140   : > { %v979_v5 = vadd.f32 %v978_v3, %v436_v62  ;;  %v980_v7 = vpop.f32.mrb[6].mxu0  ;;  %v1020_v9 = vadd.f32 %v1019_v6, %v438_v0  ;;  %v1021_v10 = vpop.f32.mrb[6].mxu1 }
 0x141   : > { %1192 = vst [vmem:[%s1793_s12 + $0x20] sm:$0xff] %v977_v1  ;;  %v981_v11 = vpop.f32.mrb[7].mxu0  ;;  %1194 = vst [vmem:[%s1793_s12 + $0x30] sm:$0xff] %v1018_v4  ;;  %v1022_v12 = vpop.f32.mrb[7].mxu1 }
 0x142   : > { %1193 = vst [vmem:[%s1793_s12 + $0x28] sm:$0xff] %v979_v5  ;;  %1195 = vst [vmem:[%s1793_s12 + $0x38] sm:$0xff] %v1020_v9 }
 0x152   : > { %v1058_v16 = vpop.f32.mrb[8].mxu0  ;;  %v1099_v19 = vpop.f32.mrb[8].mxu1 }
 0x153   : > { %v1059_v18 = vadd.f32 %v1058_v16, %v439_v13  ;;  %v1060_v20 = vpop.f32.mrb[9].mxu0  ;;  %v1100_v21 = vadd.f32 %v1099_v19, %v441_v14  ;;  %v1101_v23 = vpop.f32.mrb[9].mxu1 }
 0x154   : > { %v1061_v22 = vadd.f32 %v1060_v20, %v440_v15  ;;  %v1062_v24 = vpop.f32.mrb[10].mxu0  ;;  %v1102_v25 = vadd.f32 %v1101_v23, %v442_v17  ;;  %v1103_v26 = vpop.f32.mrb[10].mxu1 }
 0x155   : > { %1196 = vst [vmem:[%s1793_s12 + $0x40] sm:$0xff] %v1059_v18  ;;  %v1063_v27 = vpop.f32.mrb[11].mxu0  ;;  %1198 = vst [vmem:[%s1793_s12 + $0x50] sm:$0xff] %v1100_v21  ;;  %v1104_v28 = vpop.f32.mrb[11].mxu1 }
 0x156   : > { %1197 = vst [vmem:[%s1793_s12 + $0x48] sm:$0xff] %v1061_v22  ;;  %1199 = vst [vmem:[%s1793_s12 + $0x58] sm:$0xff] %v1102_v25 }
 0x166   : > { %v1140_v32 = vpop.f32.mrb[12].mxu0  ;;  %v1181_v35 = vpop.f32.mrb[12].mxu1 }
 0x167   : > { %v1141_v34 = vadd.f32 %v1140_v32, %v443_v29  ;;  %v1142_v36 = vpop.f32.mrb[13].mxu0  ;;  %v1182_v37 = vadd.f32 %v1181_v35, %v445_v30  ;;  %v1183_v39 = vpop.f32.mrb[13].mxu1 }
 0x168   : > { %v1143_v38 = vadd.f32 %v1142_v36, %v444_v31  ;;  %v1144_v40 = vpop.f32.mrb[14].mxu0  ;;  %v1184_v8 = vadd.f32 %v1183_v39, %v446_v33  ;;  %v1185_v41 = vpop.f32.mrb[14].mxu1 }
 0x169   : > { %1200 = vst [vmem:[%s1793_s12 + $0x60] sm:$0xff] %v1141_v34  ;;  %v1145_v42 = vpop.f32.mrb[15].mxu0  ;;  %1202 = vst [vmem:[%s1793_s12 + $0x70] sm:$0xff] %v1182_v37  ;;  %v1186_v43 = vpop.f32.mrb[15].mxu1 }
 0x16a   : > { %1201 = vst [vmem:[%s1793_s12 + $0x68] sm:$0xff] %v1143_v38  ;;  %1203 = vst [vmem:[%s1793_s12 + $0x78] sm:$0xff] %v1184_v8 }
 0x16b PF: > { %p10_p9 = scmp.ge.s32.totalorder %s1493_s16, 6   ;;  %s1838_s12 = smov %s1449_s13 }
 0x16c   : > { %s1839_s13 = smov %s1502_s19  ;;  %s1840_s14 = smov %s1493_s16 }
 0x16d   :  { %12 = sbr.rel (!%p10_p9) target bundleno = 2 (0x2), region = 93 }

// kernel: _lambda_.10
= control target key start
LH: loop header
LB: loop body
LE: loop exit
PB: predicated region body
PF: predicated region fallthrough
CT: control target
= control target key end

     0   :  { %s1028_s9 = smov 0   ;;  %s1030_s10 = smov 0   ;;  %s1342_s0 = inlined_call_operand.vmem [shape: bf16[32,72], index: 0, kind: input, shape index: {}]   ;;  %s1343_s1 = inlined_call_operand.vmem [shape: bf16[72,2048], index: 1, kind: input, shape index: {}]   ;;  %s1344_s2 = inlined_call_operand.vmem [shape: f32[32,2048], index: 2, kind: output, shape index: {}]  }
   0x1   :  { %s1032_s11 = smov 0  }
   0x2 LB: > { %s882_s12 = sadd.s32 4294967295, %s1010_s11   ;;  %s1045_s13 = sadd.s32 1, %s1010_s11   ;;  %s1010_s11 = sphi %s1032_s11, %s1348_s11   ;;  %s1006_s10 = sphi %s1030_s10, %s1347_s10   ;;  %s1002_s9 = sphi %s1028_s9, %s1346_s9  }
   0x3   : > { %s37_s14 = ssub.s32 %s1010_s11, %s1045_s13  ;;  %s40_s15 = sadd.s32 1, %s1006_s10 }
   0x4   : > { %p38_p0 = scmp.eq.s32.totalorder %s37_s14, 0  ;;  %p47_p1 = scmp.ne.s32.totalorder %s1006_s10, %s1002_s9 }
   0x5   : > { %p48_p2 = scmp.eq.s32.totalorder %s1010_s11, 0  ;;  %p77_p3 = scmp.eq.s32.totalorder %s882_s12, 1 }
   0x6   : > { %s1056_s16 = scalar_select %p38_p0, %s1006_s10, %s40_s15  }
   0x7   : > { %p49_p4 = por %p48_p2, %p47_p1  ;;  %p1058_p5 = por %p77_p3, %p47_p1 }
   0x8   : > { %p885_p6 = scmp.ge.s32.totalorder %s1010_s11, 2 }
   0xa   : > { %102 = sbr.rel (%p885_p6) target bundleno = 40 (0x28), region = 20 }
  0x11   : > { %105 = sbr.rel (!%p49_p4) target bundleno = 40 (0x28), region = 24  ;;  %s107_s18 = sand.u32 (%p49_p4), 1, %s1006_s10  }
  0x12   : > { %s949_s19 = sshll.u32 (%p49_p4), %s1010_s11, 5  ;;  %s951_s20 = smul.u32 (%p49_p4), 288, %s107_s18 }
  0x13   : > { %s1068_s23 = scalar_lea.vmem (%p49_p4), %s1343_s1, %s949_s19 }
  0x14   : > { %v125_v0 = vld [vmem:[%s1068_s23] sm:$0xff] (%p49_p4)  ;;  %v127_v1 = vld [vmem:[%s1068_s23 + $0x8] sm:$0xff] (%p49_p4)  ;;  %v129_v2 = vld [vmem:[%s1068_s23 + $0x10] sm:$0xff] (%p49_p4)  ;;  %s1076_s24 = scalar_lea.vmem (%p49_p4), [#allocation2], %s951_s20 }
  0x15   : > { %v131_v3 = vld [vmem:[%s1068_s23 + $0x18] sm:$0xff] (%p49_p4)  ;;  %v133_v4 = vld [vmem:[%s1068_s23 + $0x40] sm:$0xff] (%p49_p4)  ;;  %v135_v5 = vld [vmem:[%s1068_s23 + $0x48] sm:$0xff] (%p49_p4)  ;;  %126 = vst [vmem:[%s1076_s24] sm:$0xff] (%p49_p4), %v125_v0 }
  0x16   : > { %128 = vst [vmem:[%s1076_s24 + $0x8] sm:$0xff] (%p49_p4), %v127_v1  ;;  %130 = vst [vmem:[%s1076_s24 + $0x10] sm:$0xff] (%p49_p4), %v129_v2  ;;  %v137_v6 = vld [vmem:[%s1068_s23 + $0x50] sm:$0xff] (%p49_p4)  ;;  %v139_v7 = vld [vmem:[%s1068_s23 + $0x58] sm:$0xff] (%p49_p4) }
  0x17   : > { %132 = vst [vmem:[%s1076_s24 + $0x18] sm:$0xff] (%p49_p4), %v131_v3  ;;  %134 = vst [vmem:[%s1076_s24 + $0x20] sm:$0xff] (%p49_p4), %v133_v4  ;;  %v141_v8 = vld [vmem:[%s1068_s23 + $0x80] sm:$0xff] (%p49_p4)  ;;  %v143_v9 = vld [vmem:[%s1068_s23 + $0x88] sm:$0xff] (%p49_p4) }
  0x18   : > { %136 = vst [vmem:[%s1076_s24 + $0x28] sm:$0xff] %v135_v5  ;;  %138 = vst [vmem:[%s1076_s24 + $0x30] sm:$0xff] %v137_v6  ;;  %v145_v10 = vld [vmem:[%s1068_s23 + $0x90] sm:$0xff]  ;;  %v147_v11 = vld [vmem:[%s1068_s23 + $0x98] sm:$0xff] }
  0x19   : > { %140 = vst [vmem:[%s1076_s24 + $0x38] sm:$0xff] %v139_v7  ;;  %142 = vst [vmem:[%s1076_s24 + $0x40] sm:$0xff] %v141_v8  ;;  %v149_v12 = vld [vmem:[%s1068_s23 + $0xc0] sm:$0xff]  ;;  %v151_v13 = vld [vmem:[%s1068_s23 + $0xc8] sm:$0xff] }
  0x1a   : > { %144 = vst [vmem:[%s1076_s24 + $0x48] sm:$0xff] %v143_v9  ;;  %146 = vst [vmem:[%s1076_s24 + $0x50] sm:$0xff] %v145_v10  ;;  %v153_v14 = vld [vmem:[%s1068_s23 + $0xd0] sm:$0xff]  ;;  %v155_v15 = vld [vmem:[%s1068_s23 + $0xd8] sm:$0xff] }
  0x1b   : > { %148 = vst [vmem:[%s1076_s24 + $0x58] sm:$0xff] %v147_v11  ;;  %150 = vst [vmem:[%s1076_s24 + $0x60] sm:$0xff] %v149_v12  ;;  %v157_v16 = vld [vmem:[%s1068_s23 + $0x100] sm:$0xff]  ;;  %v159_v17 = vld [vmem:[%s1068_s23 + $0x108] sm:$0xff] }
  0x1c   : > { %152 = vst [vmem:[%s1076_s24 + $0x68] sm:$0xff] %v151_v13  ;;  %154 = vst [vmem:[%s1076_s24 + $0x70] sm:$0xff] %v153_v14  ;;  %v161_v18 = vld [vmem:[%s1068_s23 + $0x110] sm:$0xff]  ;;  %v163_v19 = vld [vmem:[%s1068_s23 + $0x118] sm:$0xff] }
  0x1d   : > { %156 = vst [vmem:[%s1076_s24 + $0x78] sm:$0xff] %v155_v15  ;;  %158 = vst [vmem:[%s1076_s24 + $0x80] sm:$0xff] %v157_v16  ;;  %v165_v20 = vld [vmem:[%s1068_s23 + $0x140] sm:$0xff]  ;;  %v167_v21 = vld [vmem:[%s1068_s23 + $0x148] sm:$0xff] }
  0x1e   : > { %160 = vst [vmem:[%s1076_s24 + $0x88] sm:$0xff] %v159_v17  ;;  %162 = vst [vmem:[%s1076_s24 + $0x90] sm:$0xff] %v161_v18  ;;  %v169_v22 = vld [vmem:[%s1068_s23 + $0x150] sm:$0xff]  ;;  %v171_v23 = vld [vmem:[%s1068_s23 + $0x158] sm:$0xff] }
  0x1f   : > { %164 = vst [vmem:[%s1076_s24 + $0x98] sm:$0xff] %v163_v19  ;;  %166 = vst [vmem:[%s1076_s24 + $0xa0] sm:$0xff] %v165_v20  ;;  %v173_v24 = vld [vmem:[%s1068_s23 + $0x180] sm:$0xff]  ;;  %v175_v25 = vld [vmem:[%s1068_s23 + $0x188] sm:$0xff] }
  0x20   : > { %168 = vst [vmem:[%s1076_s24 + $0xa8] sm:$0xff] %v167_v21  ;;  %170 = vst [vmem:[%s1076_s24 + $0xb0] sm:$0xff] %v169_v22  ;;  %v177_v26 = vld [vmem:[%s1068_s23 + $0x190] sm:$0xff]  ;;  %v179_v27 = vld [vmem:[%s1068_s23 + $0x198] sm:$0xff] }
  0x21   : > { %172 = vst [vmem:[%s1076_s24 + $0xb8] sm:$0xff] %v171_v23  ;;  %174 = vst [vmem:[%s1076_s24 + $0xc0] sm:$0xff] %v173_v24  ;;  %v181_v28 = vld [vmem:[%s1068_s23 + $0x1c0] sm:$0xff]  ;;  %v183_v29 = vld [vmem:[%s1068_s23 + $0x1c8] sm:$0xff] }
  0x22   : > { %176 = vst [vmem:[%s1076_s24 + $0xc8] sm:$0xff] %v175_v25  ;;  %178 = vst [vmem:[%s1076_s24 + $0xd0] sm:$0xff] %v177_v26  ;;  %v185_v30 = vld [vmem:[%s1068_s23 + $0x1d0] sm:$0xff]  ;;  %v187_v31 = vld [vmem:[%s1068_s23 + $0x1d8] sm:$0xff] }
  0x23   : > { %180 = vst [vmem:[%s1076_s24 + $0xd8] sm:$0xff] %v179_v27  ;;  %182 = vst [vmem:[%s1076_s24 + $0xe0] sm:$0xff] %v181_v28  ;;  %v189_v32 = vld [vmem:[%s1068_s23 + $0x200] sm:$0xff]  ;;  %v191_v33 = vld [vmem:[%s1068_s23 + $0x208] sm:$0xff] }
  0x24   : > { %184 = vst [vmem:[%s1076_s24 + $0xe8] sm:$0xff] %v183_v29  ;;  %186 = vst [vmem:[%s1076_s24 + $0xf0] sm:$0xff] %v185_v30  ;;  %v193_v34 = vld [vmem:[%s1068_s23 + $0x210] sm:$0xff]  ;;  %v195_v35 = vld [vmem:[%s1068_s23 + $0x218] sm:$0xff] }
  0x25   : > { %188 = vst [vmem:[%s1076_s24 + $0xf8] sm:$0xff] %v187_v31  ;;  %190 = vst [vmem:[%s1076_s24 + $0x100] sm:$0xff] %v189_v32 }
  0x26   : > { %192 = vst [vmem:[%s1076_s24 + $0x108] sm:$0xff] %v191_v33  ;;  %194 = vst [vmem:[%s1076_s24 + $0x110] sm:$0xff] %v193_v34 }
  0x27   : > { %196 = vst [vmem:[%s1076_s24 + $0x118] sm:$0xff] %v195_v35 }
  0x28 PF: > { %p888_p7 = scmp.ge.s32.totalorder %s1010_s11, 1  ;;  %p201_p8 = scmp.lt.s32.totalorder %s1010_s11, 3 }
  0x2a   : > { %p202_p9 = pnand %p888_p7, %p201_p8 }
  0x2b   : > { %s208_s25 = sand.u32 (!%p202_p9), 1, %s1002_s9   ;;  %v1012_v36 = vmov (!%p202_p9), 0   ;;  %vm468_vm0 = vcmask (!%p202_p9), 1043456   ;;  %v1184_v21 = vld [vmem:[%s1342_s0] sm:$0xff] (!%p202_p9)   ;;  %vm461_vm1 = vcmask (!%p202_p9), 588800  }
  0x2c   : > { %205 = sbr.rel (%p202_p9) target bundleno = 324 (0x144), region = 47  ;;  %525 = vmatprep.mubr.bf16.mxu0 (!%p202_p9), %v1012_v36  ;;  %578 = vmatprep.mubr.bf16.mxu1 (!%p202_p9), %v1012_v36  ;;  %s889_s4 = sshll.u32 (!%p202_p9), %s208_s25, 8 }
  0x2d   : > { %s952_s26 = smul.u32 (!%p202_p9), 288, %s208_s25  ;;  %s1225_s5 = scalar_lea.vmem (!%p202_p9), [#allocation3], %s889_s4 }
  0x2f   : > { %s1151_s27 = scalar_lea.vmem (!%p202_p9), [#allocation2], %s952_s26 }
  0x30   : > { %v235_v37 = vld [vmem:[%s1151_s27] sm:$0xff] (!%p202_p9)  ;;  %v236_v39 = vld [vmem:[%s1151_s27 + $0x8] sm:$0xff] (!%p202_p9)  ;;  %v237_v11 = vld [vmem:[%s1151_s27 + $0x10] sm:$0xff] (!%p202_p9) }
  0x31   : > { %v239_v38 = vld [vmem:[%s1151_s27 + $0x20] sm:$0xff] (!%p202_p9)  ;;  %v240_v41 = vld [vmem:[%s1151_s27 + $0x28] sm:$0xff] (!%p202_p9)  ;;  %v241_v12 = vld [vmem:[%s1151_s27 + $0x30] sm:$0xff] (!%p202_p9) }
  0x32   : > { %v893_v40 = vcombine.high (!%p202_p9), %v235_v37, %v239_v38  ;;  %v892_v42 = vcombine.low (!%p202_p9), %v235_v37, %v239_v38  ;;  %v243_v43 = vld [vmem:[%s1151_s27 + $0x40] sm:$0xff] (!%p202_p9)  ;;  %v895_v45 = vcombine.high (!%p202_p9), %v236_v39, %v240_v41  ;;  %v894_v46 = vcombine.low (!%p202_p9), %v236_v39, %v240_v41  ;;  %v244_v48 = vld [vmem:[%s1151_s27 + $0x48] sm:$0xff] (!%p202_p9)  ;;  %v238_v13 = vld [vmem:[%s1151_s27 + $0x18] sm:$0xff] (!%p202_p9) }
  0x33   : > { %v247_v44 = vld [vmem:[%s1151_s27 + $0x60] sm:$0xff]  ;;  %v248_v49 = vld [vmem:[%s1151_s27 + $0x68] sm:$0xff]  ;;  %v242_v14 = vld [vmem:[%s1151_s27 + $0x38] sm:$0xff]  ;;  %v897_v16 = vcombine.high %v237_v11, %v241_v12  ;;  %v896_v24 = vcombine.low %v237_v11, %v241_v12  ;;  %s950_s6 = sshll.u32 (%p1058_p5), %s882_s12, 6 }
  0x34   : > { %v901_v47 = vcombine.high %v243_v43, %v247_v44  ;;  %v251_v50 = vld [vmem:[%s1151_s27 + $0x80] sm:$0xff]  ;;  %493 = vmatprep.subr.bf16.mxu0 %v893_v40  ;;  %v903_v51 = vcombine.high %v244_v48, %v248_v49  ;;  %v252_v53 = vld [vmem:[%s1151_s27 + $0x88] sm:$0xff]  ;;  %546 = vmatprep.subr.bf16.mxu1 %v895_v45  ;;  %v900_v55 = vcombine.low %v243_v43, %v247_v44  ;;  %v245_v19 = vld [vmem:[%s1151_s27 + $0x50] sm:$0xff]  ;;  %s1269_s9 = scalar_lea.vmem (%p1058_p5), %s1344_s2, %s950_s6 }
  0x35   : > { %v255_v52 = vld [vmem:[%s1151_s27 + $0xa0] sm:$0xff]  ;;  %v256_v54 = vld [vmem:[%s1151_s27 + $0xa8] sm:$0xff]  ;;  %494 = vmatpush1.bf16.msra.mxu0 %v892_v42  ;;  %547 = vmatpush1.bf16.msra.mxu1 %v894_v46  ;;  %v902_v56 = vcombine.low %v244_v48, %v248_v49  ;;  %v899_v18 = vcombine.high %v238_v13, %v242_v14  ;;  %v249_v20 = vld [vmem:[%s1151_s27 + $0x70] sm:$0xff]  ;;  %v898_v25 = vcombine.low %v238_v13, %v242_v14 }
  0x36   : > { %495 = vmatprep.subr.bf16.mxu0 %v901_v47  ;;  %v909_v57 = vcombine.high %v251_v50, %v255_v52  ;;  %548 = vmatprep.subr.bf16.mxu1 %v903_v51  ;;  %v911_v58 = vcombine.high %v252_v53, %v256_v54  ;;  %v259_v59 = vld [vmem:[%s1151_s27 + $0xc0] sm:$0xff]  ;;  %v260_v61 = vld [vmem:[%s1151_s27 + $0xc8] sm:$0xff]  ;;  %v908_v63 = vcombine.low %v251_v50, %v255_v52  ;;  %v246_v22 = vld [vmem:[%s1151_s27 + $0x58] sm:$0xff] }
  0x37   : > { %v263_v60 = vld [vmem:[%s1151_s27 + $0xe0] sm:$0xff]  ;;  %v264_v62 = vld [vmem:[%s1151_s27 + $0xe8] sm:$0xff]  ;;  %v910_v0 = vcombine.low %v252_v53, %v256_v54  ;;  %v250_v23 = vld [vmem:[%s1151_s27 + $0x78] sm:$0xff]  ;;  %v905_v26 = vcombine.high %v245_v19, %v249_v20  ;;  %v904_v32 = vcombine.low %v245_v19, %v249_v20 }
  0x38   : > { %v917_v1 = vcombine.high %v259_v59, %v263_v60  ;;  %v919_v2 = vcombine.high %v260_v61, %v264_v62  ;;  %v267_v3 = vld [vmem:[%s1151_s27 + $0x100] sm:$0xff]  ;;  %v268_v4 = vld [vmem:[%s1151_s27 + $0x108] sm:$0xff]  ;;  %v916_v5 = vcombine.low %v259_v59, %v263_v60  ;;  %v918_v6 = vcombine.low %v260_v61, %v264_v62  ;;  %v253_v28 = vld [vmem:[%s1151_s27 + $0x90] sm:$0xff] }
  0x39   : > { %496 = vmatpush1.bf16.msra.mxu0 %v900_v55  ;;  %549 = vmatpush1.bf16.msra.mxu1 %v902_v56  ;;  %v925_v7 = vcombine.high %v267_v3, %v267_v3  ;;  %v924_v8 = vcombine.low %v267_v3, %v267_v3  ;;  %v927_v9 = vcombine.high %v268_v4, %v268_v4  ;;  %v257_v29 = vld [vmem:[%s1151_s27 + $0xb0] sm:$0xff]  ;;  %v254_v30 = vld [vmem:[%s1151_s27 + $0x98] sm:$0xff]  ;;  %v983_v39 = vld [vmem:[%s1342_s0 + $0x8] sm:$0xff]  }
  0x3a   : > { %497 = vmatprep.subr.bf16.mxu0 %v909_v57  ;;  %550 = vmatprep.subr.bf16.mxu1 %v911_v58  ;;  %v926_v10 = vcombine.low %v268_v4, %v268_v4  ;;  %v907_v27 = vcombine.high %v246_v22, %v250_v23  ;;  %v258_v31 = vld [vmem:[%s1151_s27 + $0xb8] sm:$0xff]  ;;  %v906_v33 = vcombine.low %v246_v22, %v250_v23  ;;  %v261_v37 = vld [vmem:[%s1151_s27 + $0xd0] sm:$0xff] }
  0x3b   : > { %v470_v15 = vsel %vm468_vm0, %v924_v8, 0  ;;  %v913_v34 = vcombine.high %v253_v28, %v257_v29  ;;  %v915_v35 = vcombine.high %v254_v30, %v258_v31  ;;  %v265_v38 = vld [vmem:[%s1151_s27 + $0xf0] sm:$0xff]  ;;  %v262_v40 = vld [vmem:[%s1151_s27 + $0xd8] sm:$0xff]  ;;  %v912_v42 = vcombine.low %v253_v28, %v257_v29 }
  0x3c   : > { %v476_v17 = vsel %vm468_vm0, %v926_v10, 0  ;;  %v266_v41 = vld [vmem:[%s1151_s27 + $0xf8] sm:$0xff]  ;;  %v914_v43 = vcombine.low %v254_v30, %v258_v31  ;;  %v921_v44 = vcombine.high %v261_v37, %v265_v38  ;;  %v269_v46 = vld [vmem:[%s1151_s27 + $0x110] sm:$0xff]  ;;  %v920_v48 = vcombine.low %v261_v37, %v265_v38 }
  0x3d   : > { %498 = vmatpush1.bf16.msra.mxu0 %v908_v63  ;;  %551 = vmatpush1.bf16.msra.mxu1 %v910_v0  ;;  %v923_v45 = vcombine.high %v262_v40, %v266_v41  ;;  %v270_v47 = vld [vmem:[%s1151_s27 + $0x118] sm:$0xff]  ;;  %v922_v49 = vcombine.low %v262_v40, %v266_v41  ;;  %v929_v50 = vcombine.high %v269_v46, %v269_v46 }
  0x3e   : > { %499 = vmatprep.subr.bf16.mxu0 %v917_v1  ;;  %552 = vmatprep.subr.bf16.mxu1 %v919_v2  ;;  %v928_v51 = vcombine.low %v269_v46, %v269_v46  ;;  %v931_v52 = vcombine.high %v270_v47, %v270_v47  ;;  %v930_v53 = vcombine.low %v270_v47, %v270_v47 }
  0x40   : > { %v482_v54 = vsel %vm468_vm0, %v928_v51, 0  ;;  %v488_v55 = vsel %vm468_vm0, %v930_v53, 0 }
  0x41   : > { %500 = vmatpush1.bf16.msra.mxu0 %v916_v5  ;;  %553 = vmatpush1.bf16.msra.mxu1 %v918_v6 }
  0x42   : > { %932 = vmatprep.subr.msk.bf16.mxu0 %vm468_vm0, %v925_v7  ;;  %935 = vmatprep.subr.msk.bf16.mxu1 %vm468_vm0, %v927_v9 }
  0x45   : > { %502 = vmatpush1.bf16.msra.mxu0 %v470_v15  ;;  %555 = vmatpush1.bf16.msra.mxu1 %v476_v17 }
  0x46   : > { %599 = vmatprep.subr.bf16.mxu0 %v897_v16  ;;  %652 = vmatprep.subr.bf16.mxu1 %v899_v18 }
  0x48   : > { %933 = vmatmul.mubr.msk.bf16.vlgmr.msra.gmra.mrb[0].mxu0 %vm461_vm1, %v1184_v21  ;;  %936 = vmatmul.mubr.msk.bf16.vlgmr.msra.gmra.mrb[0].mxu1 %vm461_vm1, %v1184_v21 }
  0x49   : > { %600 = vmatpush1.bf16.msra.mxu0 %v896_v24  ;;  %653 = vmatpush1.bf16.msra.mxu1 %v898_v25 }
  0x4a   : > { %601 = vmatprep.subr.bf16.mxu0 %v905_v26  ;;  %654 = vmatprep.subr.bf16.mxu1 %v907_v27 }
  0x4b   : > { %535 = vmatprep.mubr.bf16.mxu0 %v1012_v36  ;;  %588 = vmatprep.mubr.bf16.mxu1 %v1012_v36 }
  0x4d   : > { %602 = vmatpush1.bf16.msra.mxu0 %v904_v32  ;;  %655 = vmatpush1.bf16.msra.mxu1 %v906_v33 }
  0x4e   : > { %603 = vmatprep.subr.bf16.mxu0 %v913_v34  ;;  %656 = vmatprep.subr.bf16.mxu1 %v915_v35 }
  0x50   : > { %934 = vmatmul.mubr.msk.bf16.gmra.mrb[4].mxu0 %vm461_vm1, %v983_v39  ;;  %937 = vmatmul.mubr.msk.bf16.gmra.mrb[4].mxu1 %vm461_vm1, %v983_v39 }
  0x51   : > { %604 = vmatpush1.bf16.msra.mxu0 %v912_v42  ;;  %657 = vmatpush1.bf16.msra.mxu1 %v914_v43 }
  0x52   : > { %605 = vmatprep.subr.bf16.mxu0 %v921_v44  ;;  %658 = vmatprep.subr.bf16.mxu1 %v923_v45 }
  0x53   : > { %631 = vmatprep.mubr.bf16.mxu0 %v1012_v36  ;;  %684 = vmatprep.mubr.bf16.mxu1 %v1012_v36 }
  0x55   : > { %606 = vmatpush1.bf16.msra.mxu0 %v920_v48  ;;  %659 = vmatpush1.bf16.msra.mxu1 %v922_v49 }
  0x56   : > { %938 = vmatprep.subr.msk.bf16.mxu0 %vm468_vm0, %v929_v50  ;;  %941 = vmatprep.subr.msk.bf16.mxu1 %vm468_vm0, %v931_v52 }
  0x59   : > { %608 = vmatpush1.bf16.msra.mxu0 %v482_v54  ;;  %661 = vmatpush1.bf16.msra.mxu1 %v488_v55 }
  0x5c   : > { %939 = vmatmul.mubr.msk.bf16.vlgmr.msra.gmra.mrb[8].mxu0 %vm461_vm1, %v1184_v21  ;;  %942 = vmatmul.mubr.msk.bf16.vlgmr.msra.gmra.mrb[8].mxu1 %vm461_vm1, %v1184_v21 }
  0x5d   : > { %641 = vmatprep.mubr.bf16.mxu0 %v1012_v36  ;;  %694 = vmatprep.mubr.bf16.mxu1 %v1012_v36 }
  0x64   : > { %940 = vmatmul.mubr.msk.bf16.gmra.mrb[12].mxu0 %vm461_vm1, %v983_v39  ;;  %943 = vmatmul.mubr.msk.bf16.gmra.mrb[12].mxu1 %vm461_vm1, %v983_v39 }
 0x11b   : > { %v527_v56 = vpop.f32.mrb[0].mxu0  ;;  %v580_v36 = vpop.f32.mrb[0].mxu1 }
 0x11c   : > { %705 = vst [vmem:[%s1225_s5] sm:$0xff] %v527_v56  ;;  %v529_v57 = vpop.f32.mrb[1].mxu0  ;;  %707 = vst [vmem:[%s1225_s5 + $0x10] sm:$0xff] %v580_v36  ;;  %v582_v58 = vpop.f32.mrb[1].mxu1 }
 0x11d   : > { %706 = vst [vmem:[%s1225_s5 + $0x8] sm:$0xff] %v529_v57  ;;  %v531_v59 = vpop.f32.mrb[2].mxu0  ;;  %708 = vst [vmem:[%s1225_s5 + $0x18] sm:$0xff] %v582_v58  ;;  %v584_v60 = vpop.f32.mrb[2].mxu1 }
 0x11e   : > { %713 = vst [vmem:[%s1225_s5 + $0x40] sm:$0xff] %v531_v59  ;;  %v533_v61 = vpop.f32.mrb[3].mxu0  ;;  %715 = vst [vmem:[%s1225_s5 + $0x50] sm:$0xff] %v584_v60  ;;  %v586_v62 = vpop.f32.mrb[3].mxu1 }
 0x11f   : > { %714 = vst [vmem:[%s1225_s5 + $0x48] sm:$0xff] %v533_v61  ;;  %716 = vst [vmem:[%s1225_s5 + $0x58] sm:$0xff] %v586_v62 }
 0x123   : > { %v537_v63 = vpop.f32.mrb[4].mxu0  ;;  %v590_v0 = vpop.f32.mrb[4].mxu1  ;;  %v759_v23 = vld [vmem:[%s1225_s5] sm:$0xff] (%p1058_p5)  ;;  %v763_v25 = vld [vmem:[%s1225_s5 + $0x10] sm:$0xff] (%p1058_p5) }
 0x124   : > { %721 = vst [vmem:[%s1225_s5 + $0x80] sm:$0xff] %v537_v63  ;;  %v539_v1 = vpop.f32.mrb[5].mxu0  ;;  %723 = vst [vmem:[%s1225_s5 + $0x90] sm:$0xff] %v590_v0  ;;  %v592_v2 = vpop.f32.mrb[5].mxu1  ;;  %v761_v24 = vld [vmem:[%s1225_s5 + $0x8] sm:$0xff] (%p1058_p5)  ;;  %v765_v26 = vld [vmem:[%s1225_s5 + $0x18] sm:$0xff] (%p1058_p5) }
 0x125   : > { %722 = vst [vmem:[%s1225_s5 + $0x88] sm:$0xff] %v539_v1  ;;  %v541_v3 = vpop.f32.mrb[6].mxu0  ;;  %724 = vst [vmem:[%s1225_s5 + $0x98] sm:$0xff] %v592_v2  ;;  %v594_v4 = vpop.f32.mrb[6].mxu1  ;;  %v775_v31 = vld [vmem:[%s1225_s5 + $0x40] sm:$0xff] (%p1058_p5)  ;;  %v779_v33 = vld [vmem:[%s1225_s5 + $0x50] sm:$0xff] (%p1058_p5) }
 0x126   : > { %729 = vst [vmem:[%s1225_s5 + $0xc0] sm:$0xff] %v541_v3  ;;  %v543_v5 = vpop.f32.mrb[7].mxu0  ;;  %731 = vst [vmem:[%s1225_s5 + $0xd0] sm:$0xff] %v594_v4  ;;  %v596_v6 = vpop.f32.mrb[7].mxu1  ;;  %v777_v32 = vld [vmem:[%s1225_s5 + $0x48] sm:$0xff] (%p1058_p5)  ;;  %v781_v34 = vld [vmem:[%s1225_s5 + $0x58] sm:$0xff] (%p1058_p5) }
 0x127   : > { %730 = vst [vmem:[%s1225_s5 + $0xc8] sm:$0xff] %v543_v5  ;;  %732 = vst [vmem:[%s1225_s5 + $0xd8] sm:$0xff] %v596_v6 }
 0x128   : > { %760 = vst [vmem:[%s1269_s9] sm:$0xff] (%p1058_p5), %v759_v23  ;;  %762 = vst [vmem:[%s1269_s9 + $0x8] sm:$0xff] (%p1058_p5), %v761_v24 }
 0x129   : > { %764 = vst [vmem:[%s1269_s9 + $0x10] sm:$0xff] (%p1058_p5), %v763_v25  ;;  %766 = vst [vmem:[%s1269_s9 + $0x18] sm:$0xff] (%p1058_p5), %v765_v26 }
 0x12a   : > { %776 = vst [vmem:[%s1269_s9 + $0x80] sm:$0xff] (%p1058_p5), %v775_v31  ;;  %778 = vst [vmem:[%s1269_s9 + $0x88] sm:$0xff] (%p1058_p5), %v777_v32 }
 0x12b   : > { %780 = vst [vmem:[%s1269_s9 + $0x90] sm:$0xff] (%p1058_p5), %v779_v33  ;;  %782 = vst [vmem:[%s1269_s9 + $0x98] sm:$0xff] (%p1058_p5), %v781_v34  ;;  %v791_v40 = vld [vmem:[%s1225_s5 + $0x80] sm:$0xff] (%p1058_p5)  ;;  %v795_v42 = vld [vmem:[%s1225_s5 + $0x90] sm:$0xff] (%p1058_p5) }
 0x12c   : > { %v793_v41 = vld [vmem:[%s1225_s5 + $0x88] sm:$0xff] (%p1058_p5)  ;;  %792 = vst [vmem:[%s1269_s9 + $0x100] sm:$0xff] (%p1058_p5), %v791_v40  ;;  %v797_v43 = vld [vmem:[%s1225_s5 + $0x98] sm:$0xff] (%p1058_p5)  ;;  %796 = vst [vmem:[%s1269_s9 + $0x110] sm:$0xff] (%p1058_p5), %v795_v42 }
 0x12d   : > { %794 = vst [vmem:[%s1269_s9 + $0x108] sm:$0xff] (%p1058_p5), %v793_v41  ;;  %798 = vst [vmem:[%s1269_s9 + $0x118] sm:$0xff] (%p1058_p5), %v797_v43  ;;  %v807_v48 = vld [vmem:[%s1225_s5 + $0xc0] sm:$0xff] (%p1058_p5)  ;;  %v811_v50 = vld [vmem:[%s1225_s5 + $0xd0] sm:$0xff] (%p1058_p5) }
 0x12e   : > { %v809_v49 = vld [vmem:[%s1225_s5 + $0xc8] sm:$0xff] (%p1058_p5)  ;;  %808 = vst [vmem:[%s1269_s9 + $0x180] sm:$0xff] (%p1058_p5), %v807_v48  ;;  %812 = vst [vmem:[%s1269_s9 + $0x190] sm:$0xff] (%p1058_p5), %v811_v50  ;;  %v813_v51 = vld [vmem:[%s1225_s5 + $0xd8] sm:$0xff] (%p1058_p5) }
 0x12f   : > { %v633_v7 = vpop.f32.mrb[8].mxu0  ;;  %v686_v8 = vpop.f32.mrb[8].mxu1  ;;  %810 = vst [vmem:[%s1269_s9 + $0x188] sm:$0xff] (%p1058_p5), %v809_v49  ;;  %814 = vst [vmem:[%s1269_s9 + $0x198] sm:$0xff] (%p1058_p5), %v813_v51 }
 0x130   : > { %709 = vst [vmem:[%s1225_s5 + $0x20] sm:$0xff] %v633_v7  ;;  %v635_v9 = vpop.f32.mrb[9].mxu0  ;;  %711 = vst [vmem:[%s1225_s5 + $0x30] sm:$0xff] %v686_v8  ;;  %v688_v10 = vpop.f32.mrb[9].mxu1 }
 0x131   : > { %710 = vst [vmem:[%s1225_s5 + $0x28] sm:$0xff] %v635_v9  ;;  %v637_v11 = vpop.f32.mrb[10].mxu0  ;;  %712 = vst [vmem:[%s1225_s5 + $0x38] sm:$0xff] %v688_v10  ;;  %v690_v12 = vpop.f32.mrb[10].mxu1 }
 0x132   : > { %717 = vst [vmem:[%s1225_s5 + $0x60] sm:$0xff] %v637_v11  ;;  %v639_v13 = vpop.f32.mrb[11].mxu0  ;;  %719 = vst [vmem:[%s1225_s5 + $0x70] sm:$0xff] %v690_v12  ;;  %v692_v14 = vpop.f32.mrb[11].mxu1 }
 0x133   : > { %718 = vst [vmem:[%s1225_s5 + $0x68] sm:$0xff] %v639_v13  ;;  %720 = vst [vmem:[%s1225_s5 + $0x78] sm:$0xff] %v692_v14 }
 0x135   : > { %743 = sbr.rel (!%p1058_p5) target bundleno = 324 (0x144), region = 55 }
 0x137   : > { %v643_v15 = vpop.f32.mrb[12].mxu0  ;;  %v696_v16 = vpop.f32.mrb[12].mxu1  ;;  %v767_v27 = vld [vmem:[%s1225_s5 + $0x20] sm:$0xff] (%p1058_p5)  ;;  %v771_v29 = vld [vmem:[%s1225_s5 + $0x30] sm:$0xff] (%p1058_p5) }
 0x138   : > { %725 = vst [vmem:[%s1225_s5 + $0xa0] sm:$0xff] %v643_v15  ;;  %v645_v17 = vpop.f32.mrb[13].mxu0  ;;  %727 = vst [vmem:[%s1225_s5 + $0xb0] sm:$0xff] %v696_v16  ;;  %v698_v18 = vpop.f32.mrb[13].mxu1  ;;  %v769_v28 = vld [vmem:[%s1225_s5 + $0x28] sm:$0xff] (%p1058_p5)  ;;  %v773_v30 = vld [vmem:[%s1225_s5 + $0x38] sm:$0xff] (%p1058_p5) }
 0x139   : > { %726 = vst [vmem:[%s1225_s5 + $0xa8] sm:$0xff] %v645_v17  ;;  %v647_v19 = vpop.f32.mrb[14].mxu0  ;;  %728 = vst [vmem:[%s1225_s5 + $0xb8] sm:$0xff] %v698_v18  ;;  %v700_v20 = vpop.f32.mrb[14].mxu1  ;;  %v783_v35 = vld [vmem:[%s1225_s5 + $0x60] sm:$0xff] (%p1058_p5)  ;;  %v787_v38 = vld [vmem:[%s1225_s5 + $0x70] sm:$0xff] (%p1058_p5) }
 0x13a   : > { %733 = vst [vmem:[%s1225_s5 + $0xe0] sm:$0xff] %v647_v19  ;;  %v649_v21 = vpop.f32.mrb[15].mxu0  ;;  %735 = vst [vmem:[%s1225_s5 + $0xf0] sm:$0xff] %v700_v20  ;;  %v702_v22 = vpop.f32.mrb[15].mxu1  ;;  %v785_v37 = vld [vmem:[%s1225_s5 + $0x68] sm:$0xff] (%p1058_p5)  ;;  %v789_v39 = vld [vmem:[%s1225_s5 + $0x78] sm:$0xff] (%p1058_p5) }
 0x13b   : > { %734 = vst [vmem:[%s1225_s5 + $0xe8] sm:$0xff] %v649_v21  ;;  %736 = vst [vmem:[%s1225_s5 + $0xf8] sm:$0xff] %v702_v22 }
 0x13c   : > { %768 = vst [vmem:[%s1269_s9 + $0x20] sm:$0xff] %v767_v27  ;;  %770 = vst [vmem:[%s1269_s9 + $0x28] sm:$0xff] %v769_v28 }
 0x13d   : > { %772 = vst [vmem:[%s1269_s9 + $0x30] sm:$0xff] %v771_v29  ;;  %774 = vst [vmem:[%s1269_s9 + $0x38] sm:$0xff] %v773_v30 }
 0x13e   : > { %784 = vst [vmem:[%s1269_s9 + $0xa0] sm:$0xff] %v783_v35  ;;  %786 = vst [vmem:[%s1269_s9 + $0xa8] sm:$0xff] %v785_v37 }
 0x13f   : > { %788 = vst [vmem:[%s1269_s9 + $0xb0] sm:$0xff] %v787_v38  ;;  %790 = vst [vmem:[%s1269_s9 + $0xb8] sm:$0xff] %v789_v39  ;;  %v799_v44 = vld [vmem:[%s1225_s5 + $0xa0] sm:$0xff]  ;;  %v803_v46 = vld [vmem:[%s1225_s5 + $0xb0] sm:$0xff] }
 0x140   : > { %800 = vst [vmem:[%s1269_s9 + $0x120] sm:$0xff] %v799_v44  ;;  %v801_v45 = vld [vmem:[%s1225_s5 + $0xa8] sm:$0xff]  ;;  %v805_v47 = vld [vmem:[%s1225_s5 + $0xb8] sm:$0xff]  ;;  %804 = vst [vmem:[%s1269_s9 + $0x130] sm:$0xff] %v803_v46 }
 0x141   : > { %802 = vst [vmem:[%s1269_s9 + $0x128] sm:$0xff] %v801_v45  ;;  %806 = vst [vmem:[%s1269_s9 + $0x138] sm:$0xff] %v805_v47  ;;  %v815_v52 = vld [vmem:[%s1225_s5 + $0xe0] sm:$0xff]  ;;  %v819_v54 = vld [vmem:[%s1225_s5 + $0xf0] sm:$0xff] }
 0x142   : > { %v817_v53 = vld [vmem:[%s1225_s5 + $0xe8] sm:$0xff]  ;;  %816 = vst [vmem:[%s1269_s9 + $0x1a0] sm:$0xff] %v815_v52  ;;  %v821_v55 = vld [vmem:[%s1225_s5 + $0xf8] sm:$0xff]  ;;  %820 = vst [vmem:[%s1269_s9 + $0x1b0] sm:$0xff] %v819_v54 }
 0x143   : > { %818 = vst [vmem:[%s1269_s9 + $0x1a8] sm:$0xff] %v817_v53  ;;  %822 = vst [vmem:[%s1269_s9 + $0x1b8] sm:$0xff] %v821_v55 }
 0x144 PF: > { %p9_p10 = scmp.ge.s32.totalorder %s1045_s13, 4   ;;  %s1346_s9 = smov %s1006_s10 }
 0x145   : > { %s1347_s10 = smov %s1056_s16  ;;  %s1348_s11 = smov %s1045_s13 }
 0x146   :  { %11 = sbr.rel (!%p9_p10) target bundleno = 2 (0x2), region = 109 }

// kernel: _lambda_.11
= control target key start
LH: loop header
LB: loop body
LE: loop exit
PB: predicated region body
PF: predicated region fallthrough
CT: control target
= control target key end

     0   :  { %s1354_s12 = smov 0   ;;  %s1356_s13 = smov 0   ;;  %s1745_s0 = inlined_call_operand.vmem [shape: bf16[16,144], index: 0, kind: input, shape index: {}]   ;;  %s1746_s1 = inlined_call_operand.vmem [shape: bf16[144,2048], index: 1, kind: input, shape index: {}]   ;;  %s1747_s2 = inlined_call_operand.vmem [shape: f32[16,2048], index: 2, kind: input, shape index: {}]   ;;  %s1748_s3 = inlined_call_operand.vmem [shape: f32[16,2048], index: 3, kind: output, shape index: {}]  }
   0x1   :  { %s1358_s14 = smov 0  }
   0x2 LB: > { %s1183_s15 = sadd.s32 4294967295, %s1332_s14   ;;  %s1371_s16 = sadd.s32 1, %s1332_s14   ;;  %s1332_s14 = sphi %s1358_s14, %s1753_s14   ;;  %s1328_s13 = sphi %s1356_s13, %s1752_s13   ;;  %s1324_s12 = sphi %s1354_s12, %s1751_s12  }
   0x3   : > { %s38_s17 = ssub.s32 %s1332_s14, %s1371_s16  ;;  %s41_s18 = sadd.s32 1, %s1328_s13 }
   0x4   : > { %p39_p0 = scmp.eq.s32.totalorder %s38_s17, 0  ;;  %p48_p1 = scmp.ne.s32.totalorder %s1328_s13, %s1324_s12 }
   0x5   : > { %p49_p2 = scmp.eq.s32.totalorder %s1332_s14, 0  ;;  %p104_p3 = scmp.eq.s32.totalorder %s1183_s15, 1 }
   0x6   : > { %s1382_s19 = scalar_select %p39_p0, %s1328_s13, %s41_s18  }
   0x7   : > { %p1384_p4 = por %p49_p2, %p48_p1  ;;  %p1388_p5 = por %p104_p3, %p48_p1 }
   0x8   : > { %p1186_p6 = scmp.ge.s32.totalorder %s1332_s14, 2 }
   0xa   : > { %129 = sbr.rel (%p1186_p6) target bundleno = 70 (0x46), region = 20 }
  0x11   : > { %132 = sbr.rel (!%p1384_p4) target bundleno = 58 (0x3a), region = 24  ;;  %s134_s22 = sand.u32 (%p1384_p4), 1, %s1328_s13  }
  0x12   : > { %s1278_s23 = sshll.u32 (%p1384_p4), %s1332_s14, 5  ;;  %s1281_s24 = smul.u32 (%p1384_p4), 576, %s134_s22 }
  0x13   : > { %s1400_s27 = scalar_lea.vmem (%p1384_p4), %s1746_s1, %s1278_s23 }
  0x14   : > { %v152_v0 = vld [vmem:[%s1400_s27] sm:$0xff] (%p1384_p4)  ;;  %v154_v1 = vld [vmem:[%s1400_s27 + $0x8] sm:$0xff] (%p1384_p4)  ;;  %v156_v2 = vld [vmem:[%s1400_s27 + $0x10] sm:$0xff] (%p1384_p4)  ;;  %s1408_s28 = scalar_lea.vmem (%p1384_p4), [#allocation2], %s1281_s24 }
  0x15   : > { %v158_v3 = vld [vmem:[%s1400_s27 + $0x18] sm:$0xff] (%p1384_p4)  ;;  %v160_v4 = vld [vmem:[%s1400_s27 + $0x40] sm:$0xff] (%p1384_p4)  ;;  %v162_v5 = vld [vmem:[%s1400_s27 + $0x48] sm:$0xff] (%p1384_p4)  ;;  %153 = vst [vmem:[%s1408_s28] sm:$0xff] (%p1384_p4), %v152_v0 }
  0x16   : > { %155 = vst [vmem:[%s1408_s28 + $0x8] sm:$0xff] (%p1384_p4), %v154_v1  ;;  %157 = vst [vmem:[%s1408_s28 + $0x10] sm:$0xff] (%p1384_p4), %v156_v2  ;;  %v164_v6 = vld [vmem:[%s1400_s27 + $0x50] sm:$0xff] (%p1384_p4)  ;;  %v166_v7 = vld [vmem:[%s1400_s27 + $0x58] sm:$0xff] (%p1384_p4) }
  0x17   : > { %159 = vst [vmem:[%s1408_s28 + $0x18] sm:$0xff] (%p1384_p4), %v158_v3  ;;  %161 = vst [vmem:[%s1408_s28 + $0x20] sm:$0xff] (%p1384_p4), %v160_v4  ;;  %v168_v8 = vld [vmem:[%s1400_s27 + $0x80] sm:$0xff] (%p1384_p4)  ;;  %v170_v9 = vld [vmem:[%s1400_s27 + $0x88] sm:$0xff] (%p1384_p4) }
  0x18   : > { %163 = vst [vmem:[%s1408_s28 + $0x28] sm:$0xff] %v162_v5  ;;  %165 = vst [vmem:[%s1408_s28 + $0x30] sm:$0xff] %v164_v6  ;;  %v172_v10 = vld [vmem:[%s1400_s27 + $0x90] sm:$0xff]  ;;  %v174_v11 = vld [vmem:[%s1400_s27 + $0x98] sm:$0xff] }
  0x19   : > { %167 = vst [vmem:[%s1408_s28 + $0x38] sm:$0xff] %v166_v7  ;;  %169 = vst [vmem:[%s1408_s28 + $0x40] sm:$0xff] %v168_v8  ;;  %v176_v12 = vld [vmem:[%s1400_s27 + $0xc0] sm:$0xff]  ;;  %v178_v13 = vld [vmem:[%s1400_s27 + $0xc8] sm:$0xff] }
  0x1a   : > { %171 = vst [vmem:[%s1408_s28 + $0x48] sm:$0xff] %v170_v9  ;;  %173 = vst [vmem:[%s1408_s28 + $0x50] sm:$0xff] %v172_v10  ;;  %v180_v14 = vld [vmem:[%s1400_s27 + $0xd0] sm:$0xff]  ;;  %v182_v15 = vld [vmem:[%s1400_s27 + $0xd8] sm:$0xff] }
  0x1b   : > { %175 = vst [vmem:[%s1408_s28 + $0x58] sm:$0xff] %v174_v11  ;;  %177 = vst [vmem:[%s1408_s28 + $0x60] sm:$0xff] %v176_v12  ;;  %v184_v16 = vld [vmem:[%s1400_s27 + $0x100] sm:$0xff]  ;;  %v186_v17 = vld [vmem:[%s1400_s27 + $0x108] sm:$0xff] }
  0x1c   : > { %179 = vst [vmem:[%s1408_s28 + $0x68] sm:$0xff] %v178_v13  ;;  %181 = vst [vmem:[%s1408_s28 + $0x70] sm:$0xff] %v180_v14  ;;  %v188_v18 = vld [vmem:[%s1400_s27 + $0x110] sm:$0xff]  ;;  %v190_v19 = vld [vmem:[%s1400_s27 + $0x118] sm:$0xff] }
  0x1d   : > { %183 = vst [vmem:[%s1408_s28 + $0x78] sm:$0xff] %v182_v15  ;;  %185 = vst [vmem:[%s1408_s28 + $0x80] sm:$0xff] %v184_v16  ;;  %v192_v20 = vld [vmem:[%s1400_s27 + $0x140] sm:$0xff]  ;;  %v194_v21 = vld [vmem:[%s1400_s27 + $0x148] sm:$0xff] }
  0x1e   : > { %187 = vst [vmem:[%s1408_s28 + $0x88] sm:$0xff] %v186_v17  ;;  %189 = vst [vmem:[%s1408_s28 + $0x90] sm:$0xff] %v188_v18  ;;  %v196_v22 = vld [vmem:[%s1400_s27 + $0x150] sm:$0xff]  ;;  %v198_v23 = vld [vmem:[%s1400_s27 + $0x158] sm:$0xff] }
  0x1f   : > { %191 = vst [vmem:[%s1408_s28 + $0x98] sm:$0xff] %v190_v19  ;;  %193 = vst [vmem:[%s1408_s28 + $0xa0] sm:$0xff] %v192_v20  ;;  %v200_v24 = vld [vmem:[%s1400_s27 + $0x180] sm:$0xff]  ;;  %v202_v25 = vld [vmem:[%s1400_s27 + $0x188] sm:$0xff] }
  0x20   : > { %195 = vst [vmem:[%s1408_s28 + $0xa8] sm:$0xff] %v194_v21  ;;  %197 = vst [vmem:[%s1408_s28 + $0xb0] sm:$0xff] %v196_v22  ;;  %v204_v26 = vld [vmem:[%s1400_s27 + $0x190] sm:$0xff]  ;;  %v206_v27 = vld [vmem:[%s1400_s27 + $0x198] sm:$0xff] }
  0x21   : > { %199 = vst [vmem:[%s1408_s28 + $0xb8] sm:$0xff] %v198_v23  ;;  %201 = vst [vmem:[%s1408_s28 + $0xc0] sm:$0xff] %v200_v24  ;;  %v208_v28 = vld [vmem:[%s1400_s27 + $0x1c0] sm:$0xff]  ;;  %v210_v29 = vld [vmem:[%s1400_s27 + $0x1c8] sm:$0xff] }
  0x22   : > { %203 = vst [vmem:[%s1408_s28 + $0xc8] sm:$0xff] %v202_v25  ;;  %205 = vst [vmem:[%s1408_s28 + $0xd0] sm:$0xff] %v204_v26  ;;  %v212_v30 = vld [vmem:[%s1400_s27 + $0x1d0] sm:$0xff]  ;;  %v214_v31 = vld [vmem:[%s1400_s27 + $0x1d8] sm:$0xff] }
  0x23   : > { %207 = vst [vmem:[%s1408_s28 + $0xd8] sm:$0xff] %v206_v27  ;;  %209 = vst [vmem:[%s1408_s28 + $0xe0] sm:$0xff] %v208_v28  ;;  %v216_v32 = vld [vmem:[%s1400_s27 + $0x200] sm:$0xff]  ;;  %v218_v33 = vld [vmem:[%s1400_s27 + $0x208] sm:$0xff] }
  0x24   : > { %211 = vst [vmem:[%s1408_s28 + $0xe8] sm:$0xff] %v210_v29  ;;  %213 = vst [vmem:[%s1408_s28 + $0xf0] sm:$0xff] %v212_v30  ;;  %v220_v34 = vld [vmem:[%s1400_s27 + $0x210] sm:$0xff]  ;;  %v222_v35 = vld [vmem:[%s1400_s27 + $0x218] sm:$0xff] }
  0x25   : > { %215 = vst [vmem:[%s1408_s28 + $0xf8] sm:$0xff] %v214_v31  ;;  %217 = vst [vmem:[%s1408_s28 + $0x100] sm:$0xff] %v216_v32  ;;  %v224_v36 = vld [vmem:[%s1400_s27 + $0x240] sm:$0xff]  ;;  %v226_v37 = vld [vmem:[%s1400_s27 + $0x248] sm:$0xff] }
  0x26   : > { %219 = vst [vmem:[%s1408_s28 + $0x108] sm:$0xff] %v218_v33  ;;  %221 = vst [vmem:[%s1408_s28 + $0x110] sm:$0xff] %v220_v34  ;;  %v228_v38 = vld [vmem:[%s1400_s27 + $0x250] sm:$0xff]  ;;  %v230_v39 = vld [vmem:[%s1400_s27 + $0x258] sm:$0xff] }
  0x27   : > { %223 = vst [vmem:[%s1408_s28 + $0x118] sm:$0xff] %v222_v35  ;;  %225 = vst [vmem:[%s1408_s28 + $0x120] sm:$0xff] %v224_v36  ;;  %v232_v40 = vld [vmem:[%s1400_s27 + $0x280] sm:$0xff]  ;;  %v234_v41 = vld [vmem:[%s1400_s27 + $0x288] sm:$0xff] }
  0x28   : > { %227 = vst [vmem:[%s1408_s28 + $0x128] sm:$0xff] %v226_v37  ;;  %229 = vst [vmem:[%s1408_s28 + $0x130] sm:$0xff] %v228_v38  ;;  %v236_v42 = vld [vmem:[%s1400_s27 + $0x290] sm:$0xff]  ;;  %v238_v43 = vld [vmem:[%s1400_s27 + $0x298] sm:$0xff] }
  0x29   : > { %231 = vst [vmem:[%s1408_s28 + $0x138] sm:$0xff] %v230_v39  ;;  %233 = vst [vmem:[%s1408_s28 + $0x140] sm:$0xff] %v232_v40  ;;  %v240_v44 = vld [vmem:[%s1400_s27 + $0x2c0] sm:$0xff]  ;;  %v242_v45 = vld [vmem:[%s1400_s27 + $0x2c8] sm:$0xff] }
  0x2a   : > { %235 = vst [vmem:[%s1408_s28 + $0x148] sm:$0xff] %v234_v41  ;;  %237 = vst [vmem:[%s1408_s28 + $0x150] sm:$0xff] %v236_v42  ;;  %v244_v46 = vld [vmem:[%s1400_s27 + $0x2d0] sm:$0xff]  ;;  %v246_v47 = vld [vmem:[%s1400_s27 + $0x2d8] sm:$0xff] }
  0x2b   : > { %239 = vst [vmem:[%s1408_s28 + $0x158] sm:$0xff] %v238_v43  ;;  %241 = vst [vmem:[%s1408_s28 + $0x160] sm:$0xff] %v240_v44  ;;  %v248_v48 = vld [vmem:[%s1400_s27 + $0x300] sm:$0xff]  ;;  %v250_v49 = vld [vmem:[%s1400_s27 + $0x308] sm:$0xff] }
  0x2c   : > { %243 = vst [vmem:[%s1408_s28 + $0x168] sm:$0xff] %v242_v45  ;;  %245 = vst [vmem:[%s1408_s28 + $0x170] sm:$0xff] %v244_v46  ;;  %v252_v50 = vld [vmem:[%s1400_s27 + $0x310] sm:$0xff]  ;;  %v254_v51 = vld [vmem:[%s1400_s27 + $0x318] sm:$0xff] }
  0x2d   : > { %247 = vst [vmem:[%s1408_s28 + $0x178] sm:$0xff] %v246_v47  ;;  %249 = vst [vmem:[%s1408_s28 + $0x180] sm:$0xff] %v248_v48  ;;  %v256_v52 = vld [vmem:[%s1400_s27 + $0x340] sm:$0xff]  ;;  %v258_v53 = vld [vmem:[%s1400_s27 + $0x348] sm:$0xff] }
  0x2e   : > { %251 = vst [vmem:[%s1408_s28 + $0x188] sm:$0xff] %v250_v49  ;;  %253 = vst [vmem:[%s1408_s28 + $0x190] sm:$0xff] %v252_v50  ;;  %v260_v54 = vld [vmem:[%s1400_s27 + $0x350] sm:$0xff]  ;;  %v262_v55 = vld [vmem:[%s1400_s27 + $0x358] sm:$0xff] }
  0x2f   : > { %255 = vst [vmem:[%s1408_s28 + $0x198] sm:$0xff] %v254_v51  ;;  %257 = vst [vmem:[%s1408_s28 + $0x1a0] sm:$0xff] %v256_v52  ;;  %v264_v56 = vld [vmem:[%s1400_s27 + $0x380] sm:$0xff]  ;;  %v266_v57 = vld [vmem:[%s1400_s27 + $0x388] sm:$0xff] }
  0x30   : > { %259 = vst [vmem:[%s1408_s28 + $0x1a8] sm:$0xff] %v258_v53  ;;  %261 = vst [vmem:[%s1408_s28 + $0x1b0] sm:$0xff] %v260_v54  ;;  %v268_v58 = vld [vmem:[%s1400_s27 + $0x390] sm:$0xff]  ;;  %v270_v59 = vld [vmem:[%s1400_s27 + $0x398] sm:$0xff] }
  0x31   : > { %263 = vst [vmem:[%s1408_s28 + $0x1b8] sm:$0xff] %v262_v55  ;;  %265 = vst [vmem:[%s1408_s28 + $0x1c0] sm:$0xff] %v264_v56  ;;  %v272_v60 = vld [vmem:[%s1400_s27 + $0x3c0] sm:$0xff]  ;;  %v274_v61 = vld [vmem:[%s1400_s27 + $0x3c8] sm:$0xff] }
  0x32   : > { %267 = vst [vmem:[%s1408_s28 + $0x1c8] sm:$0xff] %v266_v57  ;;  %269 = vst [vmem:[%s1408_s28 + $0x1d0] sm:$0xff] %v268_v58  ;;  %v276_v62 = vld [vmem:[%s1400_s27 + $0x3d0] sm:$0xff]  ;;  %v278_v63 = vld [vmem:[%s1400_s27 + $0x3d8] sm:$0xff] }
  0x33   : > { %271 = vst [vmem:[%s1408_s28 + $0x1d8] sm:$0xff] %v270_v59  ;;  %273 = vst [vmem:[%s1408_s28 + $0x1e0] sm:$0xff] %v272_v60  ;;  %v280_v0 = vld [vmem:[%s1400_s27 + $0x400] sm:$0xff]  ;;  %v282_v1 = vld [vmem:[%s1400_s27 + $0x408] sm:$0xff] }
  0x34   : > { %275 = vst [vmem:[%s1408_s28 + $0x1e8] sm:$0xff] %v274_v61  ;;  %277 = vst [vmem:[%s1408_s28 + $0x1f0] sm:$0xff] %v276_v62  ;;  %v284_v2 = vld [vmem:[%s1400_s27 + $0x410] sm:$0xff]  ;;  %v286_v3 = vld [vmem:[%s1400_s27 + $0x418] sm:$0xff] }
  0x35   : > { %279 = vst [vmem:[%s1408_s28 + $0x1f8] sm:$0xff] %v278_v63  ;;  %281 = vst [vmem:[%s1408_s28 + $0x200] sm:$0xff] %v280_v0  ;;  %v288_v4 = vld [vmem:[%s1400_s27 + $0x440] sm:$0xff]  ;;  %v290_v5 = vld [vmem:[%s1400_s27 + $0x448] sm:$0xff] }
  0x36   : > { %283 = vst [vmem:[%s1408_s28 + $0x208] sm:$0xff] %v282_v1  ;;  %285 = vst [vmem:[%s1408_s28 + $0x210] sm:$0xff] %v284_v2  ;;  %v292_v6 = vld [vmem:[%s1400_s27 + $0x450] sm:$0xff]  ;;  %v294_v7 = vld [vmem:[%s1400_s27 + $0x458] sm:$0xff] }
  0x37   : > { %287 = vst [vmem:[%s1408_s28 + $0x218] sm:$0xff] %v286_v3  ;;  %289 = vst [vmem:[%s1408_s28 + $0x220] sm:$0xff] %v288_v4 }
  0x38   : > { %291 = vst [vmem:[%s1408_s28 + $0x228] sm:$0xff] %v290_v5  ;;  %293 = vst [vmem:[%s1408_s28 + $0x230] sm:$0xff] %v292_v6 }
  0x39   : > { %295 = vst [vmem:[%s1408_s28 + $0x238] sm:$0xff] %v294_v7 }
  0x3a PF: > { %301 = sbr.rel (!%p1384_p4) target bundleno = 70 (0x46), region = 47  ;;  %s303_s29 = sand.u32 (%p1384_p4), 1, %s1328_s13  }
  0x3b   : > { %s1279_s30 = sshll.u32 (%p1384_p4), %s1332_s14, 6  ;;  %s1189_s4 = sshll.u32 (%p1384_p4), %s303_s29, 7 }
  0x3c   : > { %s1555_s7 = scalar_lea.vmem (%p1384_p4), %s1747_s2, %s1279_s30  ;;  %s305_s8 = scalar_lea.vmem (%p1384_p4), [#allocation3], %s1189_s4 }
  0x3d   : > { %v321_v8 = vld [vmem:[%s1555_s7] sm:$0xff] (%p1384_p4)  ;;  %v323_v9 = vld [vmem:[%s1555_s7 + $0x8] sm:$0xff] (%p1384_p4)  ;;  %v325_v10 = vld [vmem:[%s1555_s7 + $0x10] sm:$0xff] (%p1384_p4) }
  0x3e   : > { %322 = vst [vmem:[%s305_s8] sm:$0xff] (%p1384_p4), %v321_v8  ;;  %324 = vst [vmem:[%s305_s8 + $0x8] sm:$0xff] (%p1384_p4), %v323_v9  ;;  %v327_v11 = vld [vmem:[%s1555_s7 + $0x18] sm:$0xff] (%p1384_p4)  ;;  %v329_v12 = vld [vmem:[%s1555_s7 + $0x20] sm:$0xff] (%p1384_p4) }
  0x3f   : > { %326 = vst [vmem:[%s305_s8 + $0x10] sm:$0xff] (%p1384_p4), %v325_v10  ;;  %v331_v13 = vld [vmem:[%s1555_s7 + $0x28] sm:$0xff] (%p1384_p4)  ;;  %328 = vst [vmem:[%s305_s8 + $0x18] sm:$0xff] (%p1384_p4), %v327_v11  ;;  %v333_v14 = vld [vmem:[%s1555_s7 + $0x30] sm:$0xff] (%p1384_p4) }
  0x40   : > { %330 = vst [vmem:[%s305_s8 + $0x20] sm:$0xff] (%p1384_p4), %v329_v12  ;;  %332 = vst [vmem:[%s305_s8 + $0x28] sm:$0xff] (%p1384_p4), %v331_v13  ;;  %v335_v15 = vld [vmem:[%s1555_s7 + $0x38] sm:$0xff] (%p1384_p4)  ;;  %v337_v16 = vld [vmem:[%s1555_s7 + $0x80] sm:$0xff] (%p1384_p4) }
  0x41   : > { %334 = vst [vmem:[%s305_s8 + $0x30] sm:$0xff] %v333_v14  ;;  %336 = vst [vmem:[%s305_s8 + $0x38] sm:$0xff] %v335_v15  ;;  %v339_v17 = vld [vmem:[%s1555_s7 + $0x88] sm:$0xff]  ;;  %v341_v18 = vld [vmem:[%s1555_s7 + $0x90] sm:$0xff] }
  0x42   : > { %338 = vst [vmem:[%s305_s8 + $0x40] sm:$0xff] %v337_v16  ;;  %v343_v19 = vld [vmem:[%s1555_s7 + $0x98] sm:$0xff]  ;;  %340 = vst [vmem:[%s305_s8 + $0x48] sm:$0xff] %v339_v17  ;;  %v345_v20 = vld [vmem:[%s1555_s7 + $0xa0] sm:$0xff] }
  0x43   : > { %342 = vst [vmem:[%s305_s8 + $0x50] sm:$0xff] %v341_v18  ;;  %344 = vst [vmem:[%s305_s8 + $0x58] sm:$0xff] %v343_v19  ;;  %v347_v21 = vld [vmem:[%s1555_s7 + $0xa8] sm:$0xff]  ;;  %v349_v22 = vld [vmem:[%s1555_s7 + $0xb0] sm:$0xff] }
  0x44   : > { %346 = vst [vmem:[%s305_s8 + $0x60] sm:$0xff] %v345_v20  ;;  %348 = vst [vmem:[%s305_s8 + $0x68] sm:$0xff] %v347_v21  ;;  %v351_v23 = vld [vmem:[%s1555_s7 + $0xb8] sm:$0xff] }
  0x45   : > { %350 = vst [vmem:[%s305_s8 + $0x70] sm:$0xff] %v349_v22  ;;  %352 = vst [vmem:[%s305_s8 + $0x78] sm:$0xff] %v351_v23 }
  0x46 PF: > { %p1192_p7 = scmp.ge.s32.totalorder %s1332_s14, 1  ;;  %p357_p8 = scmp.lt.s32.totalorder %s1332_s14, 3 }
  0x48   : > { %p358_p9 = pnand %p1192_p7, %p357_p8 }
  0x49   : > { %s364_s9 = sand.u32 (!%p358_p9), 1, %s1324_s12   ;;  %v1579_v24 = vld [vmem:[%s1745_s0 + $0x4] ss:$8 sps:$4 sm:$0xff] (!%p358_p9)   ;;  %vm860_vm0 = vcmask (!%p358_p9), 130048  }
  0x4a   : > { %361 = sbr.rel (%p358_p9) target bundleno = 380 (0x17c), region = 70  ;;  %1269 = vmatprep.mubr.msk.bf16.mxu0 (!%p358_p9), %vm860_vm0, %v1579_v24  ;;  %1270 = vmatprep.mubr.msk.bf16.mxu1 (!%p358_p9), %vm860_vm0, %v1579_v24  ;;  %s1193_s23 = sshll.u32 (!%p358_p9), %s364_s9, 7 }
  0x4b   : > { %s1282_s17 = smul.u32 (!%p358_p9), 576, %s364_s9  ;;  %s1676_s24 = scalar_lea.vmem (!%p358_p9), [#allocation3], %s1193_s23 }
  0x4c   : > { %s1686_s12 = scalar_lea.vmem (!%p358_p9), [#allocation4], %s1193_s23 }
  0x4d   : > { %s1587_s18 = scalar_lea.vmem (!%p358_p9), [#allocation2], %s1282_s17 }
  0x4e   : > { %v403_v25 = vld [vmem:[%s1587_s18] sm:$0xff] (!%p358_p9)  ;;  %v404_v27 = vld [vmem:[%s1587_s18 + $0x8] sm:$0xff] (!%p358_p9) }
  0x4f   : > { %v407_v26 = vld [vmem:[%s1587_s18 + $0x20] sm:$0xff] (!%p358_p9)  ;;  %v408_v29 = vld [vmem:[%s1587_s18 + $0x28] sm:$0xff] (!%p358_p9) }
  0x50   : > { %v1198_v28 = vcombine.high (!%p358_p9), %v403_v25, %v407_v26  ;;  %v1197_v30 = vcombine.low (!%p358_p9), %v403_v25, %v407_v26  ;;  %v411_v31 = vld [vmem:[%s1587_s18 + $0x40] sm:$0xff] (!%p358_p9)  ;;  %v1200_v33 = vcombine.high (!%p358_p9), %v404_v27, %v408_v29  ;;  %v1199_v34 = vcombine.low (!%p358_p9), %v404_v27, %v408_v29  ;;  %v412_v36 = vld [vmem:[%s1587_s18 + $0x48] sm:$0xff] (!%p358_p9) }
  0x51   : > { %v415_v32 = vld [vmem:[%s1587_s18 + $0x60] sm:$0xff]  ;;  %v416_v37 = vld [vmem:[%s1587_s18 + $0x68] sm:$0xff]  ;;  %s1280_s25 = sshll.u32 (%p1388_p5), %s1183_s15, 6 }
  0x52   : > { %v1206_v35 = vcombine.high %v411_v31, %v415_v32  ;;  %v419_v38 = vld [vmem:[%s1587_s18 + $0x80] sm:$0xff]  ;;  %864 = vmatprep.subr.bf16.mxu0 %v1198_v28  ;;  %v1208_v39 = vcombine.high %v412_v36, %v416_v37  ;;  %v420_v41 = vld [vmem:[%s1587_s18 + $0x88] sm:$0xff]  ;;  %907 = vmatprep.subr.bf16.mxu1 %v1200_v33  ;;  %v1205_v43 = vcombine.low %v411_v31, %v415_v32  ;;  %v405_v32 = vld [vmem:[%s1587_s18 + $0x10] sm:$0xff]  ;;  %s1061_s21 = scalar_lea.vmem (%p1388_p5), %s1748_s3, %s1280_s25 }
  0x53   : > { %v423_v40 = vld [vmem:[%s1587_s18 + $0xa0] sm:$0xff]  ;;  %v424_v42 = vld [vmem:[%s1587_s18 + $0xa8] sm:$0xff]  ;;  %865 = vmatpush1.bf16.msra.mxu0 %v1197_v30  ;;  %908 = vmatpush1.bf16.msra.mxu1 %v1199_v34  ;;  %v1207_v44 = vcombine.low %v412_v36, %v416_v37  ;;  %v409_v33 = vld [vmem:[%s1587_s18 + $0x30] sm:$0xff] }
  0x54   : > { %866 = vmatprep.subr.bf16.mxu0 %v1206_v35  ;;  %v1214_v45 = vcombine.high %v419_v38, %v423_v40  ;;  %909 = vmatprep.subr.bf16.mxu1 %v1208_v39  ;;  %v1216_v46 = vcombine.high %v420_v41, %v424_v42  ;;  %v427_v47 = vld [vmem:[%s1587_s18 + $0xc0] sm:$0xff]  ;;  %v428_v49 = vld [vmem:[%s1587_s18 + $0xc8] sm:$0xff]  ;;  %v1213_v51 = vcombine.low %v419_v38, %v423_v40  ;;  %v406_v34 = vld [vmem:[%s1587_s18 + $0x18] sm:$0xff] }
  0x55   : > { %v431_v48 = vld [vmem:[%s1587_s18 + $0xe0] sm:$0xff]  ;;  %v432_v50 = vld [vmem:[%s1587_s18 + $0xe8] sm:$0xff]  ;;  %v1215_v52 = vcombine.low %v420_v41, %v424_v42  ;;  %v410_v35 = vld [vmem:[%s1587_s18 + $0x38] sm:$0xff]  ;;  %v1202_v38 = vcombine.high %v405_v32, %v409_v33 }
  0x56   : > { %v1222_v53 = vcombine.high %v427_v47, %v431_v48  ;;  %v1224_v54 = vcombine.high %v428_v49, %v432_v50  ;;  %v435_v55 = vld [vmem:[%s1587_s18 + $0x100] sm:$0xff]  ;;  %v436_v57 = vld [vmem:[%s1587_s18 + $0x108] sm:$0xff]  ;;  %v1221_v59 = vcombine.low %v427_v47, %v431_v48  ;;  %v1223_v60 = vcombine.low %v428_v49, %v432_v50  ;;  %v413_v40 = vld [vmem:[%s1587_s18 + $0x50] sm:$0xff] }
  0x57   : > { %867 = vmatpush1.bf16.msra.mxu0 %v1205_v43  ;;  %910 = vmatpush1.bf16.msra.mxu1 %v1207_v44  ;;  %v439_v56 = vld [vmem:[%s1587_s18 + $0x120] sm:$0xff]  ;;  %v440_v58 = vld [vmem:[%s1587_s18 + $0x128] sm:$0xff]  ;;  %v1204_v39 = vcombine.high %v406_v34, %v410_v35  ;;  %v417_v41 = vld [vmem:[%s1587_s18 + $0x70] sm:$0xff] }
  0x58   : > { %868 = vmatprep.subr.bf16.mxu0 %v1214_v45  ;;  %911 = vmatprep.subr.bf16.mxu1 %v1216_v46  ;;  %v1230_v61 = vcombine.high %v435_v55, %v439_v56  ;;  %v1232_v62 = vcombine.high %v436_v57, %v440_v58  ;;  %v443_v63 = vld [vmem:[%s1587_s18 + $0x140] sm:$0xff]  ;;  %v444_v1 = vld [vmem:[%s1587_s18 + $0x148] sm:$0xff]  ;;  %v1229_v3 = vcombine.low %v435_v55, %v439_v56  ;;  %v414_v43 = vld [vmem:[%s1587_s18 + $0x58] sm:$0xff] }
  0x59   : > { %v447_v0 = vld [vmem:[%s1587_s18 + $0x160] sm:$0xff]  ;;  %v448_v2 = vld [vmem:[%s1587_s18 + $0x168] sm:$0xff]  ;;  %v1231_v4 = vcombine.low %v436_v57, %v440_v58  ;;  %v418_v44 = vld [vmem:[%s1587_s18 + $0x78] sm:$0xff]  ;;  %v1201_v45 = vcombine.low %v405_v32, %v409_v33  ;;  %v1203_v46 = vcombine.low %v406_v34, %v410_v35  ;;  %v1210_v47 = vcombine.high %v413_v40, %v417_v41 }
  0x5a   : > { %v1238_v5 = vcombine.high %v443_v63, %v447_v0  ;;  %v1240_v6 = vcombine.high %v444_v1, %v448_v2  ;;  %v451_v7 = vld [vmem:[%s1587_s18 + $0x180] sm:$0xff]  ;;  %v452_v9 = vld [vmem:[%s1587_s18 + $0x188] sm:$0xff]  ;;  %v1237_v11 = vcombine.low %v443_v63, %v447_v0  ;;  %v1239_v12 = vcombine.low %v444_v1, %v448_v2  ;;  %v421_v49 = vld [vmem:[%s1587_s18 + $0x90] sm:$0xff] }
  0x5b   : > { %869 = vmatpush1.bf16.msra.mxu0 %v1213_v51  ;;  %912 = vmatpush1.bf16.msra.mxu1 %v1215_v52  ;;  %v455_v8 = vld [vmem:[%s1587_s18 + $0x1a0] sm:$0xff]  ;;  %v456_v10 = vld [vmem:[%s1587_s18 + $0x1a8] sm:$0xff]  ;;  %v1212_v48 = vcombine.high %v414_v43, %v418_v44  ;;  %v425_v50 = vld [vmem:[%s1587_s18 + $0xb0] sm:$0xff] }
  0x5c   : > { %870 = vmatprep.subr.bf16.mxu0 %v1222_v53  ;;  %913 = vmatprep.subr.bf16.mxu1 %v1224_v54  ;;  %v1246_v13 = vcombine.high %v451_v7, %v455_v8  ;;  %v1248_v14 = vcombine.high %v452_v9, %v456_v10  ;;  %v459_v15 = vld [vmem:[%s1587_s18 + $0x1c0] sm:$0xff]  ;;  %v460_v17 = vld [vmem:[%s1587_s18 + $0x1c8] sm:$0xff]  ;;  %v1245_v19 = vcombine.low %v451_v7, %v455_v8  ;;  %v422_v51 = vld [vmem:[%s1587_s18 + $0x98] sm:$0xff] }
  0x5d   : > { %v463_v16 = vld [vmem:[%s1587_s18 + $0x1e0] sm:$0xff]  ;;  %v464_v18 = vld [vmem:[%s1587_s18 + $0x1e8] sm:$0xff]  ;;  %v1247_v20 = vcombine.low %v452_v9, %v456_v10  ;;  %v426_v52 = vld [vmem:[%s1587_s18 + $0xb8] sm:$0xff]  ;;  %v1209_v53 = vcombine.low %v413_v40, %v417_v41  ;;  %v1211_v54 = vcombine.low %v414_v43, %v418_v44  ;;  %v1218_v55 = vcombine.high %v421_v49, %v425_v50 }
  0x5e   : > { %v1254_v21 = vcombine.high %v459_v15, %v463_v16  ;;  %v1256_v22 = vcombine.high %v460_v17, %v464_v18  ;;  %v467_v23 = vld [vmem:[%s1587_s18 + $0x200] sm:$0xff]  ;;  %v468_v26 = vld [vmem:[%s1587_s18 + $0x208] sm:$0xff]  ;;  %v1253_v28 = vcombine.low %v459_v15, %v463_v16  ;;  %v1255_v29 = vcombine.low %v460_v17, %v464_v18  ;;  %v429_v57 = vld [vmem:[%s1587_s18 + $0xd0] sm:$0xff] }
  0x5f   : > { %871 = vmatpush1.bf16.msra.mxu0 %v1221_v59  ;;  %914 = vmatpush1.bf16.msra.mxu1 %v1223_v60  ;;  %v471_v25 = vld [vmem:[%s1587_s18 + $0x220] sm:$0xff]  ;;  %v472_v27 = vld [vmem:[%s1587_s18 + $0x228] sm:$0xff]  ;;  %v1220_v56 = vcombine.high %v422_v51, %v426_v52  ;;  %v433_v58 = vld [vmem:[%s1587_s18 + $0xf0] sm:$0xff] }
  0x60   : > { %872 = vmatprep.subr.bf16.mxu0 %v1230_v61  ;;  %915 = vmatprep.subr.bf16.mxu1 %v1232_v62  ;;  %v1262_v30 = vcombine.high %v467_v23, %v471_v25  ;;  %v1264_v31 = vcombine.high %v468_v26, %v472_v27  ;;  %v1261_v36 = vcombine.low %v467_v23, %v471_v25  ;;  %v1634_v42 = vld [vmem:[%s1745_s0] ss:$8 sps:$4 sm:$0xff]   ;;  %v430_v59 = vld [vmem:[%s1587_s18 + $0xd8] sm:$0xff]  ;;  %v437_v1 = vld [vmem:[%s1587_s18 + $0x110] sm:$0xff] }
  0x61   : > { %v1263_v37 = vcombine.low %v468_v26, %v472_v27  ;;  %v434_v60 = vld [vmem:[%s1587_s18 + $0xf8] sm:$0xff]  ;;  %v1217_v61 = vcombine.low %v421_v49, %v425_v50  ;;  %v1219_v62 = vcombine.low %v422_v51, %v426_v52  ;;  %v1226_v63 = vcombine.high %v429_v57, %v433_v58  ;;  %v441_v2 = vld [vmem:[%s1587_s18 + $0x130] sm:$0xff]  ;;  %v475_v44 = vld [vmem:[%s1676_s24] sm:$0xff] }
  0x62   : > { %v1228_v0 = vcombine.high %v430_v59, %v434_v60  ;;  %v445_v8 = vld [vmem:[%s1587_s18 + $0x150] sm:$0xff]  ;;  %v446_v10 = vld [vmem:[%s1587_s18 + $0x158] sm:$0xff]  ;;  %v483_v49 = vld [vmem:[%s1676_s24 + $0x40] sm:$0xff] }
  0x63   : > { %873 = vmatpush1.bf16.msra.mxu0 %v1229_v3  ;;  %916 = vmatpush1.bf16.msra.mxu1 %v1231_v4  ;;  %v438_v3 = vld [vmem:[%s1587_s18 + $0x118] sm:$0xff]  ;;  %v449_v9 = vld [vmem:[%s1587_s18 + $0x170] sm:$0xff] }
  0x64   : > { %874 = vmatprep.subr.bf16.mxu0 %v1238_v5  ;;  %917 = vmatprep.subr.bf16.mxu1 %v1240_v6  ;;  %v442_v4 = vld [vmem:[%s1587_s18 + $0x138] sm:$0xff]  ;;  %v1225_v5 = vcombine.low %v429_v57, %v433_v58  ;;  %v1234_v6 = vcombine.high %v437_v1, %v441_v2  ;;  %v453_v16 = vld [vmem:[%s1587_s18 + $0x190] sm:$0xff] }
  0x65   : > { %v1236_v7 = vcombine.high %v438_v3, %v442_v4  ;;  %v457_v17 = vld [vmem:[%s1587_s18 + $0x1b0] sm:$0xff]  ;;  %v454_v18 = vld [vmem:[%s1587_s18 + $0x198] sm:$0xff] }
  0x66   : > { %v461_v25 = vld [vmem:[%s1587_s18 + $0x1d0] sm:$0xff]  ;;  %v462_v27 = vld [vmem:[%s1587_s18 + $0x1d8] sm:$0xff] }
  0x67   : > { %875 = vmatpush1.bf16.msra.mxu0 %v1237_v11  ;;  %918 = vmatpush1.bf16.msra.mxu1 %v1239_v12  ;;  %v450_v11 = vld [vmem:[%s1587_s18 + $0x178] sm:$0xff]  ;;  %v1233_v12 = vcombine.low %v437_v1, %v441_v2  ;;  %v465_v26 = vld [vmem:[%s1587_s18 + $0x1f0] sm:$0xff] }
  0x68   : > { %876 = vmatprep.subr.bf16.mxu0 %v1246_v13  ;;  %919 = vmatprep.subr.bf16.mxu1 %v1248_v14  ;;  %v1235_v13 = vcombine.low %v438_v3, %v442_v4  ;;  %v1242_v14 = vcombine.high %v445_v8, %v449_v9  ;;  %v1244_v15 = vcombine.high %v446_v10, %v450_v11  ;;  %v469_v33 = vld [vmem:[%s1587_s18 + $0x210] sm:$0xff]  ;;  %v470_v35 = vld [vmem:[%s1587_s18 + $0x218] sm:$0xff]  ;;  %v479_v3 = vld [vmem:[%s1676_s24 + $0x20] sm:$0xff] }
  0x69   : > { %v473_v34 = vld [vmem:[%s1587_s18 + $0x230] sm:$0xff]  ;;  %v486_v58 = vld [vmem:[%s1676_s24 + $0x58] sm:$0xff] }
  0x6a   : > { %v1265_v41 = vcombine.low %v469_v33, %v473_v34  ;;  %v485_v52 = vld [vmem:[%s1676_s24 + $0x50] sm:$0xff] }
  0x6b   : > { %877 = vmatpush1.bf16.msra.mxu0 %v1245_v19  ;;  %920 = vmatpush1.bf16.msra.mxu1 %v1247_v20  ;;  %v458_v19 = vld [vmem:[%s1587_s18 + $0x1b8] sm:$0xff]  ;;  %v1241_v20 = vcombine.low %v445_v8, %v449_v9  ;;  %v481_v4 = vld [vmem:[%s1676_s24 + $0x30] sm:$0xff] }
  0x6c   : > { %878 = vmatprep.subr.bf16.mxu0 %v1254_v21  ;;  %921 = vmatprep.subr.bf16.mxu1 %v1256_v22  ;;  %v1243_v21 = vcombine.low %v446_v10, %v450_v11  ;;  %v1250_v22 = vcombine.high %v453_v16, %v457_v17  ;;  %v1252_v23 = vcombine.high %v454_v18, %v458_v19  ;;  %v489_v11 = vld [vmem:[%s1676_s24 + $0x70] sm:$0xff] }
  0x6f   : > { %879 = vmatpush1.bf16.msra.mxu0 %v1253_v28  ;;  %922 = vmatpush1.bf16.msra.mxu1 %v1255_v29  ;;  %v466_v28 = vld [vmem:[%s1587_s18 + $0x1f8] sm:$0xff]  ;;  %v1249_v29 = vcombine.low %v453_v16, %v457_v17 }
  0x70   : > { %880 = vmatprep.subr.bf16.mxu0 %v1262_v30  ;;  %923 = vmatprep.subr.bf16.mxu1 %v1264_v31  ;;  %v1251_v30 = vcombine.low %v454_v18, %v458_v19  ;;  %v1258_v31 = vcombine.high %v461_v25, %v465_v26  ;;  %v1260_v32 = vcombine.high %v462_v27, %v466_v28  ;;  %v490_v17 = vld [vmem:[%s1676_s24 + $0x78] sm:$0xff] }
  0x73   : > { %881 = vmatpush1.bf16.msra.mxu0 %v1261_v36  ;;  %924 = vmatpush1.bf16.msra.mxu1 %v1263_v37  ;;  %v474_v36 = vld [vmem:[%s1587_s18 + $0x238] sm:$0xff]  ;;  %v1257_v37 = vcombine.low %v461_v25, %v465_v26 }
  0x74   : > { %950 = vmatprep.subr.bf16.mxu0 %v1202_v38  ;;  %993 = vmatprep.subr.bf16.mxu1 %v1204_v39  ;;  %v1259_v38 = vcombine.low %v462_v27, %v466_v28  ;;  %v1266_v39 = vcombine.high %v469_v33, %v473_v34  ;;  %v1268_v40 = vcombine.high %v470_v35, %v474_v36 }
  0x75   : > { %v1267_v43 = vcombine.low %v470_v35, %v474_v36 }
  0x76   : > { %897 = vmatmul.mubr.bf16.vlgmr.msra.gmra.mrb[0].mxu0 %v1634_v42  ;;  %940 = vmatmul.mubr.bf16.vlgmr.msra.gmra.mrb[0].mxu1 %v1634_v42 }
  0x77   : > { %951 = vmatpush1.bf16.msra.mxu0 %v1201_v45  ;;  %994 = vmatpush1.bf16.msra.mxu1 %v1203_v46  ;;  %v477_v45 = vld [vmem:[%s1676_s24 + $0x10] sm:$0xff]  ;;  %v476_v46 = vld [vmem:[%s1676_s24 + $0x8] sm:$0xff] }
  0x78   : > { %952 = vmatprep.subr.bf16.mxu0 %v1210_v47  ;;  %995 = vmatprep.subr.bf16.mxu1 %v1212_v48  ;;  %v478_v48 = vld [vmem:[%s1676_s24 + $0x18] sm:$0xff] }
  0x79   : > { %1271 = vmatprep.mubr.msk.bf16.mxu0 %vm860_vm0, %v1579_v24  ;;  %1272 = vmatprep.mubr.msk.bf16.mxu1 %vm860_vm0, %v1579_v24  ;;  %v1227_v24 = vcombine.low %v430_v59, %v434_v60 }
  0x7b   : > { %953 = vmatpush1.bf16.msra.mxu0 %v1209_v53  ;;  %996 = vmatpush1.bf16.msra.mxu1 %v1211_v54  ;;  %v484_v53 = vld [vmem:[%s1676_s24 + $0x48] sm:$0xff] }
  0x7c   : > { %954 = vmatprep.subr.bf16.mxu0 %v1218_v55  ;;  %997 = vmatprep.subr.bf16.mxu1 %v1220_v56 }
  0x7f   : > { %955 = vmatpush1.bf16.msra.mxu0 %v1217_v61  ;;  %998 = vmatpush1.bf16.msra.mxu1 %v1219_v62 }
  0x80   : > { %956 = vmatprep.subr.bf16.mxu0 %v1226_v63  ;;  %999 = vmatprep.subr.bf16.mxu1 %v1228_v0 }
  0x83   : > { %957 = vmatpush1.bf16.msra.mxu0 %v1225_v5  ;;  %1000 = vmatpush1.bf16.msra.mxu1 %v1227_v24  ;;  %v480_v5 = vld [vmem:[%s1676_s24 + $0x28] sm:$0xff] }
  0x84   : > { %958 = vmatprep.subr.bf16.mxu0 %v1234_v6  ;;  %1001 = vmatprep.subr.bf16.mxu1 %v1236_v7  ;;  %v482_v6 = vld [vmem:[%s1676_s24 + $0x38] sm:$0xff]  ;;  %v487_v7 = vld [vmem:[%s1676_s24 + $0x60] sm:$0xff] }
  0x87   : > { %959 = vmatpush1.bf16.msra.mxu0 %v1233_v12  ;;  %1002 = vmatpush1.bf16.msra.mxu1 %v1235_v13  ;;  %v488_v12 = vld [vmem:[%s1676_s24 + $0x68] sm:$0xff] }
  0x88   : > { %960 = vmatprep.subr.bf16.mxu0 %v1242_v14  ;;  %1003 = vmatprep.subr.bf16.mxu1 %v1244_v15 }
  0x8b   : > { %961 = vmatpush1.bf16.msra.mxu0 %v1241_v20  ;;  %1004 = vmatpush1.bf16.msra.mxu1 %v1243_v21 }
  0x8c   : > { %962 = vmatprep.subr.bf16.mxu0 %v1250_v22  ;;  %1005 = vmatprep.subr.bf16.mxu1 %v1252_v23 }
  0x8f   : > { %963 = vmatpush1.bf16.msra.mxu0 %v1249_v29  ;;  %1006 = vmatpush1.bf16.msra.mxu1 %v1251_v30 }
  0x90   : > { %964 = vmatprep.subr.bf16.mxu0 %v1258_v31  ;;  %1007 = vmatprep.subr.bf16.mxu1 %v1260_v32 }
  0x93   : > { %965 = vmatpush1.bf16.msra.mxu0 %v1257_v37  ;;  %1008 = vmatpush1.bf16.msra.mxu1 %v1259_v38 }
  0x94   : > { %966 = vmatprep.subr.bf16.mxu0 %v1266_v39  ;;  %1009 = vmatprep.subr.bf16.mxu1 %v1268_v40 }
  0x97   : > { %967 = vmatpush1.bf16.msra.mxu0 %v1265_v41  ;;  %1010 = vmatpush1.bf16.msra.mxu1 %v1267_v43 }
  0x9a   : > { %983 = vmatmul.mubr.bf16.vlgmr.msra.gmra.mrb[4].mxu0 %v1634_v42  ;;  %1026 = vmatmul.mubr.bf16.vlgmr.msra.gmra.mrb[4].mxu1 %v1634_v42 }
 0x149   : > { %v898_v47 = vpop.f32.mrb[0].mxu0  ;;  %v941_v42 = vpop.f32.mrb[0].mxu1 }
 0x14a   : > { %v899_v50 = vadd.f32 %v898_v47, %v475_v44  ;;  %v900_v51 = vpop.f32.mrb[1].mxu0  ;;  %v942_v54 = vadd.f32 %v941_v42, %v477_v45  ;;  %v943_v56 = vpop.f32.mrb[1].mxu1 }
 0x14b   : > { %v901_v55 = vadd.f32 %v900_v51, %v476_v46  ;;  %v902_v57 = vpop.f32.mrb[2].mxu0  ;;  %v944_v59 = vadd.f32 %v943_v56, %v478_v48  ;;  %v945_v61 = vpop.f32.mrb[2].mxu1 }
 0x14c   : > { %1036 = vst [vmem:[%s1686_s12] sm:$0xff] %v899_v50  ;;  %v903_v60 = vadd.f32 %v902_v57, %v483_v49  ;;  %v904_v62 = vpop.f32.mrb[3].mxu0  ;;  %1038 = vst [vmem:[%s1686_s12 + $0x10] sm:$0xff] %v942_v54  ;;  %v946_v63 = vadd.f32 %v945_v61, %v485_v52  ;;  %v947_v1 = vpop.f32.mrb[3].mxu1 }
 0x14d   : > { %1037 = vst [vmem:[%s1686_s12 + $0x8] sm:$0xff] %v901_v55  ;;  %v905_v0 = vadd.f32 %v904_v62, %v484_v53  ;;  %1039 = vst [vmem:[%s1686_s12 + $0x18] sm:$0xff] %v944_v59  ;;  %v948_v2 = vadd.f32 %v947_v1, %v486_v58 }
 0x14e   : > { %1044 = vst [vmem:[%s1686_s12 + $0x40] sm:$0xff] %v903_v60  ;;  %1046 = vst [vmem:[%s1686_s12 + $0x50] sm:$0xff] %v946_v63 }
 0x14f   : > { %1045 = vst [vmem:[%s1686_s12 + $0x48] sm:$0xff] %v905_v0  ;;  %1047 = vst [vmem:[%s1686_s12 + $0x58] sm:$0xff] %v948_v2 }
 0x153   : > { %v1074_v27 = vld [vmem:[%s1686_s12] sm:$0xff] (%p1388_p5)  ;;  %v1078_v29 = vld [vmem:[%s1686_s12 + $0x10] sm:$0xff] (%p1388_p5) }
 0x154   : > { %v1076_v28 = vld [vmem:[%s1686_s12 + $0x8] sm:$0xff] (%p1388_p5)  ;;  %v1080_v30 = vld [vmem:[%s1686_s12 + $0x18] sm:$0xff] (%p1388_p5)  ;;  %1075 = vst [vmem:[%s1061_s21] sm:$0xff] (%p1388_p5), %v1074_v27  ;;  %1079 = vst [vmem:[%s1061_s21 + $0x10] sm:$0xff] (%p1388_p5), %v1078_v29 }
 0x155   : > { %1077 = vst [vmem:[%s1061_s21 + $0x8] sm:$0xff] (%p1388_p5), %v1076_v28  ;;  %1081 = vst [vmem:[%s1061_s21 + $0x18] sm:$0xff] (%p1388_p5), %v1080_v30  ;;  %v1090_v35 = vld [vmem:[%s1686_s12 + $0x40] sm:$0xff] (%p1388_p5)  ;;  %v1094_v37 = vld [vmem:[%s1686_s12 + $0x50] sm:$0xff] (%p1388_p5) }
 0x156   : > { %1091 = vst [vmem:[%s1061_s21 + $0x80] sm:$0xff] (%p1388_p5), %v1090_v35  ;;  %v1092_v36 = vld [vmem:[%s1686_s12 + $0x48] sm:$0xff] (%p1388_p5)  ;;  %v1096_v38 = vld [vmem:[%s1686_s12 + $0x58] sm:$0xff] (%p1388_p5)  ;;  %1095 = vst [vmem:[%s1061_s21 + $0x90] sm:$0xff] (%p1388_p5), %v1094_v37 }
 0x157   : > { %1093 = vst [vmem:[%s1061_s21 + $0x88] sm:$0xff] (%p1388_p5), %v1092_v36  ;;  %1097 = vst [vmem:[%s1061_s21 + $0x98] sm:$0xff] (%p1388_p5), %v1096_v38 }
 0x16d   : > { %v984_v24 = vpop.f32.mrb[4].mxu0  ;;  %v1027_v9 = vpop.f32.mrb[4].mxu1  ;;  %1058 = sbr.rel (!%p1388_p5) target bundleno = 380 (0x17c), region = 82 }
 0x16e   : > { %v985_v8 = vadd.f32 %v984_v24, %v479_v3  ;;  %v986_v10 = vpop.f32.mrb[5].mxu0  ;;  %v1028_v13 = vadd.f32 %v1027_v9, %v481_v4  ;;  %v1029_v15 = vpop.f32.mrb[5].mxu1 }
 0x16f   : > { %v987_v14 = vadd.f32 %v986_v10, %v480_v5  ;;  %v988_v16 = vpop.f32.mrb[6].mxu0  ;;  %v1030_v18 = vadd.f32 %v1029_v15, %v482_v6  ;;  %v1031_v20 = vpop.f32.mrb[6].mxu1 }
 0x170   : > { %1040 = vst [vmem:[%s1686_s12 + $0x20] sm:$0xff] %v985_v8  ;;  %v989_v19 = vadd.f32 %v988_v16, %v487_v7  ;;  %v990_v21 = vpop.f32.mrb[7].mxu0  ;;  %1042 = vst [vmem:[%s1686_s12 + $0x30] sm:$0xff] %v1028_v13  ;;  %v1032_v22 = vadd.f32 %v1031_v20, %v489_v11  ;;  %v1033_v25 = vpop.f32.mrb[7].mxu1 }
 0x171   : > { %1041 = vst [vmem:[%s1686_s12 + $0x28] sm:$0xff] %v987_v14  ;;  %v991_v23 = vadd.f32 %v990_v21, %v488_v12  ;;  %1043 = vst [vmem:[%s1686_s12 + $0x38] sm:$0xff] %v1030_v18  ;;  %v1034_v26 = vadd.f32 %v1033_v25, %v490_v17 }
 0x172   : > { %1048 = vst [vmem:[%s1686_s12 + $0x60] sm:$0xff] %v989_v19  ;;  %1050 = vst [vmem:[%s1686_s12 + $0x70] sm:$0xff] %v1032_v22 }
 0x173   : > { %1049 = vst [vmem:[%s1686_s12 + $0x68] sm:$0xff] %v991_v23  ;;  %1051 = vst [vmem:[%s1686_s12 + $0x78] sm:$0xff] %v1034_v26 }
 0x177   : > { %v1082_v31 = vld [vmem:[%s1686_s12 + $0x20] sm:$0xff]  ;;  %v1086_v33 = vld [vmem:[%s1686_s12 + $0x30] sm:$0xff] }
 0x178   : > { %v1084_v32 = vld [vmem:[%s1686_s12 + $0x28] sm:$0xff]  ;;  %1083 = vst [vmem:[%s1061_s21 + $0x20] sm:$0xff] %v1082_v31  ;;  %v1088_v34 = vld [vmem:[%s1686_s12 + $0x38] sm:$0xff]  ;;  %1087 = vst [vmem:[%s1061_s21 + $0x30] sm:$0xff] %v1086_v33 }
 0x179   : > { %1085 = vst [vmem:[%s1061_s21 + $0x28] sm:$0xff] %v1084_v32  ;;  %1089 = vst [vmem:[%s1061_s21 + $0x38] sm:$0xff] %v1088_v34  ;;  %v1098_v39 = vld [vmem:[%s1686_s12 + $0x60] sm:$0xff]  ;;  %v1102_v41 = vld [vmem:[%s1686_s12 + $0x70] sm:$0xff] }
 0x17a   : > { %v1100_v40 = vld [vmem:[%s1686_s12 + $0x68] sm:$0xff]  ;;  %1099 = vst [vmem:[%s1061_s21 + $0xa0] sm:$0xff] %v1098_v39  ;;  %1103 = vst [vmem:[%s1061_s21 + $0xb0] sm:$0xff] %v1102_v41  ;;  %v1104_v43 = vld [vmem:[%s1686_s12 + $0x78] sm:$0xff] }
 0x17b   : > { %1101 = vst [vmem:[%s1061_s21 + $0xa8] sm:$0xff] %v1100_v40  ;;  %1105 = vst [vmem:[%s1061_s21 + $0xb8] sm:$0xff] %v1104_v43 }
 0x17c PF: > { %p10_p10 = scmp.ge.s32.totalorder %s1371_s16, 4   ;;  %s1751_s12 = smov %s1328_s13 }
 0x17d   : > { %s1752_s13 = smov %s1382_s19  ;;  %s1753_s14 = smov %s1371_s16 }
 0x17e   :  { %12 = sbr.rel (!%p10_p10) target bundleno = 2 (0x2), region = 144 }

// kernel: _lambda_.12
= control target key start
LH: loop header
LB: loop body
LE: loop exit
PB: predicated region body
PF: predicated region fallthrough
CT: control target
= control target key end

     0   :  { %s778_s9 = smov 0   ;;  %s780_s10 = smov 0   ;;  %s944_s0 = inlined_call_operand.vmem [shape: bf16[64,144], index: 0, kind: input, shape index: {}]   ;;  %s945_s1 = inlined_call_operand.vmem [shape: bf16[144,512], index: 1, kind: input, shape index: {}]   ;;  %s946_s2 = inlined_call_operand.vmem [shape: f32[64,512], index: 2, kind: output, shape index: {}]  }
   0x1   :  { %s782_s11 = smov 0  }
   0x2 LB: > { %s611_s12 = sadd.s32 4294967295, %s761_s11   ;;  %s795_s13 = sadd.s32 1, %s761_s11   ;;  %s761_s11 = sphi %s782_s11, %s950_s11   ;;  %s757_s10 = sphi %s780_s10, %s949_s10   ;;  %s753_s9 = sphi %s778_s9, %s948_s9  }
   0x3   : > { %s37_s14 = ssub.s32 %s761_s11, %s795_s13  ;;  %s40_s15 = sadd.s32 1, %s757_s10 }
   0x4   : > { %p38_p0 = scmp.eq.s32.totalorder %s37_s14, 0  ;;  %p47_p1 = scmp.ne.s32.totalorder %s757_s10, %s753_s9 }
   0x5   : > { %p48_p2 = scmp.eq.s32.totalorder %s761_s11, 0  ;;  %p77_p3 = scmp.eq.s32.totalorder %s611_s12, 1 }
   0x6   : > { %s806_s16 = scalar_select %p38_p0, %s757_s10, %s40_s15  }
   0x7   : > { %p49_p4 = por %p48_p2, %p47_p1  ;;  %p808_p5 = por %p77_p3, %p47_p1 }
   0x8   : > { %p614_p6 = scmp.ge.s32.totalorder %s761_s11, 2 }
   0xa   : > { %102 = sbr.rel (%p614_p6) target bundleno = 30 (0x1e), region = 20 }
  0x11   : > { %105 = sbr.rel (!%p49_p4) target bundleno = 30 (0x1e), region = 24  ;;  %s107_s18 = sand.u32 (%p49_p4), 1, %s757_s10  }
  0x12   : > { %s654_s19 = sshll.u32 (%p49_p4), %s761_s11, 3  ;;  %s674_s20 = smul.u32 (%p49_p4), 144, %s107_s18 }
  0x13   : > { %s818_s23 = scalar_lea.vmem (%p49_p4), %s945_s1, %s654_s19 }
  0x14   : > { %v174_v0 = vld [vmem:[%s818_s23] sm:$0xff] (%p49_p4)  ;;  %v176_v1 = vld [vmem:[%s818_s23 + $0x10] sm:$0xff] (%p49_p4)  ;;  %s109_s24 = scalar_lea.vmem (%p49_p4), [#allocation2], %s674_s20 }
  0x15   : > { %v178_v2 = vld [vmem:[%s818_s23 + $0x20] sm:$0xff] (%p49_p4)  ;;  %v180_v3 = vld [vmem:[%s818_s23 + $0x30] sm:$0xff] (%p49_p4)  ;;  %175 = vst [vmem:[%s109_s24] sm:$0xff] (%p49_p4), %v174_v0  ;;  %177 = vst [vmem:[%s109_s24 + $0x8] sm:$0xff] (%p49_p4), %v176_v1 }
  0x16   : > { %v182_v4 = vld [vmem:[%s818_s23 + $0x40] sm:$0xff] (%p49_p4)  ;;  %v184_v5 = vld [vmem:[%s818_s23 + $0x50] sm:$0xff] (%p49_p4)  ;;  %179 = vst [vmem:[%s109_s24 + $0x10] sm:$0xff] (%p49_p4), %v178_v2  ;;  %181 = vst [vmem:[%s109_s24 + $0x18] sm:$0xff] (%p49_p4), %v180_v3 }
  0x17   : > { %183 = vst [vmem:[%s109_s24 + $0x20] sm:$0xff] (%p49_p4), %v182_v4  ;;  %185 = vst [vmem:[%s109_s24 + $0x28] sm:$0xff] (%p49_p4), %v184_v5  ;;  %v186_v6 = vld [vmem:[%s818_s23 + $0x60] sm:$0xff] (%p49_p4)  ;;  %v188_v7 = vld [vmem:[%s818_s23 + $0x70] sm:$0xff] (%p49_p4) }
  0x18   : > { %v190_v8 = vld [vmem:[%s818_s23 + $0x80] sm:$0xff]  ;;  %187 = vst [vmem:[%s109_s24 + $0x30] sm:$0xff] %v186_v6  ;;  %189 = vst [vmem:[%s109_s24 + $0x38] sm:$0xff] %v188_v7  ;;  %v192_v9 = vld [vmem:[%s818_s23 + $0x90] sm:$0xff] }
  0x19   : > { %191 = vst [vmem:[%s109_s24 + $0x40] sm:$0xff] %v190_v8  ;;  %v194_v10 = vld [vmem:[%s818_s23 + $0xa0] sm:$0xff]  ;;  %v196_v11 = vld [vmem:[%s818_s23 + $0xb0] sm:$0xff]  ;;  %193 = vst [vmem:[%s109_s24 + $0x48] sm:$0xff] %v192_v9 }
  0x1a   : > { %195 = vst [vmem:[%s109_s24 + $0x50] sm:$0xff] %v194_v10  ;;  %197 = vst [vmem:[%s109_s24 + $0x58] sm:$0xff] %v196_v11  ;;  %v198_v12 = vld [vmem:[%s818_s23 + $0xc0] sm:$0xff]  ;;  %v200_v13 = vld [vmem:[%s818_s23 + $0xd0] sm:$0xff] }
  0x1b   : > { %v202_v14 = vld [vmem:[%s818_s23 + $0xe0] sm:$0xff]  ;;  %199 = vst [vmem:[%s109_s24 + $0x60] sm:$0xff] %v198_v12  ;;  %201 = vst [vmem:[%s109_s24 + $0x68] sm:$0xff] %v200_v13  ;;  %v204_v15 = vld [vmem:[%s818_s23 + $0xf0] sm:$0xff] }
  0x1c   : > { %203 = vst [vmem:[%s109_s24 + $0x70] sm:$0xff] %v202_v14  ;;  %v206_v16 = vld [vmem:[%s818_s23 + $0x100] sm:$0xff]  ;;  %v208_v17 = vld [vmem:[%s818_s23 + $0x110] sm:$0xff]  ;;  %205 = vst [vmem:[%s109_s24 + $0x78] sm:$0xff] %v204_v15 }
  0x1d   : > { %207 = vst [vmem:[%s109_s24 + $0x80] sm:$0xff] %v206_v16  ;;  %209 = vst [vmem:[%s109_s24 + $0x88] sm:$0xff] %v208_v17 }
  0x1e PF: > { %p617_p7 = scmp.ge.s32.totalorder %s761_s11, 1  ;;  %p214_p8 = scmp.lt.s32.totalorder %s761_s11, 3 }
  0x20   : > { %p215_p9 = pnand %p617_p7, %p214_p8 }
  0x21   : > { %s221_s25 = sand.u32 (!%p215_p9), 1, %s753_s9   ;;  %vm396_vm0 = vcmask (!%p215_p9), 130048   ;;  %v729_v18 = vld [vmem:[%s944_s0 + $0x4] ss:$8 sps:$4 sm:$0xff] (!%p215_p9)   ;;  %v727_v38 = vld [vmem:[%s944_s0] ss:$8 sps:$4 sm:$0xff] (!%p215_p9)  }
  0x22   : > { %218 = sbr.rel (%p215_p9) target bundleno = 308 (0x134), region = 62  ;;  %v732_v19 = vld [vmem:[%s944_s0 + $0x24] ss:$8 sps:$4 sm:$0xff] (!%p215_p9)   ;;  %645 = vmatprep.mubr.msk.bf16.mxu0 (!%p215_p9), %vm396_vm0, %v729_v18  ;;  %v730_v39 = vld [vmem:[%s944_s0 + $0x20] ss:$8 sps:$4 sm:$0xff] (!%p215_p9)   ;;  %s618_s23 = sshll.u32 (!%p215_p9), %s221_s25, 7 }
  0x23   : > { %s675_s26 = smul.u32 (!%p215_p9), 144, %s221_s25  ;;  %647 = vmatprep.mubr.msk.bf16.mxu1 (!%p215_p9), %vm396_vm0, %v732_v19  ;;  %v733_v40 = vld [vmem:[%s944_s0 + $0x14] ss:$8 sps:$4 sm:$0xff] (!%p215_p9)   ;;  %v737_v42 = vld [vmem:[%s944_s0 + $0x10] ss:$8 sps:$4 sm:$0xff] (!%p215_p9)   ;;  %s893_s24 = scalar_lea.vmem (!%p215_p9), [#allocation3], %s618_s23 }
  0x24   : > { %v735_v41 = vld [vmem:[%s944_s0 + $0x34] ss:$8 sps:$4 sm:$0xff] (!%p215_p9)   ;;  %v738_v43 = vld [vmem:[%s944_s0 + $0x30] ss:$8 sps:$4 sm:$0xff] (!%p215_p9)  }
  0x25   : > { %s850_s3 = scalar_lea.vmem (!%p215_p9), [#allocation2], %s675_s26 }
  0x26   : > { %v700_v20 = vld [vmem:[%s850_s3 + $0x4] ss:$8 sps:$4 sm:$0xff] (!%p215_p9)   ;;  %v702_v21 = vld [vmem:[%s850_s3] ss:$8 sps:$4 sm:$0xff] (!%p215_p9)   ;;  %v703_v22 = vld [vmem:[%s850_s3 + $0x14] ss:$8 sps:$4 sm:$0xff] (!%p215_p9)  }
  0x27   : > { %409 = vmatprep.subr.bf16.mxu0 (!%p215_p9), %v700_v20  ;;  %656 = vmatprep.subr.bf16.mxu1 (!%p215_p9), %v700_v20  ;;  %v705_v23 = vld [vmem:[%s850_s3 + $0x10] ss:$8 sps:$4 sm:$0xff] (!%p215_p9)   ;;  %v706_v24 = vld [vmem:[%s850_s3 + $0x24] ss:$8 sps:$4 sm:$0xff] (!%p215_p9)   ;;  %v708_v25 = vld [vmem:[%s850_s3 + $0x20] ss:$8 sps:$4 sm:$0xff] (!%p215_p9)  }
  0x28   : > { %410 = vmatpush1.bf16.msra.mxu0 (!%p215_p9), %v702_v21  ;;  %665 = vmatpush1.bf16.msra.mxu1 (!%p215_p9), %v702_v21  ;;  %v709_v26 = vld [vmem:[%s850_s3 + $0x34] ss:$8 sps:$4 sm:$0xff] (!%p215_p9)   ;;  %v711_v27 = vld [vmem:[%s850_s3 + $0x30] ss:$8 sps:$4 sm:$0xff] (!%p215_p9)   ;;  %v712_v28 = vld [vmem:[%s850_s3 + $0x44] ss:$8 sps:$4 sm:$0xff] (!%p215_p9)  }
  0x29   : > { %411 = vmatprep.subr.bf16.mxu0 %v703_v22  ;;  %657 = vmatprep.subr.bf16.mxu1 %v703_v22  ;;  %v714_v29 = vld [vmem:[%s850_s3 + $0x40] ss:$8 sps:$4 sm:$0xff]   ;;  %v715_v30 = vld [vmem:[%s850_s3 + $0x54] ss:$8 sps:$4 sm:$0xff]   ;;  %v717_v31 = vld [vmem:[%s850_s3 + $0x50] ss:$8 sps:$4 sm:$0xff]  }
  0x2a   : > { %v718_v32 = vld [vmem:[%s850_s3 + $0x64] ss:$8 sps:$4 sm:$0xff]   ;;  %v720_v33 = vld [vmem:[%s850_s3 + $0x60] ss:$8 sps:$4 sm:$0xff]   ;;  %v721_v34 = vld [vmem:[%s850_s3 + $0x74] ss:$8 sps:$4 sm:$0xff]  }
  0x2b   : > { %v723_v35 = vld [vmem:[%s850_s3 + $0x70] ss:$8 sps:$4 sm:$0xff]   ;;  %v724_v36 = vld [vmem:[%s850_s3 + $0x84] ss:$8 sps:$4 sm:$0xff]   ;;  %v726_v37 = vld [vmem:[%s850_s3 + $0x80] ss:$8 sps:$4 sm:$0xff]  }
  0x2c   : > { %412 = vmatpush1.bf16.msra.mxu0 %v705_v23  ;;  %666 = vmatpush1.bf16.msra.mxu1 %v705_v23  ;;  %s655_s9 = sshll.u32 (%p808_p5), %s611_s12, 4 }
  0x2d   : > { %413 = vmatprep.subr.bf16.mxu0 %v706_v24  ;;  %658 = vmatprep.subr.bf16.mxu1 %v706_v24  ;;  %s507_s17 = scalar_lea.vmem (%p808_p5), %s946_s2, %s655_s9 }
  0x30   : > { %414 = vmatpush1.bf16.msra.mxu0 %v708_v25  ;;  %667 = vmatpush1.bf16.msra.mxu1 %v708_v25 }
  0x31   : > { %415 = vmatprep.subr.bf16.mxu0 %v709_v26  ;;  %659 = vmatprep.subr.bf16.mxu1 %v709_v26 }
  0x34   : > { %416 = vmatpush1.bf16.msra.mxu0 %v711_v27  ;;  %668 = vmatpush1.bf16.msra.mxu1 %v711_v27 }
  0x35   : > { %417 = vmatprep.subr.bf16.mxu0 %v712_v28  ;;  %660 = vmatprep.subr.bf16.mxu1 %v712_v28 }
  0x38   : > { %418 = vmatpush1.bf16.msra.mxu0 %v714_v29  ;;  %669 = vmatpush1.bf16.msra.mxu1 %v714_v29 }
  0x39   : > { %419 = vmatprep.subr.bf16.mxu0 %v715_v30  ;;  %661 = vmatprep.subr.bf16.mxu1 %v715_v30 }
  0x3c   : > { %420 = vmatpush1.bf16.msra.mxu0 %v717_v31  ;;  %670 = vmatpush1.bf16.msra.mxu1 %v717_v31 }
  0x3d   : > { %421 = vmatprep.subr.bf16.mxu0 %v718_v32  ;;  %662 = vmatprep.subr.bf16.mxu1 %v718_v32 }
  0x40   : > { %422 = vmatpush1.bf16.msra.mxu0 %v720_v33  ;;  %671 = vmatpush1.bf16.msra.mxu1 %v720_v33 }
  0x41   : > { %423 = vmatprep.subr.bf16.mxu0 %v721_v34  ;;  %663 = vmatprep.subr.bf16.mxu1 %v721_v34 }
  0x44   : > { %424 = vmatpush1.bf16.msra.mxu0 %v723_v35  ;;  %672 = vmatpush1.bf16.msra.mxu1 %v723_v35 }
  0x45   : > { %425 = vmatprep.subr.bf16.mxu0 %v724_v36  ;;  %664 = vmatprep.subr.bf16.mxu1 %v724_v36 }
  0x48   : > { %426 = vmatpush1.bf16.msra.mxu0 %v726_v37  ;;  %673 = vmatpush1.bf16.msra.mxu1 %v726_v37 }
  0x4b   : > { %442 = vmatmul.mubr.bf16.vlgmr.msra.gmra.mrb[0].mxu0 %v727_v38  ;;  %462 = vmatmul.mubr.bf16.vlgmr.msra.gmra.mrb[0].mxu1 %v730_v39 }
  0x4c   : > { %646 = vmatprep.mubr.msk.bf16.mxu0 %vm396_vm0, %v733_v40  ;;  %648 = vmatprep.mubr.msk.bf16.mxu1 %vm396_vm0, %v735_v41 }
  0x53   : > { %452 = vmatmul.mubr.bf16.gmra.mrb[4].mxu0 %v737_v42  ;;  %472 = vmatmul.mubr.bf16.gmra.mrb[4].mxu1 %v738_v43 }
 0x11e   : > { %v443_v44 = vpop.f32.mrb[0].mxu0  ;;  %v463_v45 = vpop.f32.mrb[0].mxu1 }
 0x11f   : > { %482 = vst [vmem:[%s893_s24] sm:$0xff] %v443_v44  ;;  %490 = vst [vmem:[%s893_s24 + $0x40] sm:$0xff] %v463_v45  ;;  %v445_v46 = vpop.f32.mrb[1].mxu0  ;;  %v465_v47 = vpop.f32.mrb[1].mxu1 }
 0x120   : > { %483 = vst [vmem:[%s893_s24 + $0x8] sm:$0xff] %v445_v46  ;;  %491 = vst [vmem:[%s893_s24 + $0x48] sm:$0xff] %v465_v47  ;;  %v447_v48 = vpop.f32.mrb[2].mxu0  ;;  %v467_v49 = vpop.f32.mrb[2].mxu1 }
 0x121   : > { %484 = vst [vmem:[%s893_s24 + $0x10] sm:$0xff] %v447_v48  ;;  %492 = vst [vmem:[%s893_s24 + $0x50] sm:$0xff] %v467_v49  ;;  %v449_v50 = vpop.f32.mrb[3].mxu0  ;;  %v469_v51 = vpop.f32.mrb[3].mxu1 }
 0x122   : > { %485 = vst [vmem:[%s893_s24 + $0x18] sm:$0xff] %v449_v50  ;;  %493 = vst [vmem:[%s893_s24 + $0x58] sm:$0xff] %v469_v51 }
 0x124   : > { %504 = sbr.rel (!%p808_p5) target bundleno = 308 (0x134), region = 70 }
 0x126   : > { %v453_v52 = vpop.f32.mrb[4].mxu0  ;;  %v473_v53 = vpop.f32.mrb[4].mxu1  ;;  %v520_v60 = vld [vmem:[%s893_s24] sm:$0xff] (%p808_p5) }
 0x127   : > { %486 = vst [vmem:[%s893_s24 + $0x20] sm:$0xff] %v453_v52  ;;  %494 = vst [vmem:[%s893_s24 + $0x60] sm:$0xff] %v473_v53  ;;  %v455_v54 = vpop.f32.mrb[5].mxu0  ;;  %v475_v55 = vpop.f32.mrb[5].mxu1  ;;  %v522_v61 = vld [vmem:[%s893_s24 + $0x8] sm:$0xff] (%p808_p5)  ;;  %v536_v4 = vld [vmem:[%s893_s24 + $0x40] sm:$0xff] (%p808_p5) }
 0x128   : > { %487 = vst [vmem:[%s893_s24 + $0x28] sm:$0xff] %v455_v54  ;;  %495 = vst [vmem:[%s893_s24 + $0x68] sm:$0xff] %v475_v55  ;;  %v457_v56 = vpop.f32.mrb[6].mxu0  ;;  %v477_v57 = vpop.f32.mrb[6].mxu1  ;;  %v524_v62 = vld [vmem:[%s893_s24 + $0x10] sm:$0xff] (%p808_p5)  ;;  %v538_v5 = vld [vmem:[%s893_s24 + $0x48] sm:$0xff] (%p808_p5) }
 0x129   : > { %488 = vst [vmem:[%s893_s24 + $0x30] sm:$0xff] %v457_v56  ;;  %496 = vst [vmem:[%s893_s24 + $0x70] sm:$0xff] %v477_v57  ;;  %v459_v58 = vpop.f32.mrb[7].mxu0  ;;  %v479_v59 = vpop.f32.mrb[7].mxu1  ;;  %v526_v63 = vld [vmem:[%s893_s24 + $0x18] sm:$0xff] (%p808_p5)  ;;  %v540_v6 = vld [vmem:[%s893_s24 + $0x50] sm:$0xff] (%p808_p5) }
 0x12a   : > { %489 = vst [vmem:[%s893_s24 + $0x38] sm:$0xff] %v459_v58  ;;  %497 = vst [vmem:[%s893_s24 + $0x78] sm:$0xff] %v479_v59  ;;  %v542_v7 = vld [vmem:[%s893_s24 + $0x58] sm:$0xff] (%p808_p5) }
 0x12b   : > { %521 = vst [vmem:[%s507_s17] sm:$0xff] %v520_v60  ;;  %523 = vst [vmem:[%s507_s17 + $0x8] sm:$0xff] %v522_v61 }
 0x12c   : > { %525 = vst [vmem:[%s507_s17 + $0x20] sm:$0xff] %v524_v62  ;;  %527 = vst [vmem:[%s507_s17 + $0x28] sm:$0xff] %v526_v63 }
 0x12d   : > { %537 = vst [vmem:[%s507_s17 + $0x80] sm:$0xff] %v536_v4  ;;  %539 = vst [vmem:[%s507_s17 + $0x88] sm:$0xff] %v538_v5 }
 0x12e   : > { %v528_v0 = vld [vmem:[%s893_s24 + $0x20] sm:$0xff]  ;;  %541 = vst [vmem:[%s507_s17 + $0xa0] sm:$0xff] %v540_v6  ;;  %543 = vst [vmem:[%s507_s17 + $0xa8] sm:$0xff] %v542_v7 }
 0x12f   : > { %v530_v1 = vld [vmem:[%s893_s24 + $0x28] sm:$0xff]  ;;  %529 = vst [vmem:[%s507_s17 + $0x40] sm:$0xff] %v528_v0  ;;  %v544_v8 = vld [vmem:[%s893_s24 + $0x60] sm:$0xff] }
 0x130   : > { %531 = vst [vmem:[%s507_s17 + $0x48] sm:$0xff] %v530_v1  ;;  %v532_v2 = vld [vmem:[%s893_s24 + $0x30] sm:$0xff]  ;;  %v546_v9 = vld [vmem:[%s893_s24 + $0x68] sm:$0xff]  ;;  %545 = vst [vmem:[%s507_s17 + $0xc0] sm:$0xff] %v544_v8 }
 0x131   : > { %v534_v3 = vld [vmem:[%s893_s24 + $0x38] sm:$0xff]  ;;  %533 = vst [vmem:[%s507_s17 + $0x60] sm:$0xff] %v532_v2  ;;  %v548_v10 = vld [vmem:[%s893_s24 + $0x70] sm:$0xff]  ;;  %547 = vst [vmem:[%s507_s17 + $0xc8] sm:$0xff] %v546_v9 }
 0x132   : > { %535 = vst [vmem:[%s507_s17 + $0x68] sm:$0xff] %v534_v3  ;;  %549 = vst [vmem:[%s507_s17 + $0xe0] sm:$0xff] %v548_v10  ;;  %v550_v11 = vld [vmem:[%s893_s24 + $0x78] sm:$0xff] }
 0x133   : > { %551 = vst [vmem:[%s507_s17 + $0xe8] sm:$0xff] %v550_v11 }
 0x134 PF: > { %p9_p10 = scmp.ge.s32.totalorder %s795_s13, 4   ;;  %s948_s9 = smov %s757_s10 }
 0x135   : > { %s949_s10 = smov %s806_s16  ;;  %s950_s11 = smov %s795_s13 }
 0x136   :  { %11 = sbr.rel (!%p9_p10) target bundleno = 2 (0x2), region = 124 }

// kernel: _lambda_.13
= control target key start
LH: loop header
LB: loop body
LE: loop exit
PB: predicated region body
PF: predicated region fallthrough
CT: control target
= control target key end

     0   :  { %s1110_s12 = smov 0   ;;  %s1112_s13 = smov 0   ;;  %s1339_s0 = inlined_call_operand.vmem [shape: bf16[32,288], index: 0, kind: input, shape index: {}]   ;;  %s1340_s1 = inlined_call_operand.vmem [shape: bf16[288,512], index: 1, kind: input, shape index: {}]   ;;  %s1341_s2 = inlined_call_operand.vmem [shape: f32[32,512], index: 2, kind: input, shape index: {}]   ;;  %s1342_s3 = inlined_call_operand.vmem [shape: f32[32,512], index: 3, kind: output, shape index: {}]  }
   0x1   :  { %s1114_s14 = smov 0  }
   0x2 LB: > { %s896_s15 = sadd.s32 4294967295, %s1087_s14   ;;  %s1127_s16 = sadd.s32 1, %s1087_s14   ;;  %s1087_s14 = sphi %s1114_s14, %s1347_s14   ;;  %s1083_s13 = sphi %s1112_s13, %s1346_s13   ;;  %s1079_s12 = sphi %s1110_s12, %s1345_s12  }
   0x3   : > { %s38_s17 = ssub.s32 %s1087_s14, %s1127_s16  ;;  %s41_s18 = sadd.s32 1, %s1083_s13 }
   0x4   : > { %p39_p0 = scmp.eq.s32.totalorder %s38_s17, 0  ;;  %p48_p1 = scmp.ne.s32.totalorder %s1083_s13, %s1079_s12 }
   0x5   : > { %p49_p2 = scmp.eq.s32.totalorder %s1087_s14, 0  ;;  %p104_p3 = scmp.eq.s32.totalorder %s896_s15, 1 }
   0x6   : > { %s1138_s19 = scalar_select %p39_p0, %s1083_s13, %s41_s18  }
   0x7   : > { %p1140_p4 = por %p49_p2, %p48_p1  ;;  %p1144_p5 = por %p104_p3, %p48_p1 }
   0x8   : > { %p899_p6 = scmp.ge.s32.totalorder %s1087_s14, 2 }
   0xa   : > { %129 = sbr.rel (%p899_p6) target bundleno = 47 (0x2f), region = 20 }
  0x11   : > { %132 = sbr.rel (!%p1140_p4) target bundleno = 39 (0x27), region = 24  ;;  %s134_s22 = sand.u32 (%p1140_p4), 1, %s1083_s13  }
  0x12   : > { %s957_s23 = sshll.u32 (%p1140_p4), %s1087_s14, 3  ;;  %s976_s24 = smul.u32 (%p1140_p4), 288, %s134_s22 }
  0x13   : > { %s1156_s27 = scalar_lea.vmem (%p1140_p4), %s1340_s1, %s957_s23 }
  0x14   : > { %v237_v0 = vld [vmem:[%s1156_s27] sm:$0xff] (%p1140_p4)  ;;  %v239_v1 = vld [vmem:[%s1156_s27 + $0x10] sm:$0xff] (%p1140_p4)  ;;  %s1164_s28 = scalar_lea.vmem (%p1140_p4), [#allocation2], %s976_s24 }
  0x15   : > { %v241_v2 = vld [vmem:[%s1156_s27 + $0x20] sm:$0xff] (%p1140_p4)  ;;  %v243_v3 = vld [vmem:[%s1156_s27 + $0x30] sm:$0xff] (%p1140_p4)  ;;  %238 = vst [vmem:[%s1164_s28] sm:$0xff] (%p1140_p4), %v237_v0  ;;  %240 = vst [vmem:[%s1164_s28 + $0x8] sm:$0xff] (%p1140_p4), %v239_v1 }
  0x16   : > { %v245_v4 = vld [vmem:[%s1156_s27 + $0x40] sm:$0xff] (%p1140_p4)  ;;  %v247_v5 = vld [vmem:[%s1156_s27 + $0x50] sm:$0xff] (%p1140_p4)  ;;  %242 = vst [vmem:[%s1164_s28 + $0x10] sm:$0xff] (%p1140_p4), %v241_v2  ;;  %244 = vst [vmem:[%s1164_s28 + $0x18] sm:$0xff] (%p1140_p4), %v243_v3 }
  0x17   : > { %246 = vst [vmem:[%s1164_s28 + $0x20] sm:$0xff] (%p1140_p4), %v245_v4  ;;  %248 = vst [vmem:[%s1164_s28 + $0x28] sm:$0xff] (%p1140_p4), %v247_v5  ;;  %v249_v6 = vld [vmem:[%s1156_s27 + $0x60] sm:$0xff] (%p1140_p4)  ;;  %v251_v7 = vld [vmem:[%s1156_s27 + $0x70] sm:$0xff] (%p1140_p4) }
  0x18   : > { %v253_v8 = vld [vmem:[%s1156_s27 + $0x80] sm:$0xff]  ;;  %250 = vst [vmem:[%s1164_s28 + $0x30] sm:$0xff] %v249_v6  ;;  %252 = vst [vmem:[%s1164_s28 + $0x38] sm:$0xff] %v251_v7  ;;  %v255_v9 = vld [vmem:[%s1156_s27 + $0x90] sm:$0xff] }
  0x19   : > { %254 = vst [vmem:[%s1164_s28 + $0x40] sm:$0xff] %v253_v8  ;;  %v257_v10 = vld [vmem:[%s1156_s27 + $0xa0] sm:$0xff]  ;;  %v259_v11 = vld [vmem:[%s1156_s27 + $0xb0] sm:$0xff]  ;;  %256 = vst [vmem:[%s1164_s28 + $0x48] sm:$0xff] %v255_v9 }
  0x1a   : > { %258 = vst [vmem:[%s1164_s28 + $0x50] sm:$0xff] %v257_v10  ;;  %260 = vst [vmem:[%s1164_s28 + $0x58] sm:$0xff] %v259_v11  ;;  %v261_v12 = vld [vmem:[%s1156_s27 + $0xc0] sm:$0xff]  ;;  %v263_v13 = vld [vmem:[%s1156_s27 + $0xd0] sm:$0xff] }
  0x1b   : > { %v265_v14 = vld [vmem:[%s1156_s27 + $0xe0] sm:$0xff]  ;;  %262 = vst [vmem:[%s1164_s28 + $0x60] sm:$0xff] %v261_v12  ;;  %264 = vst [vmem:[%s1164_s28 + $0x68] sm:$0xff] %v263_v13  ;;  %v267_v15 = vld [vmem:[%s1156_s27 + $0xf0] sm:$0xff] }
  0x1c   : > { %266 = vst [vmem:[%s1164_s28 + $0x70] sm:$0xff] %v265_v14  ;;  %v269_v16 = vld [vmem:[%s1156_s27 + $0x100] sm:$0xff]  ;;  %v271_v17 = vld [vmem:[%s1156_s27 + $0x110] sm:$0xff]  ;;  %268 = vst [vmem:[%s1164_s28 + $0x78] sm:$0xff] %v267_v15 }
  0x1d   : > { %270 = vst [vmem:[%s1164_s28 + $0x80] sm:$0xff] %v269_v16  ;;  %272 = vst [vmem:[%s1164_s28 + $0x88] sm:$0xff] %v271_v17  ;;  %v273_v18 = vld [vmem:[%s1156_s27 + $0x120] sm:$0xff]  ;;  %v275_v19 = vld [vmem:[%s1156_s27 + $0x130] sm:$0xff] }
  0x1e   : > { %v277_v20 = vld [vmem:[%s1156_s27 + $0x140] sm:$0xff]  ;;  %274 = vst [vmem:[%s1164_s28 + $0x90] sm:$0xff] %v273_v18  ;;  %276 = vst [vmem:[%s1164_s28 + $0x98] sm:$0xff] %v275_v19  ;;  %v279_v21 = vld [vmem:[%s1156_s27 + $0x150] sm:$0xff] }
  0x1f   : > { %278 = vst [vmem:[%s1164_s28 + $0xa0] sm:$0xff] %v277_v20  ;;  %v281_v22 = vld [vmem:[%s1156_s27 + $0x160] sm:$0xff]  ;;  %v283_v23 = vld [vmem:[%s1156_s27 + $0x170] sm:$0xff]  ;;  %280 = vst [vmem:[%s1164_s28 + $0xa8] sm:$0xff] %v279_v21 }
  0x20   : > { %282 = vst [vmem:[%s1164_s28 + $0xb0] sm:$0xff] %v281_v22  ;;  %284 = vst [vmem:[%s1164_s28 + $0xb8] sm:$0xff] %v283_v23  ;;  %v285_v24 = vld [vmem:[%s1156_s27 + $0x180] sm:$0xff]  ;;  %v287_v25 = vld [vmem:[%s1156_s27 + $0x190] sm:$0xff] }
  0x21   : > { %v289_v26 = vld [vmem:[%s1156_s27 + $0x1a0] sm:$0xff]  ;;  %286 = vst [vmem:[%s1164_s28 + $0xc0] sm:$0xff] %v285_v24  ;;  %288 = vst [vmem:[%s1164_s28 + $0xc8] sm:$0xff] %v287_v25  ;;  %v291_v27 = vld [vmem:[%s1156_s27 + $0x1b0] sm:$0xff] }
  0x22   : > { %290 = vst [vmem:[%s1164_s28 + $0xd0] sm:$0xff] %v289_v26  ;;  %v293_v28 = vld [vmem:[%s1156_s27 + $0x1c0] sm:$0xff]  ;;  %v295_v29 = vld [vmem:[%s1156_s27 + $0x1d0] sm:$0xff]  ;;  %292 = vst [vmem:[%s1164_s28 + $0xd8] sm:$0xff] %v291_v27 }
  0x23   : > { %294 = vst [vmem:[%s1164_s28 + $0xe0] sm:$0xff] %v293_v28  ;;  %296 = vst [vmem:[%s1164_s28 + $0xe8] sm:$0xff] %v295_v29  ;;  %v297_v30 = vld [vmem:[%s1156_s27 + $0x1e0] sm:$0xff]  ;;  %v299_v31 = vld [vmem:[%s1156_s27 + $0x1f0] sm:$0xff] }
  0x24   : > { %v301_v32 = vld [vmem:[%s1156_s27 + $0x200] sm:$0xff]  ;;  %298 = vst [vmem:[%s1164_s28 + $0xf0] sm:$0xff] %v297_v30  ;;  %300 = vst [vmem:[%s1164_s28 + $0xf8] sm:$0xff] %v299_v31  ;;  %v303_v33 = vld [vmem:[%s1156_s27 + $0x210] sm:$0xff] }
  0x25   : > { %302 = vst [vmem:[%s1164_s28 + $0x100] sm:$0xff] %v301_v32  ;;  %v305_v34 = vld [vmem:[%s1156_s27 + $0x220] sm:$0xff]  ;;  %v307_v35 = vld [vmem:[%s1156_s27 + $0x230] sm:$0xff]  ;;  %304 = vst [vmem:[%s1164_s28 + $0x108] sm:$0xff] %v303_v33 }
  0x26   : > { %306 = vst [vmem:[%s1164_s28 + $0x110] sm:$0xff] %v305_v34  ;;  %308 = vst [vmem:[%s1164_s28 + $0x118] sm:$0xff] %v307_v35 }
  0x27 PF: > { %314 = sbr.rel (!%p1140_p4) target bundleno = 47 (0x2f), region = 62  ;;  %s316_s29 = sand.u32 (%p1140_p4), 1, %s1083_s13  }
  0x28   : > { %s958_s30 = sshll.u32 (%p1140_p4), %s1087_s14, 4  ;;  %s902_s4 = sshll.u32 (%p1140_p4), %s316_s29, 6 }
  0x29   : > { %s321_s7 = scalar_lea.vmem (%p1140_p4), %s1341_s2, %s958_s30  ;;  %s318_s8 = scalar_lea.vmem (%p1140_p4), [#allocation3], %s902_s4 }
  0x2a   : > { %v334_v36 = vld [vmem:[%s321_s7] sm:$0xff] (%p1140_p4)  ;;  %v336_v37 = vld [vmem:[%s321_s7 + $0x8] sm:$0xff] (%p1140_p4) }
  0x2b   : > { %v338_v38 = vld [vmem:[%s321_s7 + $0x20] sm:$0xff] (%p1140_p4)  ;;  %335 = vst [vmem:[%s318_s8] sm:$0xff] (%p1140_p4), %v334_v36  ;;  %337 = vst [vmem:[%s318_s8 + $0x8] sm:$0xff] (%p1140_p4), %v336_v37  ;;  %v340_v39 = vld [vmem:[%s321_s7 + $0x28] sm:$0xff] (%p1140_p4) }
  0x2c   : > { %339 = vst [vmem:[%s318_s8 + $0x10] sm:$0xff] (%p1140_p4), %v338_v38  ;;  %v342_v40 = vld [vmem:[%s321_s7 + $0x40] sm:$0xff] (%p1140_p4)  ;;  %v344_v41 = vld [vmem:[%s321_s7 + $0x48] sm:$0xff] (%p1140_p4)  ;;  %341 = vst [vmem:[%s318_s8 + $0x18] sm:$0xff] (%p1140_p4), %v340_v39 }
  0x2d   : > { %343 = vst [vmem:[%s318_s8 + $0x20] sm:$0xff] (%p1140_p4), %v342_v40  ;;  %345 = vst [vmem:[%s318_s8 + $0x28] sm:$0xff] (%p1140_p4), %v344_v41  ;;  %v346_v42 = vld [vmem:[%s321_s7 + $0x60] sm:$0xff] (%p1140_p4)  ;;  %v348_v43 = vld [vmem:[%s321_s7 + $0x68] sm:$0xff] (%p1140_p4) }
  0x2e   : > { %347 = vst [vmem:[%s318_s8 + $0x30] sm:$0xff] %v346_v42  ;;  %349 = vst [vmem:[%s318_s8 + $0x38] sm:$0xff] %v348_v43 }
  0x2f PF: > { %p905_p7 = scmp.ge.s32.totalorder %s1087_s14, 1  ;;  %p354_p8 = scmp.lt.s32.totalorder %s1087_s14, 3 }
  0x31   : > { %p355_p9 = pnand %p905_p7, %p354_p8 }
  0x32   : > { %s361_s9 = sand.u32 (!%p355_p9), 1, %s1079_s12   ;;  %v1089_v44 = vmov (!%p355_p9), 0   ;;  %v1059_v45 = vld [vmem:[%s1339_s0 + $0x4] ss:$12 sps:$4 sm:$0xff] (!%p355_p9)   ;;  %v1060_v1 = vld [vmem:[%s1339_s0 + $0x8] ss:$12 sps:$4 sm:$0xff] (!%p355_p9)  }
  0x33   : > { %358 = sbr.rel (%p355_p9) target bundleno = 356 (0x164), region = 85  ;;  %752 = vmatprep.mubr.bf16.mxu0 (!%p355_p9), %v1089_v44  ;;  %699 = vmatprep.mubr.bf16.mxu1 (!%p355_p9), %v1059_v45  ;;  %vm660_vm0 = vcmask (!%p355_p9), 261120   ;;  %v1063_v6 = vld [vmem:[%s1339_s0 + $0x20] ss:$12 sps:$4 sm:$0xff] (!%p355_p9)   ;;  %v1061_v21 = vld [vmem:[%s1339_s0 + $0x1c] ss:$12 sps:$4 sm:$0xff] (!%p355_p9)  }
  0x34   : > { %s977_s10 = smul.u32 (!%p355_p9), 288, %s361_s9  ;;  %v1057_v20 = vld [vmem:[%s1339_s0] ss:$12 sps:$4 sm:$0xff] (!%p355_p9)   ;;  %v1064_v22 = vld [vmem:[%s1339_s0 + $0x18] ss:$12 sps:$4 sm:$0xff] (!%p355_p9)   ;;  %s906_s4 = sshll.u32 (!%p355_p9), %s361_s9, 6 }
  0x35   : > { %s370_s5 = scalar_lea.vmem (!%p355_p9), [#allocation3], %s906_s4  ;;  %s1304_s6 = scalar_lea.vmem (!%p355_p9), [#allocation4], %s906_s4 }
  0x36   : > { %s1247_s18 = scalar_lea.vmem (!%p355_p9), [#allocation2], %s977_s10  ;;  %v442_v31 = vld [vmem:[%s370_s5] sm:$0xff] (!%p355_p9)  ;;  %v443_v32 = vld [vmem:[%s370_s5 + $0x8] sm:$0xff] (!%p355_p9)  ;;  %v444_v34 = vld [vmem:[%s370_s5 + $0x10] sm:$0xff] (!%p355_p9) }
  0x37   : > { %v1003_v46 = vld [vmem:[%s1247_s18 + $0x4] ss:$8 sps:$4 sm:$0xff] (!%p355_p9)   ;;  %v1005_v47 = vld [vmem:[%s1247_s18] ss:$8 sps:$4 sm:$0xff] (!%p355_p9)   ;;  %v1006_v48 = vld [vmem:[%s1247_s18 + $0x14] ss:$8 sps:$4 sm:$0xff] (!%p355_p9)  }
  0x38   : > { %667 = vmatprep.subr.bf16.mxu1 (!%p355_p9), %v1003_v46  ;;  %v1008_v49 = vld [vmem:[%s1247_s18 + $0x10] ss:$8 sps:$4 sm:$0xff] (!%p355_p9)   ;;  %v1009_v50 = vld [vmem:[%s1247_s18 + $0x24] ss:$8 sps:$4 sm:$0xff] (!%p355_p9)   ;;  %v1011_v51 = vld [vmem:[%s1247_s18 + $0x20] ss:$8 sps:$4 sm:$0xff] (!%p355_p9)  }
  0x39   : > { %668 = vmatpush1.bf16.msra.mxu1 (!%p355_p9), %v1005_v47  ;;  %v1012_v52 = vld [vmem:[%s1247_s18 + $0x34] ss:$8 sps:$4 sm:$0xff] (!%p355_p9)   ;;  %v1014_v53 = vld [vmem:[%s1247_s18 + $0x30] ss:$8 sps:$4 sm:$0xff] (!%p355_p9)   ;;  %v1015_v54 = vld [vmem:[%s1247_s18 + $0x44] ss:$8 sps:$4 sm:$0xff] (!%p355_p9)  }
  0x3a   : > { %669 = vmatprep.subr.bf16.mxu1 %v1006_v48  ;;  %v1017_v55 = vld [vmem:[%s1247_s18 + $0x40] ss:$8 sps:$4 sm:$0xff]   ;;  %v1018_v56 = vld [vmem:[%s1247_s18 + $0x54] ss:$8 sps:$4 sm:$0xff]   ;;  %v1020_v57 = vld [vmem:[%s1247_s18 + $0x50] ss:$8 sps:$4 sm:$0xff]  }
  0x3b   : > { %v1045_v58 = vld [vmem:[%s1247_s18 + $0x104] ss:$8 sps:$4 sm:$0xff]   ;;  %v1049_v60 = vld [vmem:[%s1247_s18 + $0x100] ss:$8 sps:$4 sm:$0xff]   ;;  %v1051_v61 = vld [vmem:[%s1247_s18 + $0x114] ss:$8 sps:$4 sm:$0xff]  }
  0x3c   : > { %v1021_v59 = vld [vmem:[%s1247_s18 + $0x64] ss:$8 sps:$4 sm:$0xff]   ;;  %720 = vmatprep.subr.bf16.mxu0 %v1045_v58  ;;  %v1023_v62 = vld [vmem:[%s1247_s18 + $0x60] ss:$8 sps:$4 sm:$0xff]   ;;  %v1055_v63 = vld [vmem:[%s1247_s18 + $0x110] ss:$8 sps:$4 sm:$0xff]  }
  0x3d   : > { %670 = vmatpush1.bf16.msra.mxu1 %v1008_v49  ;;  %721 = vmatpush1.bf16.msra.mxu0 %v1049_v60  ;;  %v1024_v0 = vld [vmem:[%s1247_s18 + $0x74] ss:$8 sps:$4 sm:$0xff]   ;;  %v1026_v2 = vld [vmem:[%s1247_s18 + $0x70] ss:$8 sps:$4 sm:$0xff]   ;;  %v1027_v3 = vld [vmem:[%s1247_s18 + $0x84] ss:$8 sps:$4 sm:$0xff]  }
  0x3e   : > { %671 = vmatprep.subr.bf16.mxu1 %v1009_v50  ;;  %722 = vmatprep.subr.bf16.mxu0 %v1051_v61  ;;  %v1029_v4 = vld [vmem:[%s1247_s18 + $0x80] ss:$8 sps:$4 sm:$0xff]   ;;  %v1030_v5 = vld [vmem:[%s1247_s18 + $0x94] ss:$8 sps:$4 sm:$0xff]   ;;  %v1032_v7 = vld [vmem:[%s1247_s18 + $0x90] ss:$8 sps:$4 sm:$0xff]  }
  0x3f   : > { %v1033_v8 = vld [vmem:[%s1247_s18 + $0xa4] ss:$8 sps:$4 sm:$0xff]   ;;  %v1035_v9 = vld [vmem:[%s1247_s18 + $0xa0] ss:$8 sps:$4 sm:$0xff]   ;;  %v1036_v10 = vld [vmem:[%s1247_s18 + $0xb4] ss:$8 sps:$4 sm:$0xff]  }
  0x40   : > { %v1038_v11 = vld [vmem:[%s1247_s18 + $0xb0] ss:$8 sps:$4 sm:$0xff]   ;;  %v1039_v12 = vld [vmem:[%s1247_s18 + $0xc4] ss:$8 sps:$4 sm:$0xff]   ;;  %v1041_v13 = vld [vmem:[%s1247_s18 + $0xc0] ss:$8 sps:$4 sm:$0xff]  }
  0x41   : > { %672 = vmatpush1.bf16.msra.mxu1 %v1011_v51  ;;  %723 = vmatpush1.bf16.msra.mxu0 %v1055_v63  ;;  %v1042_v14 = vld [vmem:[%s1247_s18 + $0xd4] ss:$8 sps:$4 sm:$0xff]   ;;  %v1044_v15 = vld [vmem:[%s1247_s18 + $0xd0] ss:$8 sps:$4 sm:$0xff]   ;;  %v1047_v16 = vld [vmem:[%s1247_s18 + $0xe4] ss:$8 sps:$4 sm:$0xff]  }
  0x42   : > { %673 = vmatprep.subr.bf16.mxu1 %v1012_v52  ;;  %v1050_v17 = vld [vmem:[%s1247_s18 + $0xe0] ss:$8 sps:$4 sm:$0xff]   ;;  %v1053_v18 = vld [vmem:[%s1247_s18 + $0xf4] ss:$8 sps:$4 sm:$0xff]   ;;  %v1056_v19 = vld [vmem:[%s1247_s18 + $0xf0] ss:$8 sps:$4 sm:$0xff]  }
  0x43   : > { %v445_v37 = vld [vmem:[%s370_s5 + $0x18] sm:$0xff]  ;;  %v446_v47 = vld [vmem:[%s370_s5 + $0x20] sm:$0xff]  ;;  %v447_v48 = vld [vmem:[%s370_s5 + $0x28] sm:$0xff]  ;;  %s959_s12 = sshll.u32 (%p1144_p5), %s896_s15, 4 }
  0x44   : > { %950 = vmatmul.mubr.msk.bf16.vlgmr.msra.gmra.mrb[0].mxu0 %vm660_vm0, %v1060_v1  ;;  %v448_v50 = vld [vmem:[%s370_s5 + $0x30] sm:$0xff]  ;;  %s790_s9 = scalar_lea.vmem (%p1144_p5), %s1342_s3, %s959_s12 }
  0x45   : > { %674 = vmatpush1.bf16.msra.mxu1 %v1014_v53  ;;  %762 = vmatprep.mubr.bf16.mxu0 %v1089_v44  ;;  %v449_v53 = vld [vmem:[%s370_s5 + $0x38] sm:$0xff] }
  0x46   : > { %675 = vmatprep.subr.bf16.mxu1 %v1015_v54 }
  0x49   : > { %676 = vmatpush1.bf16.msra.mxu1 %v1017_v55 }
  0x4a   : > { %677 = vmatprep.subr.bf16.mxu1 %v1018_v56 }
  0x4c   : > { %951 = vmatmul.mubr.msk.bf16.gmra.mrb[4].mxu0 %vm660_vm0, %v1063_v6 }
  0x4d   : > { %678 = vmatpush1.bf16.msra.mxu1 %v1020_v57 }
  0x4e   : > { %679 = vmatprep.subr.bf16.mxu1 %v1021_v59 }
  0x51   : > { %680 = vmatpush1.bf16.msra.mxu1 %v1023_v62 }
  0x52   : > { %681 = vmatprep.subr.bf16.mxu1 %v1024_v0 }
  0x55   : > { %682 = vmatpush1.bf16.msra.mxu1 %v1026_v2 }
  0x56   : > { %683 = vmatprep.subr.bf16.mxu1 %v1027_v3 }
  0x59   : > { %684 = vmatpush1.bf16.msra.mxu1 %v1029_v4 }
  0x5a   : > { %685 = vmatprep.subr.bf16.mxu1 %v1030_v5 }
  0x5d   : > { %686 = vmatpush1.bf16.msra.mxu1 %v1032_v7 }
  0x5e   : > { %687 = vmatprep.subr.bf16.mxu1 %v1033_v8 }
  0x61   : > { %688 = vmatpush1.bf16.msra.mxu1 %v1035_v9 }
  0x62   : > { %689 = vmatprep.subr.bf16.mxu1 %v1036_v10 }
  0x65   : > { %690 = vmatpush1.bf16.msra.mxu1 %v1038_v11 }
  0x66   : > { %691 = vmatprep.subr.bf16.mxu1 %v1039_v12 }
  0x69   : > { %692 = vmatpush1.bf16.msra.mxu1 %v1041_v13 }
  0x6a   : > { %693 = vmatprep.subr.bf16.mxu1 %v1042_v14 }
  0x6d   : > { %694 = vmatpush1.bf16.msra.mxu1 %v1044_v15 }
  0x6e   : > { %695 = vmatprep.subr.bf16.mxu1 %v1047_v16 }
  0x71   : > { %696 = vmatpush1.bf16.msra.mxu1 %v1050_v17 }
  0x72   : > { %697 = vmatprep.subr.bf16.mxu1 %v1053_v18 }
  0x75   : > { %698 = vmatpush1.bf16.msra.mxu1 %v1056_v19 }
  0x78   : > { %700 = vmatmul.mubr.bf16.vlgmr.msra.gmra.mrb[0].mxu1 %v1057_v20 }
  0x79   : > { %709 = vmatprep.mubr.bf16.mxu1 %v1061_v21 }
  0x80   : > { %710 = vmatmul.mubr.bf16.gmra.mrb[4].mxu1 %v1064_v22 }
 0x117   : > { %v754_v23 = vpop.f32.mrb[0].mxu0 }
 0x118   : > { %v756_v24 = vpop.f32.mrb[1].mxu0 }
 0x119   : > { %v758_v25 = vpop.f32.mrb[2].mxu0 }
 0x11a   : > { %v760_v26 = vpop.f32.mrb[3].mxu0 }
 0x11f   : > { %v764_v27 = vpop.f32.mrb[4].mxu0 }
 0x120   : > { %v766_v28 = vpop.f32.mrb[5].mxu0 }
 0x121   : > { %v768_v29 = vpop.f32.mrb[6].mxu0 }
 0x122   : > { %v770_v30 = vpop.f32.mrb[7].mxu0 }
 0x14b   : > { %v701_v33 = vpop.f32.mrb[0].mxu1 }
 0x14c   : > { %v702_v35 = vadd.f32 %v701_v33, %v442_v31  ;;  %v703_v36 = vpop.f32.mrb[1].mxu1 }
 0x14d   : > { %v704_v38 = vadd.f32 %v703_v36, %v443_v32  ;;  %v705_v39 = vpop.f32.mrb[2].mxu1 }
 0x14e   : > { %v755_v40 = vadd.f32 %v754_v23, %v702_v35  ;;  %v706_v41 = vadd.f32 %v705_v39, %v444_v34  ;;  %v707_v42 = vpop.f32.mrb[3].mxu1 }
 0x14f   : > { %v757_v43 = vadd.f32 %v756_v24, %v704_v38  ;;  %v708_v44 = vadd.f32 %v707_v42, %v445_v37 }
 0x150   : > { %773 = vst [vmem:[%s1304_s6] sm:$0xff] %v755_v40  ;;  %v759_v45 = vadd.f32 %v758_v25, %v706_v41 }
 0x151   : > { %774 = vst [vmem:[%s1304_s6 + $0x8] sm:$0xff] %v757_v43  ;;  %v761_v46 = vadd.f32 %v760_v26, %v708_v44 }
 0x152   : > { %775 = vst [vmem:[%s1304_s6 + $0x10] sm:$0xff] %v759_v45 }
 0x153   : > { %776 = vst [vmem:[%s1304_s6 + $0x18] sm:$0xff] %v761_v46  ;;  %v711_v49 = vpop.f32.mrb[4].mxu1 }
 0x154   : > { %v712_v51 = vadd.f32 %v711_v49, %v446_v47  ;;  %v713_v52 = vpop.f32.mrb[5].mxu1 }
 0x155   : > { %v714_v54 = vadd.f32 %v713_v52, %v447_v48  ;;  %v715_v55 = vpop.f32.mrb[6].mxu1  ;;  %787 = sbr.rel (!%p1144_p5) target bundleno = 356 (0x164), region = 97 }
 0x156   : > { %v765_v56 = vadd.f32 %v764_v27, %v712_v51  ;;  %v716_v57 = vadd.f32 %v715_v55, %v448_v50  ;;  %v717_v58 = vpop.f32.mrb[7].mxu1 }
 0x157   : > { %v767_v59 = vadd.f32 %v766_v28, %v714_v54  ;;  %v718_v60 = vadd.f32 %v717_v58, %v449_v53  ;;  %v803_v63 = vld [vmem:[%s1304_s6] sm:$0xff] (%p1144_p5) }
 0x158   : > { %777 = vst [vmem:[%s1304_s6 + $0x20] sm:$0xff] %v765_v56  ;;  %v769_v61 = vadd.f32 %v768_v29, %v716_v57  ;;  %v805_v0 = vld [vmem:[%s1304_s6 + $0x8] sm:$0xff] (%p1144_p5)  ;;  %804 = vst [vmem:[%s790_s9] sm:$0xff] (%p1144_p5), %v803_v63 }
 0x159   : > { %778 = vst [vmem:[%s1304_s6 + $0x28] sm:$0xff] %v767_v59  ;;  %v771_v62 = vadd.f32 %v770_v30, %v718_v60  ;;  %v807_v1 = vld [vmem:[%s1304_s6 + $0x10] sm:$0xff] (%p1144_p5)  ;;  %806 = vst [vmem:[%s790_s9 + $0x8] sm:$0xff] (%p1144_p5), %v805_v0 }
 0x15a   : > { %779 = vst [vmem:[%s1304_s6 + $0x30] sm:$0xff] %v769_v61  ;;  %v809_v2 = vld [vmem:[%s1304_s6 + $0x18] sm:$0xff] (%p1144_p5)  ;;  %808 = vst [vmem:[%s790_s9 + $0x20] sm:$0xff] (%p1144_p5), %v807_v1 }
 0x15b   : > { %780 = vst [vmem:[%s1304_s6 + $0x38] sm:$0xff] %v771_v62  ;;  %810 = vst [vmem:[%s790_s9 + $0x28] sm:$0xff] (%p1144_p5), %v809_v2 }
 0x15f   : > { %v811_v3 = vld [vmem:[%s1304_s6 + $0x20] sm:$0xff] }
 0x160   : > { %v813_v4 = vld [vmem:[%s1304_s6 + $0x28] sm:$0xff]  ;;  %812 = vst [vmem:[%s790_s9 + $0x40] sm:$0xff] %v811_v3 }
 0x161   : > { %814 = vst [vmem:[%s790_s9 + $0x48] sm:$0xff] %v813_v4  ;;  %v815_v5 = vld [vmem:[%s1304_s6 + $0x30] sm:$0xff] }
 0x162   : > { %v817_v6 = vld [vmem:[%s1304_s6 + $0x38] sm:$0xff]  ;;  %816 = vst [vmem:[%s790_s9 + $0x60] sm:$0xff] %v815_v5 }
 0x163   : > { %818 = vst [vmem:[%s790_s9 + $0x68] sm:$0xff] %v817_v6 }
 0x164 PF: > { %p10_p10 = scmp.ge.s32.totalorder %s1127_s16, 4   ;;  %s1345_s12 = smov %s1083_s13 }
 0x165   : > { %s1346_s13 = smov %s1138_s19  ;;  %s1347_s14 = smov %s1127_s16 }
 0x166   :  { %12 = sbr.rel (!%p10_p10) target bundleno = 2 (0x2), region = 159 }

</bundles_post_ra>
